<compile_context>
chip_gen: v5e
topology: v5e:2x2
jax: 0.10.0
libtpu: 0.0.40
codegen_flags: <defaults>
</compile_context>

<pallas_src>
import functools

import jax
import jax.numpy as jnp
from jax.experimental import pallas as pl
from jax.experimental.pallas import tpu as pltpu


# ----------------------------------------------------------------------------
# VMEM sizing helpers
# ----------------------------------------------------------------------------
def _vmem_budget_and_limit():
    """Per-generation VMEM budget (tile search) and scoped-vmem limit."""
    cap = 64 * 1024 * 1024                     # conservative default (v7x-class)
    try:
        cap = int(pltpu.get_tpu_info().vmem_capacity_bytes)
    except Exception:
        pass
    # Keep headroom under the physical capacity; the larger v5e/v6e 128 MiB
    # VMEM lets the tile chooser pick bigger row bands (fewer grid steps).
    limit = min(int(cap * 0.85), 112 * 1024 * 1024)
    budget = min(int(cap * 0.40), 56 * 1024 * 1024)
    return budget, limit


def _choose_row_tile(h, w, cin, cout, in_bytes, budget_bytes):
    """Largest divisor TH of H whose per-step working set fits the budget."""
    best = 1
    for th in range(1, h + 1):
        if h % th:
            continue
        need = (
            2 * (th + 2) * w * cin * in_bytes   # main + halo inputs, double-buffered
            + 2 * 9 * cin * cout * 2            # folded bf16 weights, double-buffered
            + 2 * th * w * cout * 2             # bf16 pre-BN output tile, double-buffered
            + 2 * 2 * cout * 4                  # per-tile stats, double-buffered
            + (th + 2) * w * 3 * cin * 2        # im2col slab scratch (bf16)
            + (th + 2) * w * cin * (4 + 2)      # f32 activated band + bf16 copy temps
            + 3 * th * w * cout * 4             # f32 accumulator / matmul result temps
        )
        if need <= budget_bytes:
            best = th
    return best


# ----------------------------------------------------------------------------
# Kernels
# ----------------------------------------------------------------------------
def _conv3x3_stats_kernel(*refs, th, w, cin, cout, fuse_bn):
    """3x3 conv (pad=1) over a TH-row band + per-tile channel statistics.

    Optionally fuses the previous stage's BatchNorm+ReLU into the prologue
    (so the post-activation feature map never round-trips through HBM).
    """
    if fuse_bn:
        (top_ref, main_ref, bot_ref, sc_ref, sh_ref, wf_ref,
         y_ref, s_ref, slab_ref) = refs
    else:
        (top_ref, main_ref, bot_ref, wf_ref, y_ref, s_ref, slab_ref) = refs

    j = pl.program_id(1)
    nb = pl.num_programs(1)

    # (TH+2, W, Cin) raw band: rows = [top halo, TH main rows, bottom halo].
    raw = jnp.concatenate([top_ref[...], main_ref[...], bot_ref[...]], axis=0)

    if fuse_bn:
        # Previous stage BatchNorm + ReLU, folded per-channel scale/shift.
        a = jnp.maximum(raw.astype(jnp.float32) * sc_ref[...] + sh_ref[...], 0.0)
    else:
        a = raw.astype(jnp.float32)

    # Zero halo rows that fall outside the image (conv zero padding).  The
    # halo index maps clamp at the boundary, so masking restores correctness.
    r = jax.lax.broadcasted_iota(jnp.int32, (th + 2, 1, 1), 0)
    inside = jnp.logical_and(jnp.logical_or(r > 0, j > 0),
                             jnp.logical_or(r <= th, j < nb - 1))
    a = jnp.where(inside, a, 0.0).astype(jnp.bfloat16)

    # In-VMEM im2col over the 3 horizontal taps: K = 3*Cin, only 3 MXU matmuls
    # per tile instead of 9 (main compute win for small-Cin UNet stages).
    # slab[r, x, dx*Cin + c] == zero-padded-input[row r-1+band, col x-1+dx, c]
    slab_ref[...] = jnp.zeros_like(slab_ref)               # also clears pad cols
    slab_ref[:, 1:w, 0:cin] = a[:, 0:w - 1, :]              # dx = 0 (left tap)
    slab_ref[:, :, cin:2 * cin] = a                          # dx = 1 (center tap)
    slab_ref[:, 0:w - 1, 2 * cin:3 * cin] = a[:, 1:w, :]     # dx = 2 (right tap)

    slab = slab_ref[...].reshape((th + 2) * w, 3 * cin)
    m = th * w
    acc = jnp.dot(slab[0:m], wf_ref[0], preferred_element_type=jnp.float32)
    acc = acc + jnp.dot(slab[w:w + m], wf_ref[1],
                        preferred_element_type=jnp.float32)
    acc = acc + jnp.dot(slab[2 * w:2 * w + m], wf_ref[2],
                        preferred_element_type=jnp.float32)

    y_ref[...] = acc.reshape(th, w, cout).astype(y_ref.dtype)
    # Per-tile channel statistics (f32) for the BatchNorm that follows.
    s_ref[0:1, :] = jnp.sum(acc, axis=0, keepdims=True)
    s_ref[1:2, :] = jnp.sum(acc * acc, axis=0, keepdims=True)


def _bn_relu_kernel(y_ref, sc_ref, sh_ref, o_ref):
    # y_ref: (TH, W, C) bf16; sc/sh: (1, C) f32; o_ref: (TH, W, C) out dtype.
    o_ref[...] = jnp.maximum(
        y_ref[...].astype(jnp.float32) * sc_ref[...] + sh_ref[...], 0.0
    ).astype(o_ref.dtype)


# ----------------------------------------------------------------------------
# pallas_call wrappers
# ----------------------------------------------------------------------------
def _conv3x3_stats_pass(x, w_fold, bn_scale, bn_shift, *, th, out_dtype,
                        vmem_limit):
    """One conv stage: returns (pre-BN output (N,H,W,Cout), stats (N,HB,2,Cout))."""
    n, h, w, cin = x.shape
    cout = w_fold.shape[-1]
    hb = h // th
    fuse_bn = bn_scale is not None

    kern = functools.partial(_conv3x3_stats_kernel, th=th, w=w, cin=cin,
                             cout=cout, fuse_bn=fuse_bn)

    in_specs = [
        # Top halo row (index clamped at the boundary, masked in-kernel).
        pl.BlockSpec((None, 1, w, cin),
                     lambda i, j: (i, jnp.maximum(j * th - 1, 0), 0, 0)),
        # Main TH-row band.
        pl.BlockSpec((None, th, w, cin), lambda i, j: (i, j, 0, 0)),
        # Bottom halo row.
        pl.BlockSpec((None, 1, w, cin),
                     lambda i, j: (i, jnp.minimum((j + 1) * th, h - 1), 0, 0)),
    ]
    args = [x, x, x]
    if fuse_bn:
        in_specs += [pl.BlockSpec((1, cin), lambda i, j: (0, 0)),
                     pl.BlockSpec((1, cin), lambda i, j: (0, 0))]
        args += [bn_scale, bn_shift]
    in_specs.append(pl.BlockSpec((3, 3 * cin, cout), lambda i, j: (0, 0, 0)))
    args.append(w_fold)

    y, part = pl.pallas_call(
        kern,
        out_shape=(jax.ShapeDtypeStruct((n, h, w, cout), out_dtype),
                   jax.ShapeDtypeStruct((n, hb, 2, cout), jnp.float32)),
        grid=(n, hb),
        in_specs=in_specs,
        out_specs=(pl.BlockSpec((None, th, w, cout), lambda i, j: (i, j, 0, 0)),
                   pl.BlockSpec((None, None, 2, cout),
                                lambda i, j: (i, j, 0, 0))),
        scratch_shapes=[pltpu.VMEM((th + 2, w, 3 * cin), jnp.bfloat16)],
        compiler_params=pltpu.CompilerParams(
            dimension_semantics=("parallel", "parallel"),
            vmem_limit_bytes=vmem_limit),
    )(*args)
    return y, part


def _bn_relu_pass(y, scale, shift, *, th, out_dtype, vmem_limit):
    n, h, w, c = y.shape
    hb = h // th
    return pl.pallas_call(
        _bn_relu_kernel,
        out_shape=jax.ShapeDtypeStruct((n, h, w, c), out_dtype),
        grid=(n, hb),
        in_specs=[pl.BlockSpec((None, th, w, c), lambda i, j: (i, j, 0, 0)),
                  pl.BlockSpec((1, c), lambda i, j: (0, 0)),
                  pl.BlockSpec((1, c), lambda i, j: (0, 0))],
        out_specs=pl.BlockSpec((None, th, w, c), lambda i, j: (i, j, 0, 0)),
        compiler_params=pltpu.CompilerParams(
            dimension_semantics=("parallel", "parallel"),
            vmem_limit_bytes=vmem_limit),
    )(y, scale, shift)


def _bn_scale_shift(part, gamma, beta, tile_pixels, eps):
    """Fold train-mode BatchNorm into per-channel scale/shift.

    part[n, j, 0, c] / part[n, j, 1, c] are per-tile sum / sum-of-squares of
    the pre-BN conv outputs.  Uses a Chan-style combine (per-tile centering)
    to avoid catastrophic cancellation of E[x^2] - E[x]^2 across tiles.
    """
    s = part[:, :, 0, :]
    ss = part[:, :, 1, :]
    n_t = float(tile_pixels)
    m = n_t * s.shape[0] * s.shape[1]
    mean = jnp.sum(s, axis=(0, 1)) / m
    mean_t = s / n_t
    m2_t = jnp.maximum(ss - s * mean_t, 0.0)          # per-tile centered ssq
    var = (jnp.sum(m2_t, axis=(0, 1)) +
           jnp.sum(n_t * jnp.square(mean_t - mean), axis=(0, 1))) / m
    scale = gamma.astype(jnp.float32) * jax.lax.rsqrt(var + eps)
    shift = beta.astype(jnp.float32) - mean * scale
    return scale.reshape(1, -1), shift.reshape(1, -1)


# ----------------------------------------------------------------------------
# Module
# ----------------------------------------------------------------------------
class DoubleConvPallas:
    """(Conv3x3 no-bias => BatchNorm2d(batch stats) => ReLU) * 2 — NCHW in/out."""

    def __init__(self, in_channels, out_channels, mid_channels=None, key=None):
        if not mid_channels:
            mid_channels = out_channels
        key = jax.random.PRNGKey(0) if key is None else key
        k1, k2 = jax.random.split(key)
        self.in_channels = in_channels
        self.mid_channels = mid_channels
        self.out_channels = out_channels
        # HWIO weights (equivalent of PyTorch's (Cout, Cin, 3, 3) layout).
        self.w1 = jax.random.normal(k1, (3, 3, in_channels, mid_channels),
                                    jnp.float32) * (9 * in_channels) ** -0.5
        self.w2 = jax.random.normal(k2, (3, 3, mid_channels, out_channels),
                                    jnp.float32) * (9 * mid_channels) ** -0.5
        # BatchNorm affine params (PyTorch default init: weight=1, bias=0).
        self.g1 = jnp.ones((mid_channels,), jnp.float32)
        self.b1 = jnp.zeros((mid_channels,), jnp.float32)
        self.g2 = jnp.ones((out_channels,), jnp.float32)
        self.b2 = jnp.zeros((out_channels,), jnp.float32)
        # TODO(synk): BatchNorm running_mean/running_var buffers are not
        # tracked (this reproduces PyTorch's train-mode forward only).

    def __call__(self, x_nchw, eps=1e-5):
        x = jnp.transpose(x_nchw, (0, 2, 3, 1))              # NCHW -> NHWC
        n, h, w, _ = x.shape
        budget, limit = _vmem_budget_and_limit()

        # dx-folded weights: (3, 3*Cin, Cout) with K index = dx*Cin + c.
        wf1 = self.w1.reshape(
            3, 3 * self.in_channels, self.mid_channels).astype(jnp.bfloat16)
        wf2 = self.w2.reshape(
            3, 3 * self.mid_channels, self.out_channels).astype(jnp.bfloat16)

        # Stage 1: conv1 + stats.  Pre-BN activations kept in bf16, real Cmid
        # channels only (no 128-pad on the handoff -> 16x less HBM traffic
        # when mid_channels is small).
        th1 = _choose_row_tile(h, w, self.in_channels, self.mid_channels, 4,
                               budget)
        y1, p1 = _conv3x3_stats_pass(x, wf1, None, None, th=th1,
                                     out_dtype=jnp.bfloat16, vmem_limit=limit)
        sc1, sh1 = _bn_scale_shift(p1, self.g1, self.b1, th1 * w, eps)

        # Stage 2: conv2 with stage-1 BN+ReLU fused into its prologue (+stats).
        th2 = _choose_row_tile(h, w, self.mid_channels, self.out_channels, 2,
                               budget)
        y2, p2 = _conv3x3_stats_pass(y1, wf2, sc1, sh1, th=th2,
                                     out_dtype=jnp.bfloat16, vmem_limit=limit)
        sc2, sh2 = _bn_scale_shift(p2, self.g2, self.b2, th2 * w, eps)

        # Final BatchNorm2 + ReLU (memory-bound FMA pass), f32 output.
        out = _bn_relu_pass(y2, sc2, sh2, th=th2, out_dtype=jnp.float32,
                            vmem_limit=limit)
        return jnp.transpose(out, (0, 3, 1, 2))              # NHWC -> NCHW


# ----------------------------------------------------------------------------
# Pure-JAX reference + self-test
# ----------------------------------------------------------------------------
def _reference_double_conv(x_nchw, model, eps=1e-5):
    """Pure-JAX f32 reference (lax conv + train-mode BN + ReLU)."""
    def stage(x, wt, g, b):
        y = jax.lax.conv_general_dilated(
            x, wt, window_strides=(1, 1), padding="SAME",
            dimension_numbers=("NHWC", "HWIO", "NHWC"))
        mean = jnp.mean(y, axis=(0, 1, 2))
        var = jnp.var(y, axis=(0, 1, 2))
        return jnp.maximum((y - mean) * jax.lax.rsqrt(var + eps) * g + b, 0.0)

    x = jnp.transpose(x_nchw, (0, 2, 3, 1))
    h1 = stage(x, model.w1, model.g1, model.b1)
    h2 = stage(h1, model.w2, model.g2, model.b2)
    return jnp.transpose(h2, (0, 3, 1, 2))


if __name__ == "__main__":
    key = jax.random.PRNGKey(0)
    kx, kp = jax.random.split(key)
    x = jax.random.normal(kx, (2, 4, 16, 16), jnp.float32)    # NCHW, like PyTorch
    model = DoubleConvPallas(in_channels=4, out_channels=8, key=kp)

    fwd = jax.jit(lambda inp: model(inp))
    y = jax.block_until_ready(fwd(x))

    assert y.shape == (2, 8, 16, 16), y.shape
    assert bool(jnp.all(jnp.isfinite(y)))
    assert bool(jnp.all(y >= 0.0))                            # ReLU output

    # Loose check vs f32 reference (kernel uses bf16 MXU operands / bf16
    # pre-BN intermediates — documented numerical difference).
    y_ref = _reference_double_conv(x, model)
    max_err = float(jnp.max(jnp.abs(y - y_ref)))
    assert max_err < 0.3, f"max abs err vs reference: {max_err}"

    print("KERNEL_OK")
</pallas_src>

<mosaic_0001>
module attributes {stable_mosaic.version = 11 : i64} {
  func.func @_conv3x3_stats_kernel(%arg0: i32, %arg1: i32, %arg2: memref<1x1x16x4xf32, #tpu.memory_space<vmem>>, %arg3: memref<1x16x16x4xf32, #tpu.memory_space<vmem>>, %arg4: memref<1x1x16x4xf32, #tpu.memory_space<vmem>>, %arg5: memref<3x12x8xbf16, #tpu.memory_space<vmem>>, %arg6: memref<1x16x16x8xbf16, #tpu.memory_space<vmem>>, %arg7: memref<1x1x2x8xf32, #tpu.memory_space<vmem>>, %arg8: memref<18x16x12xbf16, #tpu.memory_space<vmem>>) attributes {dimension_semantics = [#tpu.dimension_semantics<parallel>, #tpu.dimension_semantics<parallel>], iteration_bounds = array<i64: 2, 1>, scalar_prefetch = 0 : i64, scratch_operands = 1 : i64, tpu.core_type = #tpu.core_type<tc>, window_params = [{transform_indices = @transform_0, window_bounds = array<i64: 1, 1, 16, 4>}, {transform_indices = @transform_1, window_bounds = array<i64: 1, 16, 16, 4>}, {transform_indices = @transform_2, window_bounds = array<i64: 1, 1, 16, 4>}, {pipeline_mode = #tpu.pipeline_mode<synchronous>, transform_indices = @transform_3, window_bounds = array<i64: 3, 12, 8>}, {transform_indices = @transform_4, window_bounds = array<i64: 1, 16, 16, 8>}, {transform_indices = @transform_5, window_bounds = array<i64: 1, 1, 2, 8>}]} {
    %c0 = arith.constant 0 : index
    %c0_0 = arith.constant 0 : index
    %c0_1 = arith.constant 0 : index
    %c0_2 = arith.constant 0 : index
    %0 = vector.load %arg2[%c0, %c0_0, %c0_1, %c0_2] : memref<1x1x16x4xf32, #tpu.memory_space<vmem>>, vector<1x1x16x4xf32>
    %1 = vector.shape_cast %0 : vector<1x1x16x4xf32> to vector<1x16x4xf32>
    %c0_3 = arith.constant 0 : index
    %c0_4 = arith.constant 0 : index
    %c0_5 = arith.constant 0 : index
    %c0_6 = arith.constant 0 : index
    %2 = vector.load %arg3[%c0_3, %c0_4, %c0_5, %c0_6] : memref<1x16x16x4xf32, #tpu.memory_space<vmem>>, vector<1x16x16x4xf32>
    %3 = vector.shape_cast %2 : vector<1x16x16x4xf32> to vector<16x16x4xf32>
    %c0_7 = arith.constant 0 : index
    %c0_8 = arith.constant 0 : index
    %c0_9 = arith.constant 0 : index
    %c0_10 = arith.constant 0 : index
    %4 = vector.load %arg4[%c0_7, %c0_8, %c0_9, %c0_10] : memref<1x1x16x4xf32, #tpu.memory_space<vmem>>, vector<1x1x16x4xf32>
    %5 = vector.shape_cast %4 : vector<1x1x16x4xf32> to vector<1x16x4xf32>
    %6 = tpu.concatenate %1, %3, %5 in 0 : vector<1x16x4xf32>, vector<16x16x4xf32>, vector<1x16x4xf32> -> vector<18x16x4xf32>
    %7 = tpu.iota {dimensions = array<i32: 0>} : vector<18x1x1xi32>
    %c0_i32 = arith.constant 0 : i32
    %8 = vector.broadcast %c0_i32 : i32 to vector<18x1x1xi32>
    %9 = arith.cmpi sgt, %7, %8 : vector<18x1x1xi32>
    %c0_i32_11 = arith.constant 0 : i32
    %10 = arith.cmpi sgt, %arg1, %c0_i32_11 : i32
    %11 = vector.broadcast %10 : i1 to vector<18x1x1xi1>
    %12 = arith.ori %9, %11 : vector<18x1x1xi1>
    %c16_i32 = arith.constant 16 : i32
    %13 = vector.broadcast %c16_i32 : i32 to vector<18x1x1xi32>
    %14 = arith.cmpi sle, %7, %13 : vector<18x1x1xi32>
    %c0_i32_12 = arith.constant 0 : i32
    %15 = arith.cmpi slt, %arg1, %c0_i32_12 : i32
    %16 = vector.broadcast %15 : i1 to vector<18x1x1xi1>
    %17 = arith.ori %14, %16 : vector<18x1x1xi1>
    %18 = arith.andi %12, %17 : vector<18x1x1xi1>
    %cst = arith.constant 0.000000e+00 : f32
    %19 = vector.shape_cast %18 : vector<18x1x1xi1> to vector<18x1x1xi1>
    %20 = vector.broadcast %19 : vector<18x1x1xi1> to vector<18x16x4xi1>
    %21 = vector.broadcast %cst : f32 to vector<18x16x4xf32>
    %22 = arith.select %20, %6, %21 : vector<18x16x4xi1>, vector<18x16x4xf32>
    %23 = arith.truncf %22 : vector<18x16x4xf32> to vector<18x16x4xbf16>
    %cst_13 = arith.constant 0.000000e+00 : bf16
    %24 = vector.broadcast %cst_13 : bf16 to vector<18x16x12xbf16>
    %c0_14 = arith.constant 0 : index
    %c0_15 = arith.constant 0 : index
    %c0_16 = arith.constant 0 : index
    %25 = vector.load %arg8[%c0_14, %c0_15, %c0_16] : memref<18x16x12xbf16, #tpu.memory_space<vmem>>, vector<18x16x12xbf16>
    tpu.vector_store %arg8[%c0_14, %c0_15, %c0_16], %24 {strides = array<i32>} : memref<18x16x12xbf16, #tpu.memory_space<vmem>>, vector<18x16x12xbf16>,
    %26 = vector.extract_strided_slice %23 {offsets = [0, 0, 0], sizes = [18, 15, 4], strides = [1, 1, 1]} : vector<18x16x4xbf16> to vector<18x15x4xbf16>
    %c0_17 = arith.constant 0 : index
    %c1 = arith.constant 1 : index
    %c0_18 = arith.constant 0 : index
    %27 = vector.load %arg8[%c0_17, %c1, %c0_18] : memref<18x16x12xbf16, #tpu.memory_space<vmem>>, vector<18x15x4xbf16>
    tpu.vector_store %arg8[%c0_17, %c1, %c0_18], %26 {strides = array<i32>} : memref<18x16x12xbf16, #tpu.memory_space<vmem>>, vector<18x15x4xbf16>,
    %c0_19 = arith.constant 0 : index
    %c0_20 = arith.constant 0 : index
    %c4 = arith.constant 4 : index
    %28 = vector.load %arg8[%c0_19, %c0_20, %c4] : memref<18x16x12xbf16, #tpu.memory_space<vmem>>, vector<18x16x4xbf16>
    tpu.vector_store %arg8[%c0_19, %c0_20, %c4], %23 {strides = array<i32>} : memref<18x16x12xbf16, #tpu.memory_space<vmem>>, vector<18x16x4xbf16>,
    %29 = vector.extract_strided_slice %23 {offsets = [0, 1, 0], sizes = [18, 15, 4], strides = [1, 1, 1]} : vector<18x16x4xbf16> to vector<18x15x4xbf16>
    %c0_21 = arith.constant 0 : index
    %c0_22 = arith.constant 0 : index
    %c8 = arith.constant 8 : index
    %30 = vector.load %arg8[%c0_21, %c0_22, %c8] : memref<18x16x12xbf16, #tpu.memory_space<vmem>>, vector<18x15x4xbf16>
    tpu.vector_store %arg8[%c0_21, %c0_22, %c8], %29 {strides = array<i32>} : memref<18x16x12xbf16, #tpu.memory_space<vmem>>, vector<18x15x4xbf16>,
    %c0_23 = arith.constant 0 : index
    %c0_24 = arith.constant 0 : index
    %c0_25 = arith.constant 0 : index
    %31 = vector.load %arg8[%c0_23, %c0_24, %c0_25] : memref<18x16x12xbf16, #tpu.memory_space<vmem>>, vector<18x16x12xbf16>
    %32 = vector.shape_cast %31 : vector<18x16x12xbf16> to vector<288x12xbf16>
    %33 = vector.extract_strided_slice %32 {offsets = [0, 0], sizes = [256, 12], strides = [1, 1]} : vector<288x12xbf16> to vector<256x12xbf16>
    %c0_26 = arith.constant 0 : index
    %c0_27 = arith.constant 0 : index
    %c0_28 = arith.constant 0 : index
    %34 = vector.load %arg5[%c0_26, %c0_27, %c0_28] : memref<3x12x8xbf16, #tpu.memory_space<vmem>>, vector<1x12x8xbf16>
    %35 = vector.shape_cast %34 : vector<1x12x8xbf16> to vector<12x8xbf16>
    %cst_29 = arith.constant dense<0.000000e+00> : vector<256x8xf32>
    %36 = tpu.matmul %33, %35, %cst_29 {dimension_numbers = #tpu.dot_dimension_numbers<[1], [0], [0], [1], [0, 0, 1, 1], [], []>} : vector<256x12xbf16>, vector<12x8xbf16>, vector<256x8xf32> -> vector<256x8xf32>
    %37 = vector.extract_strided_slice %32 {offsets = [16, 0], sizes = [256, 12], strides = [1, 1]} : vector<288x12xbf16> to vector<256x12xbf16>
    %c1_30 = arith.constant 1 : index
    %c0_31 = arith.constant 0 : index
    %c0_32 = arith.constant 0 : index
    %38 = vector.load %arg5[%c1_30, %c0_31, %c0_32] : memref<3x12x8xbf16, #tpu.memory_space<vmem>>, vector<1x12x8xbf16>
    %39 = vector.shape_cast %38 : vector<1x12x8xbf16> to vector<12x8xbf16>
    %cst_33 = arith.constant dense<0.000000e+00> : vector<256x8xf32>
    %40 = tpu.matmul %37, %39, %cst_33 {dimension_numbers = #tpu.dot_dimension_numbers<[1], [0], [0], [1], [0, 0, 1, 1], [], []>} : vector<256x12xbf16>, vector<12x8xbf16>, vector<256x8xf32> -> vector<256x8xf32>
    %41 = arith.addf %36, %40 : vector<256x8xf32>
    %42 = vector.extract_strided_slice %32 {offsets = [32, 0], sizes = [256, 12], strides = [1, 1]} : vector<288x12xbf16> to vector<256x12xbf16>
    %c2 = arith.constant 2 : index
    %c0_34 = arith.constant 0 : index
    %c0_35 = arith.constant 0 : index
    %43 = vector.load %arg5[%c2, %c0_34, %c0_35] : memref<3x12x8xbf16, #tpu.memory_space<vmem>>, vector<1x12x8xbf16>
    %44 = vector.shape_cast %43 : vector<1x12x8xbf16> to vector<12x8xbf16>
    %cst_36 = arith.constant dense<0.000000e+00> : vector<256x8xf32>
    %45 = tpu.matmul %42, %44, %cst_36 {dimension_numbers = #tpu.dot_dimension_numbers<[1], [0], [0], [1], [0, 0, 1, 1], [], []>} : vector<256x12xbf16>, vector<12x8xbf16>, vector<256x8xf32> -> vector<256x8xf32>
    %46 = arith.addf %41, %45 : vector<256x8xf32>
    %47 = vector.shape_cast %46 : vector<256x8xf32> to vector<16x16x8xf32>
    %48 = arith.truncf %47 : vector<16x16x8xf32> to vector<16x16x8xbf16>
    %c0_37 = arith.constant 0 : index
    %c0_38 = arith.constant 0 : index
    %c0_39 = arith.constant 0 : index
    %c0_40 = arith.constant 0 : index
    %49 = vector.load %arg6[%c0_37, %c0_38, %c0_39, %c0_40] : memref<1x16x16x8xbf16, #tpu.memory_space<vmem>>, vector<1x16x16x8xbf16>
    %50 = vector.shape_cast %49 : vector<1x16x16x8xbf16> to vector<16x16x8xbf16>
    %51 = vector.shape_cast %48 : vector<16x16x8xbf16> to vector<1x16x16x8xbf16>
    tpu.vector_store %arg6[%c0_37, %c0_38, %c0_39, %c0_40], %51 {strides = array<i32>} : memref<1x16x16x8xbf16, #tpu.memory_space<vmem>>, vector<1x16x16x8xbf16>,
    %cst_41 = arith.constant dense<0.000000e+00> : vector<8xf32>
    %52 = vector.multi_reduction <add>, %46, %cst_41 [0] : vector<256x8xf32> to vector<8xf32>
    %53 = vector.shape_cast %52 : vector<8xf32> to vector<1x8xf32>
    %c0_42 = arith.constant 0 : index
    %c0_43 = arith.constant 0 : index
    %c0_44 = arith.constant 0 : index
    %c0_45 = arith.constant 0 : index
    %54 = vector.load %arg7[%c0_42, %c0_43, %c0_44, %c0_45] : memref<1x1x2x8xf32, #tpu.memory_space<vmem>>, vector<1x1x1x8xf32>
    %55 = vector.shape_cast %54 : vector<1x1x1x8xf32> to vector<1x8xf32>
    %56 = vector.shape_cast %53 : vector<1x8xf32> to vector<1x1x1x8xf32>
    tpu.vector_store %arg7[%c0_42, %c0_43, %c0_44, %c0_45], %56 {strides = array<i32>} : memref<1x1x2x8xf32, #tpu.memory_space<vmem>>, vector<1x1x1x8xf32>,
    %57 = arith.mulf %46, %46 : vector<256x8xf32>
    %cst_46 = arith.constant dense<0.000000e+00> : vector<8xf32>
    %58 = vector.multi_reduction <add>, %57, %cst_46 [0] : vector<256x8xf32> to vector<8xf32>
    %59 = vector.shape_cast %58 : vector<8xf32> to vector<1x8xf32>
    %c0_47 = arith.constant 0 : index
    %c0_48 = arith.constant 0 : index
    %c1_49 = arith.constant 1 : index
    %c0_50 = arith.constant 0 : index
    %60 = vector.load %arg7[%c0_47, %c0_48, %c1_49, %c0_50] : memref<1x1x2x8xf32, #tpu.memory_space<vmem>>, vector<1x1x1x8xf32>
    %61 = vector.shape_cast %60 : vector<1x1x1x8xf32> to vector<1x8xf32>
    %62 = vector.shape_cast %59 : vector<1x8xf32> to vector<1x1x1x8xf32>
    tpu.vector_store %arg7[%c0_47, %c0_48, %c1_49, %c0_50], %62 {strides = array<i32>} : memref<1x1x2x8xf32, #tpu.memory_space<vmem>>, vector<1x1x1x8xf32>,
    return
  }
  func.func @transform_0(%arg0: i32, %arg1: i32) -> (i32, i32, i32, i32) {
    %c16_i32 = arith.constant 16 : i32
    %0 = arith.muli %arg1, %c16_i32 : i32
    %c1_i32 = arith.constant 1 : i32
    %1 = arith.subi %0, %c1_i32 : i32
    %c0_i32 = arith.constant 0 : i32
    %2 = arith.maxsi %1, %c0_i32 : i32
    %c0_i32_0 = arith.constant 0 : i32
    %c0_i32_1 = arith.constant 0 : i32
    %c0_i32_2 = arith.constant 0 : i32
    return %arg0, %2, %c0_i32_0, %c0_i32_1 : i32, i32, i32, i32
  }
  func.func @transform_1(%arg0: i32, %arg1: i32) -> (i32, i32, i32, i32) {
    %c0_i32 = arith.constant 0 : i32
    %c0_i32_0 = arith.constant 0 : i32
    %c0_i32_1 = arith.constant 0 : i32
    return %arg0, %arg1, %c0_i32, %c0_i32_0 : i32, i32, i32, i32
  }
  func.func @transform_2(%arg0: i32, %arg1: i32) -> (i32, i32, i32, i32) {
    %c1_i32 = arith.constant 1 : i32
    %0 = arith.addi %arg1, %c1_i32 : i32
    %c16_i32 = arith.constant 16 : i32
    %1 = arith.muli %0, %c16_i32 : i32
    %c15_i32 = arith.constant 15 : i32
    %2 = arith.minsi %1, %c15_i32 : i32
    %c0_i32 = arith.constant 0 : i32
    %c0_i32_0 = arith.constant 0 : i32
    %c0_i32_1 = arith.constant 0 : i32
    return %arg0, %2, %c0_i32, %c0_i32_0 : i32, i32, i32, i32
  }
  func.func @transform_3(%arg0: i32, %arg1: i32) -> (i32, i32, i32) {
    %c0_i32 = arith.constant 0 : i32
    %c0_i32_0 = arith.constant 0 : i32
    %c0_i32_1 = arith.constant 0 : i32
    %c0_i32_2 = arith.constant 0 : i32
    return %c0_i32, %c0_i32_0, %c0_i32_1 : i32, i32, i32
  }
  func.func @transform_4(%arg0: i32, %arg1: i32) -> (i32, i32, i32, i32) {
    %c0_i32 = arith.constant 0 : i32
    %c0_i32_0 = arith.constant 0 : i32
    %c0_i32_1 = arith.constant 0 : i32
    return %arg0, %arg1, %c0_i32, %c0_i32_0 : i32, i32, i32, i32
  }
  func.func @transform_5(%arg0: i32, %arg1: i32) -> (i32, i32, i32, i32) {
    %c0_i32 = arith.constant 0 : i32
    %c0_i32_0 = arith.constant 0 : i32
    %c0_i32_1 = arith.constant 0 : i32
    return %arg0, %arg1, %c0_i32, %c0_i32_0 : i32, i32, i32, i32
  }
}

module attributes {stable_mosaic.version = 11 : i64} {
  func.func @_bn_relu_kernel(%arg0: i32, %arg1: i32, %arg2: memref<1x16x16x8xbf16, #tpu.memory_space<vmem>>, %arg3: memref<1x8xf32, #tpu.memory_space<vmem>>, %arg4: memref<1x8xf32, #tpu.memory_space<vmem>>, %arg5: memref<1x16x16x8xf32, #tpu.memory_space<vmem>>) attributes {dimension_semantics = [#tpu.dimension_semantics<parallel>, #tpu.dimension_semantics<parallel>], iteration_bounds = array<i64: 2, 1>, scalar_prefetch = 0 : i64, scratch_operands = 0 : i64, tpu.core_type = #tpu.core_type<tc>, window_params = [{transform_indices = @transform_0, window_bounds = array<i64: 1, 16, 16, 8>}, {pipeline_mode = #tpu.pipeline_mode<synchronous>, transform_indices = @transform_1, window_bounds = array<i64: 1, 8>}, {pipeline_mode = #tpu.pipeline_mode<synchronous>, transform_indices = @transform_2, window_bounds = array<i64: 1, 8>}, {transform_indices = @transform_3, window_bounds = array<i64: 1, 16, 16, 8>}]} {
    %c0 = arith.constant 0 : index
    %c0_0 = arith.constant 0 : index
    %c0_1 = arith.constant 0 : index
    %c0_2 = arith.constant 0 : index
    %0 = vector.load %arg2[%c0, %c0_0, %c0_1, %c0_2] : memref<1x16x16x8xbf16, #tpu.memory_space<vmem>>, vector<1x16x16x8xbf16>
    %1 = vector.shape_cast %0 : vector<1x16x16x8xbf16> to vector<16x16x8xbf16>
    %2 = arith.extf %1 : vector<16x16x8xbf16> to vector<16x16x8xf32>
    %c0_3 = arith.constant 0 : index
    %c0_4 = arith.constant 0 : index
    %3 = vector.load %arg3[%c0_3, %c0_4] : memref<1x8xf32, #tpu.memory_space<vmem>>, vector<1x8xf32>
    %4 = vector.shape_cast %3 : vector<1x8xf32> to vector<1x1x8xf32>
    %5 = vector.broadcast %4 : vector<1x1x8xf32> to vector<16x16x8xf32>
    %6 = arith.mulf %2, %5 : vector<16x16x8xf32>
    %c0_5 = arith.constant 0 : index
    %c0_6 = arith.constant 0 : index
    %7 = vector.load %arg4[%c0_5, %c0_6] : memref<1x8xf32, #tpu.memory_space<vmem>>, vector<1x8xf32>
    %8 = vector.shape_cast %7 : vector<1x8xf32> to vector<1x1x8xf32>
    %9 = vector.broadcast %8 : vector<1x1x8xf32> to vector<16x16x8xf32>
    %10 = arith.addf %6, %9 : vector<16x16x8xf32>
    %cst = arith.constant 0.000000e+00 : f32
    %11 = vector.broadcast %cst : f32 to vector<16x16x8xf32>
    %12 = arith.maximumf %10, %11 : vector<16x16x8xf32>
    %c0_7 = arith.constant 0 : index
    %c0_8 = arith.constant 0 : index
    %c0_9 = arith.constant 0 : index
    %c0_10 = arith.constant 0 : index
    %13 = vector.load %arg5[%c0_7, %c0_8, %c0_9, %c0_10] : memref<1x16x16x8xf32, #tpu.memory_space<vmem>>, vector<1x16x16x8xf32>
    %14 = vector.shape_cast %13 : vector<1x16x16x8xf32> to vector<16x16x8xf32>
    %15 = vector.shape_cast %12 : vector<16x16x8xf32> to vector<1x16x16x8xf32>
    tpu.vector_store %arg5[%c0_7, %c0_8, %c0_9, %c0_10], %15 {strides = array<i32>} : memref<1x16x16x8xf32, #tpu.memory_space<vmem>>, vector<1x16x16x8xf32>,
    return
  }
  func.func @transform_0(%arg0: i32, %arg1: i32) -> (i32, i32, i32, i32) {
    %c0_i32 = arith.constant 0 : i32
    %c0_i32_0 = arith.constant 0 : i32
    %c0_i32_1 = arith.constant 0 : i32
    return %arg0, %arg1, %c0_i32, %c0_i32_0 : i32, i32, i32, i32
  }
  func.func @transform_1(%arg0: i32, %arg1: i32) -> (i32, i32) {
    %c0_i32 = arith.constant 0 : i32
    %c0_i32_0 = arith.constant 0 : i32
    %c0_i32_1 = arith.constant 0 : i32
    return %c0_i32, %c0_i32_0 : i32, i32
  }
  func.func @transform_2(%arg0: i32, %arg1: i32) -> (i32, i32) {
    %c0_i32 = arith.constant 0 : i32
    %c0_i32_0 = arith.constant 0 : i32
    %c0_i32_1 = arith.constant 0 : i32
    return %c0_i32, %c0_i32_0 : i32, i32
  }
  func.func @transform_3(%arg0: i32, %arg1: i32) -> (i32, i32, i32, i32) {
    %c0_i32 = arith.constant 0 : i32
    %c0_i32_0 = arith.constant 0 : i32
    %c0_i32_1 = arith.constant 0 : i32
    return %arg0, %arg1, %c0_i32, %c0_i32_0 : i32, i32, i32, i32
  }
}

module attributes {stable_mosaic.version = 11 : i64} {
  func.func @_conv3x3_stats_kernel(%arg0: i32, %arg1: i32, %arg2: memref<1x1x16x8xbf16, #tpu.memory_space<vmem>>, %arg3: memref<1x16x16x8xbf16, #tpu.memory_space<vmem>>, %arg4: memref<1x1x16x8xbf16, #tpu.memory_space<vmem>>, %arg5: memref<1x8xf32, #tpu.memory_space<vmem>>, %arg6: memref<1x8xf32, #tpu.memory_space<vmem>>, %arg7: memref<3x24x8xbf16, #tpu.memory_space<vmem>>, %arg8: memref<1x16x16x8xbf16, #tpu.memory_space<vmem>>, %arg9: memref<1x1x2x8xf32, #tpu.memory_space<vmem>>, %arg10: memref<18x16x24xbf16, #tpu.memory_space<vmem>>) attributes {dimension_semantics = [#tpu.dimension_semantics<parallel>, #tpu.dimension_semantics<parallel>], iteration_bounds = array<i64: 2, 1>, scalar_prefetch = 0 : i64, scratch_operands = 1 : i64, tpu.core_type = #tpu.core_type<tc>, window_params = [{transform_indices = @transform_0, window_bounds = array<i64: 1, 1, 16, 8>}, {transform_indices = @transform_1, window_bounds = array<i64: 1, 16, 16, 8>}, {transform_indices = @transform_2, window_bounds = array<i64: 1, 1, 16, 8>}, {pipeline_mode = #tpu.pipeline_mode<synchronous>, transform_indices = @transform_3, window_bounds = array<i64: 1, 8>}, {pipeline_mode = #tpu.pipeline_mode<synchronous>, transform_indices = @transform_4, window_bounds = array<i64: 1, 8>}, {pipeline_mode = #tpu.pipeline_mode<synchronous>, transform_indices = @transform_5, window_bounds = array<i64: 3, 24, 8>}, {transform_indices = @transform_6, window_bounds = array<i64: 1, 16, 16, 8>}, {transform_indices = @transform_7, window_bounds = array<i64: 1, 1, 2, 8>}]} {
    %c0 = arith.constant 0 : index
    %c0_0 = arith.constant 0 : index
    %c0_1 = arith.constant 0 : index
    %c0_2 = arith.constant 0 : index
    %0 = vector.load %arg2[%c0, %c0_0, %c0_1, %c0_2] : memref<1x1x16x8xbf16, #tpu.memory_space<vmem>>, vector<1x1x16x8xbf16>
    %1 = vector.shape_cast %0 : vector<1x1x16x8xbf16> to vector<1x16x8xbf16>
    %c0_3 = arith.constant 0 : index
    %c0_4 = arith.constant 0 : index
    %c0_5 = arith.constant 0 : index
    %c0_6 = arith.constant 0 : index
    %2 = vector.load %arg3[%c0_3, %c0_4, %c0_5, %c0_6] : memref<1x16x16x8xbf16, #tpu.memory_space<vmem>>, vector<1x16x16x8xbf16>
    %3 = vector.shape_cast %2 : vector<1x16x16x8xbf16> to vector<16x16x8xbf16>
    %c0_7 = arith.constant 0 : index
    %c0_8 = arith.constant 0 : index
    %c0_9 = arith.constant 0 : index
    %c0_10 = arith.constant 0 : index
    %4 = vector.load %arg4[%c0_7, %c0_8, %c0_9, %c0_10] : memref<1x1x16x8xbf16, #tpu.memory_space<vmem>>, vector<1x1x16x8xbf16>
    %5 = vector.shape_cast %4 : vector<1x1x16x8xbf16> to vector<1x16x8xbf16>
    %6 = tpu.concatenate %1, %3, %5 in 0 : vector<1x16x8xbf16>, vector<16x16x8xbf16>, vector<1x16x8xbf16> -> vector<18x16x8xbf16>
    %7 = arith.extf %6 : vector<18x16x8xbf16> to vector<18x16x8xf32>
    %c0_11 = arith.constant 0 : index
    %c0_12 = arith.constant 0 : index
    %8 = vector.load %arg5[%c0_11, %c0_12] : memref<1x8xf32, #tpu.memory_space<vmem>>, vector<1x8xf32>
    %9 = vector.shape_cast %8 : vector<1x8xf32> to vector<1x1x8xf32>
    %10 = vector.broadcast %9 : vector<1x1x8xf32> to vector<18x16x8xf32>
    %11 = arith.mulf %7, %10 : vector<18x16x8xf32>
    %c0_13 = arith.constant 0 : index
    %c0_14 = arith.constant 0 : index
    %12 = vector.load %arg6[%c0_13, %c0_14] : memref<1x8xf32, #tpu.memory_space<vmem>>, vector<1x8xf32>
    %13 = vector.shape_cast %12 : vector<1x8xf32> to vector<1x1x8xf32>
    %14 = vector.broadcast %13 : vector<1x1x8xf32> to vector<18x16x8xf32>
    %15 = arith.addf %11, %14 : vector<18x16x8xf32>
    %cst = arith.constant 0.000000e+00 : f32
    %16 = vector.broadcast %cst : f32 to vector<18x16x8xf32>
    %17 = arith.maximumf %15, %16 : vector<18x16x8xf32>
    %18 = tpu.iota {dimensions = array<i32: 0>} : vector<18x1x1xi32>
    %c0_i32 = arith.constant 0 : i32
    %19 = vector.broadcast %c0_i32 : i32 to vector<18x1x1xi32>
    %20 = arith.cmpi sgt, %18, %19 : vector<18x1x1xi32>
    %c0_i32_15 = arith.constant 0 : i32
    %21 = arith.cmpi sgt, %arg1, %c0_i32_15 : i32
    %22 = vector.broadcast %21 : i1 to vector<18x1x1xi1>
    %23 = arith.ori %20, %22 : vector<18x1x1xi1>
    %c16_i32 = arith.constant 16 : i32
    %24 = vector.broadcast %c16_i32 : i32 to vector<18x1x1xi32>
    %25 = arith.cmpi sle, %18, %24 : vector<18x1x1xi32>
    %c0_i32_16 = arith.constant 0 : i32
    %26 = arith.cmpi slt, %arg1, %c0_i32_16 : i32
    %27 = vector.broadcast %26 : i1 to vector<18x1x1xi1>
    %28 = arith.ori %25, %27 : vector<18x1x1xi1>
    %29 = arith.andi %23, %28 : vector<18x1x1xi1>
    %cst_17 = arith.constant 0.000000e+00 : f32
    %30 = vector.shape_cast %29 : vector<18x1x1xi1> to vector<18x1x1xi1>
    %31 = vector.broadcast %30 : vector<18x1x1xi1> to vector<18x16x8xi1>
    %32 = vector.broadcast %cst_17 : f32 to vector<18x16x8xf32>
    %33 = arith.select %31, %17, %32 : vector<18x16x8xi1>, vector<18x16x8xf32>
    %34 = arith.truncf %33 : vector<18x16x8xf32> to vector<18x16x8xbf16>
    %cst_18 = arith.constant 0.000000e+00 : bf16
    %35 = vector.broadcast %cst_18 : bf16 to vector<18x16x24xbf16>
    %c0_19 = arith.constant 0 : index
    %c0_20 = arith.constant 0 : index
    %c0_21 = arith.constant 0 : index
    %36 = vector.load %arg10[%c0_19, %c0_20, %c0_21] : memref<18x16x24xbf16, #tpu.memory_space<vmem>>, vector<18x16x24xbf16>
    tpu.vector_store %arg10[%c0_19, %c0_20, %c0_21], %35 {strides = array<i32>} : memref<18x16x24xbf16, #tpu.memory_space<vmem>>, vector<18x16x24xbf16>,
    %37 = vector.extract_strided_slice %34 {offsets = [0, 0, 0], sizes = [18, 15, 8], strides = [1, 1, 1]} : vector<18x16x8xbf16> to vector<18x15x8xbf16>
    %c0_22 = arith.constant 0 : index
    %c1 = arith.constant 1 : index
    %c0_23 = arith.constant 0 : index
    %38 = vector.load %arg10[%c0_22, %c1, %c0_23] : memref<18x16x24xbf16, #tpu.memory_space<vmem>>, vector<18x15x8xbf16>
    tpu.vector_store %arg10[%c0_22, %c1, %c0_23], %37 {strides = array<i32>} : memref<18x16x24xbf16, #tpu.memory_space<vmem>>, vector<18x15x8xbf16>,
    %c0_24 = arith.constant 0 : index
    %c0_25 = arith.constant 0 : index
    %c8 = arith.constant 8 : index
    %39 = vector.load %arg10[%c0_24, %c0_25, %c8] : memref<18x16x24xbf16, #tpu.memory_space<vmem>>, vector<18x16x8xbf16>
    tpu.vector_store %arg10[%c0_24, %c0_25, %c8], %34 {strides = array<i32>} : memref<18x16x24xbf16, #tpu.memory_space<vmem>>, vector<18x16x8xbf16>,
    %40 = vector.extract_strided_slice %34 {offsets = [0, 1, 0], sizes = [18, 15, 8], strides = [1, 1, 1]} : vector<18x16x8xbf16> to vector<18x15x8xbf16>
    %c0_26 = arith.constant 0 : index
    %c0_27 = arith.constant 0 : index
    %c16 = arith.constant 16 : index
    %41 = vector.load %arg10[%c0_26, %c0_27, %c16] : memref<18x16x24xbf16, #tpu.memory_space<vmem>>, vector<18x15x8xbf16>
    tpu.vector_store %arg10[%c0_26, %c0_27, %c16], %40 {strides = array<i32>} : memref<18x16x24xbf16, #tpu.memory_space<vmem>>, vector<18x15x8xbf16>,
    %c0_28 = arith.constant 0 : index
    %c0_29 = arith.constant 0 : index
    %c0_30 = arith.constant 0 : index
    %42 = vector.load %arg10[%c0_28, %c0_29, %c0_30] : memref<18x16x24xbf16, #tpu.memory_space<vmem>>, vector<18x16x24xbf16>
    %43 = vector.shape_cast %42 : vector<18x16x24xbf16> to vector<288x24xbf16>
    %44 = vector.extract_strided_slice %43 {offsets = [0, 0], sizes = [256, 24], strides = [1, 1]} : vector<288x24xbf16> to vector<256x24xbf16>
    %c0_31 = arith.constant 0 : index
    %c0_32 = arith.constant 0 : index
    %c0_33 = arith.constant 0 : index
    %45 = vector.load %arg7[%c0_31, %c0_32, %c0_33] : memref<3x24x8xbf16, #tpu.memory_space<vmem>>, vector<1x24x8xbf16>
    %46 = vector.shape_cast %45 : vector<1x24x8xbf16> to vector<24x8xbf16>
    %cst_34 = arith.constant dense<0.000000e+00> : vector<256x8xf32>
    %47 = tpu.matmul %44, %46, %cst_34 {dimension_numbers = #tpu.dot_dimension_numbers<[1], [0], [0], [1], [0, 0, 1, 1], [], []>} : vector<256x24xbf16>, vector<24x8xbf16>, vector<256x8xf32> -> vector<256x8xf32>
    %48 = vector.extract_strided_slice %43 {offsets = [16, 0], sizes = [256, 24], strides = [1, 1]} : vector<288x24xbf16> to vector<256x24xbf16>
    %c1_35 = arith.constant 1 : index
    %c0_36 = arith.constant 0 : index
    %c0_37 = arith.constant 0 : index
    %49 = vector.load %arg7[%c1_35, %c0_36, %c0_37] : memref<3x24x8xbf16, #tpu.memory_space<vmem>>, vector<1x24x8xbf16>
    %50 = vector.shape_cast %49 : vector<1x24x8xbf16> to vector<24x8xbf16>
    %cst_38 = arith.constant dense<0.000000e+00> : vector<256x8xf32>
    %51 = tpu.matmul %48, %50, %cst_38 {dimension_numbers = #tpu.dot_dimension_numbers<[1], [0], [0], [1], [0, 0, 1, 1], [], []>} : vector<256x24xbf16>, vector<24x8xbf16>, vector<256x8xf32> -> vector<256x8xf32>
    %52 = arith.addf %47, %51 : vector<256x8xf32>
    %53 = vector.extract_strided_slice %43 {offsets = [32, 0], sizes = [256, 24], strides = [1, 1]} : vector<288x24xbf16> to vector<256x24xbf16>
    %c2 = arith.constant 2 : index
    %c0_39 = arith.constant 0 : index
    %c0_40 = arith.constant 0 : index
    %54 = vector.load %arg7[%c2, %c0_39, %c0_40] : memref<3x24x8xbf16, #tpu.memory_space<vmem>>, vector<1x24x8xbf16>
    %55 = vector.shape_cast %54 : vector<1x24x8xbf16> to vector<24x8xbf16>
    %cst_41 = arith.constant dense<0.000000e+00> : vector<256x8xf32>
    %56 = tpu.matmul %53, %55, %cst_41 {dimension_numbers = #tpu.dot_dimension_numbers<[1], [0], [0], [1], [0, 0, 1, 1], [], []>} : vector<256x24xbf16>, vector<24x8xbf16>, vector<256x8xf32> -> vector<256x8xf32>
    %57 = arith.addf %52, %56 : vector<256x8xf32>
    %58 = vector.shape_cast %57 : vector<256x8xf32> to vector<16x16x8xf32>
    %59 = arith.truncf %58 : vector<16x16x8xf32> to vector<16x16x8xbf16>
    %c0_42 = arith.constant 0 : index
    %c0_43 = arith.constant 0 : index
    %c0_44 = arith.constant 0 : index
    %c0_45 = arith.constant 0 : index
    %60 = vector.load %arg8[%c0_42, %c0_43, %c0_44, %c0_45] : memref<1x16x16x8xbf16, #tpu.memory_space<vmem>>, vector<1x16x16x8xbf16>
    %61 = vector.shape_cast %60 : vector<1x16x16x8xbf16> to vector<16x16x8xbf16>
    %62 = vector.shape_cast %59 : vector<16x16x8xbf16> to vector<1x16x16x8xbf16>
    tpu.vector_store %arg8[%c0_42, %c0_43, %c0_44, %c0_45], %62 {strides = array<i32>} : memref<1x16x16x8xbf16, #tpu.memory_space<vmem>>, vector<1x16x16x8xbf16>,
    %cst_46 = arith.constant dense<0.000000e+00> : vector<8xf32>
    %63 = vector.multi_reduction <add>, %57, %cst_46 [0] : vector<256x8xf32> to vector<8xf32>
    %64 = vector.shape_cast %63 : vector<8xf32> to vector<1x8xf32>
    %c0_47 = arith.constant 0 : index
    %c0_48 = arith.constant 0 : index
    %c0_49 = arith.constant 0 : index
    %c0_50 = arith.constant 0 : index
    %65 = vector.load %arg9[%c0_47, %c0_48, %c0_49, %c0_50] : memref<1x1x2x8xf32, #tpu.memory_space<vmem>>, vector<1x1x1x8xf32>
    %66 = vector.shape_cast %65 : vector<1x1x1x8xf32> to vector<1x8xf32>
    %67 = vector.shape_cast %64 : vector<1x8xf32> to vector<1x1x1x8xf32>
    tpu.vector_store %arg9[%c0_47, %c0_48, %c0_49, %c0_50], %67 {strides = array<i32>} : memref<1x1x2x8xf32, #tpu.memory_space<vmem>>, vector<1x1x1x8xf32>,
    %68 = arith.mulf %57, %57 : vector<256x8xf32>
    %cst_51 = arith.constant dense<0.000000e+00> : vector<8xf32>
    %69 = vector.multi_reduction <add>, %68, %cst_51 [0] : vector<256x8xf32> to vector<8xf32>
    %70 = vector.shape_cast %69 : vector<8xf32> to vector<1x8xf32>
    %c0_52 = arith.constant 0 : index
    %c0_53 = arith.constant 0 : index
    %c1_54 = arith.constant 1 : index
    %c0_55 = arith.constant 0 : index
    %71 = vector.load %arg9[%c0_52, %c0_53, %c1_54, %c0_55] : memref<1x1x2x8xf32, #tpu.memory_space<vmem>>, vector<1x1x1x8xf32>
    %72 = vector.shape_cast %71 : vector<1x1x1x8xf32> to vector<1x8xf32>
    %73 = vector.shape_cast %70 : vector<1x8xf32> to vector<1x1x1x8xf32>
    tpu.vector_store %arg9[%c0_52, %c0_53, %c1_54, %c0_55], %73 {strides = array<i32>} : memref<1x1x2x8xf32, #tpu.memory_space<vmem>>, vector<1x1x1x8xf32>,
    return
  }
  func.func @transform_0(%arg0: i32, %arg1: i32) -> (i32, i32, i32, i32) {
    %c16_i32 = arith.constant 16 : i32
    %0 = arith.muli %arg1, %c16_i32 : i32
    %c1_i32 = arith.constant 1 : i32
    %1 = arith.subi %0, %c1_i32 : i32
    %c0_i32 = arith.constant 0 : i32
    %2 = arith.maxsi %1, %c0_i32 : i32
    %c0_i32_0 = arith.constant 0 : i32
    %c0_i32_1 = arith.constant 0 : i32
    %c0_i32_2 = arith.constant 0 : i32
    return %arg0, %2, %c0_i32_0, %c0_i32_1 : i32, i32, i32, i32
  }
  func.func @transform_1(%arg0: i32, %arg1: i32) -> (i32, i32, i32, i32) {
    %c0_i32 = arith.constant 0 : i32
    %c0_i32_0 = arith.constant 0 : i32
    %c0_i32_1 = arith.constant 0 : i32
    return %arg0, %arg1, %c0_i32, %c0_i32_0 : i32, i32, i32, i32
  }
  func.func @transform_2(%arg0: i32, %arg1: i32) -> (i32, i32, i32, i32) {
    %c1_i32 = arith.constant 1 : i32
    %0 = arith.addi %arg1, %c1_i32 : i32
    %c16_i32 = arith.constant 16 : i32
    %1 = arith.muli %0, %c16_i32 : i32
    %c15_i32 = arith.constant 15 : i32
    %2 = arith.minsi %1, %c15_i32 : i32
    %c0_i32 = arith.constant 0 : i32
    %c0_i32_0 = arith.constant 0 : i32
    %c0_i32_1 = arith.constant 0 : i32
    return %arg0, %2, %c0_i32, %c0_i32_0 : i32, i32, i32, i32
  }
  func.func @transform_3(%arg0: i32, %arg1: i32) -> (i32, i32) {
    %c0_i32 = arith.constant 0 : i32
    %c0_i32_0 = arith.constant 0 : i32
    %c0_i32_1 = arith.constant 0 : i32
    return %c0_i32, %c0_i32_0 : i32, i32
  }
  func.func @transform_4(%arg0: i32, %arg1: i32) -> (i32, i32) {
    %c0_i32 = arith.constant 0 : i32
    %c0_i32_0 = arith.constant 0 : i32
    %c0_i32_1 = arith.constant 0 : i32
    return %c0_i32, %c0_i32_0 : i32, i32
  }
  func.func @transform_5(%arg0: i32, %arg1: i32) -> (i32, i32, i32) {
    %c0_i32 = arith.constant 0 : i32
    %c0_i32_0 = arith.constant 0 : i32
    %c0_i32_1 = arith.constant 0 : i32
    %c0_i32_2 = arith.constant 0 : i32
    return %c0_i32, %c0_i32_0, %c0_i32_1 : i32, i32, i32
  }
  func.func @transform_6(%arg0: i32, %arg1: i32) -> (i32, i32, i32, i32) {
    %c0_i32 = arith.constant 0 : i32
    %c0_i32_0 = arith.constant 0 : i32
    %c0_i32_1 = arith.constant 0 : i32
    return %arg0, %arg1, %c0_i32, %c0_i32_0 : i32, i32, i32, i32
  }
  func.func @transform_7(%arg0: i32, %arg1: i32) -> (i32, i32, i32, i32) {
    %c0_i32 = arith.constant 0 : i32
    %c0_i32_0 = arith.constant 0 : i32
    %c0_i32_1 = arith.constant 0 : i32
    return %arg0, %arg1, %c0_i32, %c0_i32_0 : i32, i32, i32, i32
  }
}

</mosaic_0001>

<bundles_post_ra>
// kernel: _lambda_.5
= control target key start
LH: loop header
LB: loop body
LE: loop exit
PB: predicated region body
PF: predicated region fallthrough
CT: control target
= control target key end

     0   :  { %s674_s12 = smov 0   ;;  %s676_s13 = smov 0   ;;  %s869_s0 = inlined_call_operand.vmem [shape: bf16[2,16,16,8], index: 0, kind: input, shape index: {}]   ;;  %s870_s1 = inlined_call_operand.vmem [shape: f32[1,8], index: 1, kind: input, shape index: {}]   ;;  %s871_s2 = inlined_call_operand.vmem [shape: f32[1,8], index: 2, kind: input, shape index: {}]   ;;  %s872_s3 = inlined_call_operand.vmem [shape: f32[2,16,16,8], index: 3, kind: output, shape index: {}]  }
   0x1   :  { %s678_s14 = smov 0  }
   0x2 LB: > { %s25_s15 = sadd.s32 1, %s648_s13  ;;  %p516_p0 = scmp.ge.s32.totalorder %s652_s14, 1  ;;  %s652_s14 = sphi %s678_s14, %s13_s14   ;;  %s648_s13 = sphi %s676_s13, %s874_s13   ;;  %s644_s12 = sphi %s674_s12, %s873_s12  }
   0x3   : > { %p27_p1 = scmp.ge.s32.totalorder %s25_s15, 2  ;;  %p159_p2 = scmp.lt.s32.totalorder %s652_s14, 3 }
   0x5   : > { %s876_s15 = smov (%p27_p1, %s25_s15), 0  ;;  %p160_p3 = pnand %p516_p0, %p159_p2 }
   0x6   : > { %p194_p4 = scmp.lt.s32.totalorder (!%p160_p3), %s644_s12, 1 }
   0x7   : > { %163 = sbr.rel (%p160_p3) target bundleno = 56 (0x38), region = 32 }
   0xc   : > { %s878_s12 = smov (!%p194_p4, %s644_s12), 1  ;;  %v703_v0 = vld [vmem:[%s870_s1] ss:$0 sm:$0xff]  ;;  %vm383_vm0 = vcmask 64512  }
   0xd   : > { %s523_s16 = sshll.u32 %s878_s12, 7  ;;  %v711_v5 = vld [vmem:[%s871_s2] ss:$0 sm:$0xff]  ;;  %s524_s24 = sshll.u32 %s878_s12, 8 }
   0xe   : > { %s698_s19 = scalar_lea.vmem %s869_s0, %s523_s16  ;;  %s730_s27 = scalar_lea.vmem %s872_s3, %s524_s24 }
   0xf   : > { %v526_v1 = vld [vmem:[%s698_s19] sm:$0xff]   ;;  %v589_v2 = vld [vmem:[%s698_s19 + $0x8] sm:$0xff]   ;;  %v590_v3 = vld [vmem:[%s698_s19 + $0x10] sm:$0xff]  }
  0x10   : > { %v527_v4 = vunpack.c.l.bf16 %v526_v1  ;;  %v528_v6 = vunpack.c.h.bf16 %v526_v1  ;;  %v531_v7 = vunpack.c.l.bf16 %v589_v2  ;;  %v532_v8 = vunpack.c.h.bf16 %v589_v2  ;;  %v591_v9 = vld [vmem:[%s698_s19 + $0x18] sm:$0xff]   ;;  %v592_v30 = vld [vmem:[%s698_s19 + $0x20] sm:$0xff]   ;;  %v593_v31 = vld [vmem:[%s698_s19 + $0x28] sm:$0xff]  }
  0x11   : > { %v535_v10 = vunpack.c.l.bf16 %v590_v3  ;;  %v536_v11 = vunpack.c.h.bf16 %v590_v3  ;;  %v539_v12 = vunpack.c.l.bf16 %v591_v9  ;;  %v540_v13 = vunpack.c.h.bf16 %v591_v9  ;;  %v594_v36 = vld [vmem:[%s698_s19 + $0x30] sm:$0xff]   ;;  %v595_v37 = vld [vmem:[%s698_s19 + $0x38] sm:$0xff]   ;;  %v596_v3 = vld [vmem:[%s698_s19 + $0x40] sm:$0xff]  }
  0x12   : > { %v283_v14 = vmul.f32 %v703_v0, %v527_v4  ;;  %v284_v15 = vmul.f32 %v703_v0, %v528_v6  ;;  %v285_v16 = vmul.f32 %v703_v0, %v531_v7  ;;  %v286_v17 = vmul.f32 %v703_v0, %v532_v8  ;;  %v597_v4 = vld [vmem:[%s698_s19 + $0x48] sm:$0xff]   ;;  %v598_v6 = vld [vmem:[%s698_s19 + $0x50] sm:$0xff]  }
  0x13   : > { %v287_v18 = vmul.f32 %v703_v0, %v535_v10  ;;  %v288_v19 = vmul.f32 %v703_v0, %v536_v11  ;;  %v289_v20 = vmul.f32 %v703_v0, %v539_v12  ;;  %v290_v21 = vmul.f32 %v703_v0, %v540_v13  ;;  %v599_v11 = vld [vmem:[%s698_s19 + $0x58] sm:$0xff]  }
  0x14   : > { %v319_v22 = vadd.f32 %v711_v5, %v283_v14  ;;  %v320_v23 = vadd.f32 %v711_v5, %v284_v15  ;;  %v321_v24 = vadd.f32 %v711_v5, %v285_v16  ;;  %v322_v25 = vadd.f32 %v711_v5, %v286_v17 }
  0x15   : > { %v323_v26 = vadd.f32 %v711_v5, %v287_v18  ;;  %v324_v27 = vadd.f32 %v711_v5, %v288_v19  ;;  %v325_v28 = vadd.f32 %v711_v5, %v289_v20  ;;  %v326_v29 = vadd.f32 %v711_v5, %v290_v21 }
  0x16   : > { %v351_v32 = vmax.f32 %v319_v22, 0.0  ;;  %v352_v33 = vmax.f32 %v320_v23, 0.0  ;;  %v353_v34 = vmax.f32 %v321_v24, 0.0  ;;  %v354_v35 = vmax.f32 %v322_v25, 0.0 }
  0x17   : > { %v355_v38 = vmax.f32 %v323_v26, 0.0  ;;  %v356_v39 = vmax.f32 %v324_v27, 0.0  ;;  %v357_v40 = vmax.f32 %v325_v28, 0.0  ;;  %v358_v41 = vmax.f32 %v326_v29, 0.0 }
  0x18   : > { %384 = vst.msk [vmem:[%s730_s27] sm:$0xff] %vm383_vm0, %v351_v32  ;;  %v543_v42 = vunpack.c.l.bf16 %v592_v30  ;;  %v544_v43 = vunpack.c.h.bf16 %v592_v30  ;;  %v547_v44 = vunpack.c.l.bf16 %v593_v31  ;;  %v548_v45 = vunpack.c.h.bf16 %v593_v31 }
  0x19   : > { %385 = vst.msk [vmem:[%s730_s27 + $0x8] sm:$0xff] %vm383_vm0, %v352_v33  ;;  %v551_v46 = vunpack.c.l.bf16 %v594_v36  ;;  %v552_v47 = vunpack.c.h.bf16 %v594_v36  ;;  %v555_v48 = vunpack.c.l.bf16 %v595_v37  ;;  %v556_v49 = vunpack.c.h.bf16 %v595_v37 }
  0x1a   : > { %386 = vst.msk [vmem:[%s730_s27 + $0x10] sm:$0xff] %vm383_vm0, %v353_v34  ;;  %v291_v50 = vmul.f32 %v703_v0, %v543_v42  ;;  %v292_v51 = vmul.f32 %v703_v0, %v544_v43  ;;  %v293_v52 = vmul.f32 %v703_v0, %v547_v44  ;;  %v294_v53 = vmul.f32 %v703_v0, %v548_v45  ;;  %v602_v42 = vld [vmem:[%s698_s19 + $0x70] sm:$0xff]  }
  0x1b   : > { %387 = vst.msk [vmem:[%s730_s27 + $0x18] sm:$0xff] %vm383_vm0, %v354_v35  ;;  %v295_v54 = vmul.f32 %v703_v0, %v551_v46  ;;  %v296_v55 = vmul.f32 %v703_v0, %v552_v47  ;;  %v297_v56 = vmul.f32 %v703_v0, %v555_v48  ;;  %v298_v57 = vmul.f32 %v703_v0, %v556_v49  ;;  %v603_v47 = vld [vmem:[%s698_s19 + $0x78] sm:$0xff]  }
  0x1c   : > { %388 = vst.msk [vmem:[%s730_s27 + $0x20] sm:$0xff] %vm383_vm0, %v355_v38  ;;  %v327_v58 = vadd.f32 %v711_v5, %v291_v50  ;;  %v328_v59 = vadd.f32 %v711_v5, %v292_v51  ;;  %v329_v60 = vadd.f32 %v711_v5, %v293_v52  ;;  %v330_v61 = vadd.f32 %v711_v5, %v294_v53 }
  0x1d   : > { %389 = vst.msk [vmem:[%s730_s27 + $0x28] sm:$0xff] %vm383_vm0, %v356_v39  ;;  %v331_v62 = vadd.f32 %v711_v5, %v295_v54  ;;  %v332_v63 = vadd.f32 %v711_v5, %v296_v55  ;;  %v333_v1 = vadd.f32 %v711_v5, %v297_v56  ;;  %v334_v2 = vadd.f32 %v711_v5, %v298_v57 }
  0x1e   : > { %390 = vst.msk [vmem:[%s730_s27 + $0x30] sm:$0xff] %vm383_vm0, %v357_v40  ;;  %v359_v7 = vmax.f32 %v327_v58, 0.0  ;;  %v360_v8 = vmax.f32 %v328_v59, 0.0  ;;  %v361_v9 = vmax.f32 %v329_v60, 0.0  ;;  %v362_v10 = vmax.f32 %v330_v61, 0.0  ;;  %v600_v40 = vld [vmem:[%s698_s19 + $0x60] sm:$0xff]  }
  0x1f   : > { %391 = vst.msk [vmem:[%s730_s27 + $0x38] sm:$0xff] %vm383_vm0, %v358_v41  ;;  %v363_v12 = vmax.f32 %v331_v62, 0.0  ;;  %v364_v13 = vmax.f32 %v332_v63, 0.0  ;;  %v365_v14 = vmax.f32 %v333_v1, 0.0  ;;  %v366_v15 = vmax.f32 %v334_v2, 0.0  ;;  %v601_v41 = vld [vmem:[%s698_s19 + $0x68] sm:$0xff]  }
  0x20   : > { %392 = vst.msk [vmem:[%s730_s27 + $0x40] sm:$0xff] %vm383_vm0, %v359_v7  ;;  %v559_v16 = vunpack.c.l.bf16 %v596_v3  ;;  %v560_v17 = vunpack.c.h.bf16 %v596_v3  ;;  %v563_v18 = vunpack.c.l.bf16 %v597_v4  ;;  %v564_v19 = vunpack.c.h.bf16 %v597_v4 }
  0x21   : > { %393 = vst.msk [vmem:[%s730_s27 + $0x48] sm:$0xff] %vm383_vm0, %v360_v8  ;;  %v567_v20 = vunpack.c.l.bf16 %v598_v6  ;;  %v568_v21 = vunpack.c.h.bf16 %v598_v6  ;;  %v571_v22 = vunpack.c.l.bf16 %v599_v11  ;;  %v572_v23 = vunpack.c.h.bf16 %v599_v11 }
  0x22   : > { %394 = vst.msk [vmem:[%s730_s27 + $0x50] sm:$0xff] %vm383_vm0, %v361_v9  ;;  %v299_v24 = vmul.f32 %v703_v0, %v559_v16  ;;  %v300_v25 = vmul.f32 %v703_v0, %v560_v17  ;;  %v301_v26 = vmul.f32 %v703_v0, %v563_v18  ;;  %v302_v27 = vmul.f32 %v703_v0, %v564_v19 }
  0x23   : > { %395 = vst.msk [vmem:[%s730_s27 + $0x58] sm:$0xff] %vm383_vm0, %v362_v10  ;;  %v303_v28 = vmul.f32 %v703_v0, %v567_v20  ;;  %v304_v29 = vmul.f32 %v703_v0, %v568_v21  ;;  %v305_v30 = vmul.f32 %v703_v0, %v571_v22  ;;  %v306_v31 = vmul.f32 %v703_v0, %v572_v23 }
  0x24   : > { %396 = vst.msk [vmem:[%s730_s27 + $0x60] sm:$0xff] %vm383_vm0, %v363_v12  ;;  %v335_v32 = vadd.f32 %v711_v5, %v299_v24  ;;  %v336_v33 = vadd.f32 %v711_v5, %v300_v25  ;;  %v337_v34 = vadd.f32 %v711_v5, %v301_v26  ;;  %v338_v35 = vadd.f32 %v711_v5, %v302_v27 }
  0x25   : > { %397 = vst.msk [vmem:[%s730_s27 + $0x68] sm:$0xff] %vm383_vm0, %v364_v13  ;;  %v339_v36 = vadd.f32 %v711_v5, %v303_v28  ;;  %v340_v37 = vadd.f32 %v711_v5, %v304_v29  ;;  %v341_v38 = vadd.f32 %v711_v5, %v305_v30  ;;  %v342_v39 = vadd.f32 %v711_v5, %v306_v31 }
  0x26   : > { %398 = vst.msk [vmem:[%s730_s27 + $0x70] sm:$0xff] %vm383_vm0, %v365_v14  ;;  %v367_v43 = vmax.f32 %v335_v32, 0.0  ;;  %v368_v44 = vmax.f32 %v336_v33, 0.0  ;;  %v369_v45 = vmax.f32 %v337_v34, 0.0  ;;  %v370_v46 = vmax.f32 %v338_v35, 0.0 }
  0x27   : > { %399 = vst.msk [vmem:[%s730_s27 + $0x78] sm:$0xff] %vm383_vm0, %v366_v15  ;;  %v371_v48 = vmax.f32 %v339_v36, 0.0  ;;  %v372_v49 = vmax.f32 %v340_v37, 0.0  ;;  %v373_v50 = vmax.f32 %v341_v38, 0.0  ;;  %v374_v51 = vmax.f32 %v342_v39, 0.0 }
  0x28   : > { %400 = vst.msk [vmem:[%s730_s27 + $0x80] sm:$0xff] %vm383_vm0, %v367_v43  ;;  %v575_v52 = vunpack.c.l.bf16 %v600_v40  ;;  %v576_v53 = vunpack.c.h.bf16 %v600_v40  ;;  %v579_v54 = vunpack.c.l.bf16 %v601_v41  ;;  %v580_v55 = vunpack.c.h.bf16 %v601_v41 }
  0x29   : > { %401 = vst.msk [vmem:[%s730_s27 + $0x88] sm:$0xff] %vm383_vm0, %v368_v44  ;;  %v583_v56 = vunpack.c.l.bf16 %v602_v42  ;;  %v584_v57 = vunpack.c.h.bf16 %v602_v42  ;;  %v587_v58 = vunpack.c.l.bf16 %v603_v47  ;;  %v588_v59 = vunpack.c.h.bf16 %v603_v47 }
  0x2a   : > { %402 = vst.msk [vmem:[%s730_s27 + $0x90] sm:$0xff] %vm383_vm0, %v369_v45  ;;  %v307_v60 = vmul.f32 %v703_v0, %v575_v52  ;;  %v308_v61 = vmul.f32 %v703_v0, %v576_v53  ;;  %v309_v62 = vmul.f32 %v703_v0, %v579_v54  ;;  %v310_v63 = vmul.f32 %v703_v0, %v580_v55 }
  0x2b   : > { %403 = vst.msk [vmem:[%s730_s27 + $0x98] sm:$0xff] %vm383_vm0, %v370_v46  ;;  %v311_v1 = vmul.f32 %v703_v0, %v583_v56  ;;  %v312_v2 = vmul.f32 %v703_v0, %v584_v57  ;;  %v313_v3 = vmul.f32 %v703_v0, %v587_v58  ;;  %v314_v4 = vmul.f32 %v703_v0, %v588_v59 }
  0x2c   : > { %404 = vst.msk [vmem:[%s730_s27 + $0xa0] sm:$0xff] %vm383_vm0, %v371_v48  ;;  %v343_v6 = vadd.f32 %v711_v5, %v307_v60  ;;  %v344_v7 = vadd.f32 %v711_v5, %v308_v61  ;;  %v345_v8 = vadd.f32 %v711_v5, %v309_v62  ;;  %v346_v9 = vadd.f32 %v711_v5, %v310_v63 }
  0x2d   : > { %405 = vst.msk [vmem:[%s730_s27 + $0xa8] sm:$0xff] %vm383_vm0, %v372_v49  ;;  %v347_v10 = vadd.f32 %v711_v5, %v311_v1  ;;  %v348_v0 = vadd.f32 %v711_v5, %v312_v2  ;;  %v349_v14 = vadd.f32 %v711_v5, %v313_v3  ;;  %v350_v16 = vadd.f32 %v711_v5, %v314_v4 }
  0x2e   : > { %406 = vst.msk [vmem:[%s730_s27 + $0xb0] sm:$0xff] %vm383_vm0, %v373_v50  ;;  %v375_v11 = vmax.f32 %v343_v6, 0.0  ;;  %v376_v12 = vmax.f32 %v344_v7, 0.0  ;;  %v377_v13 = vmax.f32 %v345_v8, 0.0  ;;  %v378_v15 = vmax.f32 %v346_v9, 0.0 }
  0x2f   : > { %407 = vst.msk [vmem:[%s730_s27 + $0xb8] sm:$0xff] %vm383_vm0, %v374_v51  ;;  %v379_v17 = vmax.f32 %v347_v10, 0.0  ;;  %v380_v18 = vmax.f32 %v348_v0, 0.0  ;;  %v381_v19 = vmax.f32 %v349_v14, 0.0  ;;  %v382_v20 = vmax.f32 %v350_v16, 0.0 }
  0x30   : > { %408 = vst.msk [vmem:[%s730_s27 + $0xc0] sm:$0xff] %vm383_vm0, %v375_v11 }
  0x31   : > { %409 = vst.msk [vmem:[%s730_s27 + $0xc8] sm:$0xff] %vm383_vm0, %v376_v12 }
  0x32   : > { %410 = vst.msk [vmem:[%s730_s27 + $0xd0] sm:$0xff] %vm383_vm0, %v377_v13 }
  0x33   : > { %411 = vst.msk [vmem:[%s730_s27 + $0xd8] sm:$0xff] %vm383_vm0, %v378_v15 }
  0x34   : > { %412 = vst.msk [vmem:[%s730_s27 + $0xe0] sm:$0xff] %vm383_vm0, %v379_v17 }
  0x35   : > { %413 = vst.msk [vmem:[%s730_s27 + $0xe8] sm:$0xff] %vm383_vm0, %v380_v18 }
  0x36   : > { %414 = vst.msk [vmem:[%s730_s27 + $0xf0] sm:$0xff] %vm383_vm0, %v381_v19 }
  0x37   : > { %415 = vst.msk [vmem:[%s730_s27 + $0xf8] sm:$0xff] %vm383_vm0, %v382_v20 }
  0x38 PF: > { %s13_s14 = sadd.s32 1, %s652_s14   ;;  %s873_s12 = smov %s648_s13 }
  0x39   : > { %p10_p5 = scmp.ge.s32.totalorder %s13_s14, 4   ;;  %s874_s13 = smov %s876_s15 }
  0x3b   :  { %12 = sbr.rel (!%p10_p5) target bundleno = 2 (0x2), region = 62 }

// kernel: _lambda_.4
= control target key start
LH: loop header
LB: loop body
LE: loop exit
PB: predicated region body
PF: predicated region fallthrough
CT: control target
= control target key end

     0   :  { %s3018_s23 = smov 0   ;;  %s3020_s24 = smov 0   ;;  %s4439_s0 = inlined_call_operand.vmem [shape: bf16[2,16,16,8], index: 0, kind: input, shape index: {}, may-alias: {0,1,2}]   ;;  %s4440_s1 = inlined_call_operand.vmem [shape: bf16[2,16,16,8], index: 1, kind: input, shape index: {}, may-alias: {0,1,2}]   ;;  %s4441_s2 = inlined_call_operand.vmem [shape: bf16[2,16,16,8], index: 2, kind: input, shape index: {}, may-alias: {0,1,2}]   ;;  %s4442_s3 = inlined_call_operand.vmem [shape: f32[1,8], index: 3, kind: input, shape index: {}]   ;;  %s4443_s4 = inlined_call_operand.vmem [shape: f32[1,8], index: 4, kind: input, shape index: {}]   ;;  %s4444_s5 = inlined_call_operand.vmem [shape: bf16[3,24,8], index: 5, kind: input, shape index: {}]   ;;  %s4445_s6 = inlined_call_operand.vmem [shape: bf16[2,16,16,8], index: 6, kind: output, shape index: {0}]   ;;  %s4446_s7 = inlined_call_operand.vmem [shape: f32[2,1,2,8], index: 7, kind: output, shape index: {1}]  }
   0x1   :  { %s3022_s2 = smov 0  }
   0x2 LB: > { %s30_s25 = sadd.s32 1, %s2968_s24  ;;  %p2657_p0 = scmp.ge.s32.totalorder %s2972_s2, 1  ;;  %s2972_s2 = sphi %s3022_s2, %s18_s2   ;;  %s2968_s24 = sphi %s3020_s24, %s4520_s24   ;;  %s2964_s23 = sphi %s3018_s23, %s4519_s23  }
   0x3   : > { %p32_p1 = scmp.ge.s32.totalorder %s30_s25, 2  ;;  %p328_p2 = scmp.lt.s32.totalorder %s2972_s2, 3 }
   0x5   : > { %s4522_s25 = smov (%p32_p1, %s30_s25), 0  ;;  %p329_p3 = pnand %p2657_p0, %p328_p2 }
   0x7   : > { %332 = sbr.rel (%p329_p3) target bundleno = 553 (0x229), region = 44 }
   0xc   : > { %p421_p4 = scmp.lt.s32.totalorder %s2964_s23, 1  ;;  %v4447_v0 = vmov 0.0|0.0   ;;  %s2975_s26 = smov 8   ;;  %v4467_v1 = vmov 0   ;;  %v3056_v5 = vld [vmem:[%s4442_s3] ss:$0 sm:$0xff] }
   0xd   : > { %1217 = vrot.lane.b32.xlu0 %v4447_v0, %s2975_s26  ;;  %v1363_v2 = vrot.slane %v4467_v1, 4  ;;  %v3042_v3 = vrot.slane %v4467_v1, 5  ;;  %v3066_v11 = vld [vmem:[%s4443_s4] ss:$0 sm:$0xff]  ;;  %s2977_s12 = smov 16   ;;  %vm739_vm3 = vcmask 191488  }
   0xe   : > { %s4524_s23 = smov (!%p421_p4, %s2964_s23), 1  ;;  %vm1360_vm0 = vsmask.f32 3328  ;;  %vm1361_vm1 = vsmask.f32 7440  ;;  %vm1103_vm7 = vcmask 60416  }
   0xf   : > { %s2808_s27 = sshll.u32 %s4524_s23, 7  ;;  %v1365_v4 = vor.u32 %v3042_v3, %v1363_v2  ;;  %vm3141_vm2 = vmor %vm1360_vm0, %vm1361_vm1  ;;  %vm776_vm4 = vsmask.f32 256  ;;  %vm777_vm5 = vsmask.f32 4368  ;;  %vm1323_vm8 = vcmask 126016  }
  0x10   : > { %s3051_s30 = scalar_lea.vmem %s4440_s1, %s2808_s27  ;;  %741 = vst.msk [vmem:[#allocation2 + $0x4] sm:$0xf] %vm739_vm3, %v4467_v1  ;;  %vm3350_vm6 = vmor %vm776_vm4, %vm777_vm5  ;;  %vm1104_vm9 = vsmask.f32 7938  ;;  %vm1889_vm10 = vcmask 1043456   ;;  %vm1633_vm12 = vcmask 191616   ;;  %s4125_s11 = scalar_lea.vmem %s4445_s6, %s2808_s27 }
  0x11   : > { %v2897_v6 = vld [vmem:[%s3051_s30 + $0x8] sm:$0xff]   ;;  %v2834_v7 = vld [vmem:[%s3051_s30] sm:$0xff]   ;;  %v3060_v8 = vrot.slane %v1365_v4, 4  ;;  %v2898_v9 = vld [vmem:[%s3051_s30 + $0x10] sm:$0xff]   ;;  %740 = vst.msk [vmem:[#allocation2] sm:$0xf] %vm739_vm3, %v4467_v1 }
  0x12   : > { %v2840_v10 = vunpack.c.h.bf16 %v2897_v6  ;;  %v2836_v12 = vunpack.c.h.bf16 %v2834_v7  ;;  %v2839_v13 = vunpack.c.l.bf16 %v2897_v6  ;;  %v2835_v14 = vunpack.c.l.bf16 %v2834_v7  ;;  %v3069_v15 = vld [vmem:[%s3051_s30 + $0x60] sm:$0xff]   ;;  %742 = vst.msk [vmem:[#allocation2 + $0x8] sm:$0xf] %vm739_vm3, %v4467_v1  ;;  %vm3592_vm11 = vmand %vm1103_vm7, %vm1104_vm9  ;;  %s2666_s27 = sshll.u32 %s4524_s23, 1 }
  0x13   : > { %4472 = vst [vmem:[#allocation3_spill] sm:$0xff] %v3060_v8  ;;  %1527 = vrot.lane.b32.xlu2 %v3060_v8, %s2977_s12  ;;  %v2843_v16 = vunpack.c.l.bf16 %v2898_v9  ;;  %v2844_v17 = vunpack.c.h.bf16 %v2898_v9  ;;  %v2883_v18 = vunpack.c.l.bf16 %v3069_v15  ;;  %vm3621_vm13 = vmand %vm1633_vm12, %vm1360_vm0  ;;  %vm1840_vm14 = vcmask 195584   ;;  %s465_s14 = scalar_lea.vmem %s4446_s7, %s2666_s27 }
  0x14   : > { %v548_v19 = vmul.f32 %v3056_v5, %v2840_v10  ;;  %v546_v20 = vmul.f32 %v3056_v5, %v2836_v12  ;;  %v547_v21 = vmul.f32 %v3056_v5, %v2839_v13  ;;  %v545_v22 = vmul.f32 %v3056_v5, %v2835_v14  ;;  %743 = vst.msk [vmem:[#allocation2 + $0xc] sm:$0xf] %vm739_vm3, %v4467_v1 }
  0x15   : > { %1215 = vrot.lane.b32.xlu0 %v4447_v0, %s2975_s26  ;;  %v549_v23 = vmul.f32 %v3056_v5, %v2843_v16  ;;  %v569_v24 = vmul.f32 %v3056_v5, %v2883_v18  ;;  %v550_v29 = vmul.f32 %v3056_v5, %v2844_v17  ;;  %v2884_v16 = vunpack.c.h.bf16 %v3069_v15  ;;  %744 = vst.msk [vmem:[#allocation2 + $0x10] sm:$0xf] %vm739_vm3, %v4467_v1 }
  0x16   : > { %v588_v25 = vadd.f32 %v3066_v11, %v548_v19  ;;  %v586_v26 = vadd.f32 %v3066_v11, %v546_v20  ;;  %v587_v27 = vadd.f32 %v3066_v11, %v547_v21  ;;  %v585_v28 = vadd.f32 %v3066_v11, %v545_v22  ;;  %745 = vst.msk [vmem:[#allocation2 + $0x14] sm:$0xf] %vm739_vm3, %v4467_v1 }
  0x17   : > { %v589_v30 = vadd.f32 %v3066_v11, %v549_v23  ;;  %v609_v31 = vadd.f32 %v3066_v11, %v569_v24  ;;  %v590_v42 = vadd.f32 %v3066_v11, %v550_v29  ;;  %746 = vst.msk [vmem:[#allocation2 + $0x18] sm:$0xf] %vm739_vm3, %v4467_v1  ;;  %vm2300_vm15 = vcmask 64512  }
  0x18   : > { %v624_v32 = vmax.f32 %v588_v25, 0.0  ;;  %v622_v33 = vmax.f32 %v586_v26, 0.0  ;;  %v623_v34 = vmax.f32 %v587_v27, 0.0  ;;  %v621_v35 = vmax.f32 %v585_v28, 0.0  ;;  %v2909_v25 = vld [vmem:[%s3051_s30 + $0x68] sm:$0xff]  }
  0x19   : > { %v625_v36 = vmax.f32 %v589_v30, 0.0  ;;  %v645_v37 = vmax.f32 %v609_v31, 0.0  ;;  %v626_v19 = vmax.f32 %v590_v42, 0.0  ;;  %v570_v26 = vmul.f32 %v3056_v5, %v2884_v16  ;;  %v2899_v31 = vld [vmem:[%s3051_s30 + $0x18] sm:$0xff]   ;;  %747 = vst.msk [vmem:[#allocation2 + $0x1c] sm:$0xf] %vm739_vm3, %v4467_v1 }
  0x1a   : > { %v708_v38 = vpack.c.bf16 %v624_v32, %v624_v32  ;;  %v706_v39 = vpack.c.bf16 %v622_v33, %v622_v33  ;;  %v707_v40 = vpack.c.bf16 %v623_v34, %v623_v34  ;;  %v705_v41 = vpack.c.bf16 %v621_v35, %v621_v35  ;;  %748 = vst.msk [vmem:[#allocation2 + $0x20] sm:$0xf] %vm739_vm3, %v4467_v1 }
  0x1b   : > { %v3090_v43 = vpack.c.bf16 %v645_v37, %v645_v37  ;;  %v3092_v44 = vpack.c.bf16 %v625_v36, %v625_v36  ;;  %v2887_v29 = vunpack.c.l.bf16 %v2909_v25  ;;  %v3137_v30 = vpack.c.bf16 %v626_v19, %v626_v19  ;;  %749 = vst.msk [vmem:[#allocation2 + $0x24] sm:$0xf] %vm739_vm3, %v4467_v1 }
  0x1c   : > { %1221 = vrot.lane.b32.xlu1 %v706_v39, %s2975_s26  ;;  %v812_v45 = vshrl.u32 %v707_v40, 16  ;;  %v815_v46 = vshll.u32 %v707_v40, 16  ;;  %v804_v47 = vshrl.u32 %v706_v39, 16  ;;  %v807_v48 = vshll.u32 %v706_v39, 16  ;;  %750 = vst.msk [vmem:[#allocation2 + $0x28] sm:$0xf] %vm739_vm3, %v4467_v1 }
  0x1d   : > { %1225 = vrot.lane.b32.xlu0 %v708_v38, %s2975_s26  ;;  %v796_v49 = vshrl.u32 %v705_v41, 16  ;;  %v799_v50 = vshll.u32 %v705_v41, 16  ;;  %v820_v51 = vshrl.u32 %v708_v38, 16  ;;  %v823_v52 = vshll.u32 %v708_v38, 16  ;;  %751 = vst.msk [vmem:[#allocation2 + $0x2c] sm:$0xf] %vm739_vm3, %v4467_v1 }
  0x1e   : > { %v3096_v53 = vrot.slane %v812_v45, 7  ;;  %v3098_v54 = vrot.slane %v807_v48, 5  ;;  %v1378_v55 = vrot.slane %v804_v47, 4  ;;  %v806_v56 = vrot.slane %v804_v47, 7  ;;  %752 = vst.msk [vmem:[#allocation2 + $0x30] sm:$0xf] %vm739_vm3, %v4467_v1 }
  0x1f   : > { %v3100_v57 = vrot.slane %v796_v49, 7  ;;  %v1385_v58 = vrot.slane %v823_v52, 5  ;;  %v1387_v59 = vrot.slane %v820_v51, 4  ;;  %v822_v60 = vrot.slane %v820_v51, 7  ;;  %753 = vst.msk [vmem:[#allocation2 + $0x34] sm:$0xf] %vm739_vm3, %v4467_v1 }
  0x20   : > { %v3103_v61 = vor.u32 %v815_v46, %v3096_v53  ;;  %v1379_v62 = vor.u32 %v1378_v55, %v3098_v54  ;;  %v3106_v63 = vor.u32 %v807_v48, %v806_v56  ;;  %v988_v2 = vshrl.u32 %v3090_v43, 16  ;;  %754 = vst.msk [vmem:[#allocation2 + $0x38] sm:$0xf] %vm739_vm3, %v4467_v1 }
  0x21   : > { %v3110_v4 = vor.u32 %v799_v50, %v3100_v57  ;;  %v1388_v6 = vor.u32 %v1387_v59, %v1385_v58  ;;  %v3112_v7 = vor.u32 %v823_v52, %v822_v60  ;;  %v991_v12 = vshll.u32 %v3090_v43, 16  ;;  %755 = vst.msk [vmem:[#allocation2 + $0x3c] sm:$0xf] %vm739_vm3, %v4467_v1 }
  0x22   : > { %v1380_v9 = vrot.slane %v1379_v62, 4  ;;  %v3116_v10 = vrot.slane %v988_v2, 7  ;;  %v1381_v13 = vrot.slane %v812_v45, 4  ;;  %v1382_v17 = vrot.slane %v815_v46, 5  ;;  %756 = vst.msk [vmem:[#allocation2 + $0x40] sm:$0xf] %vm739_vm3, %v4467_v1 }
  0x23   : > { %v1389_v14 = vrot.slane %v1388_v6, 4  ;;  %v828_v18 = vshrl.u32 %v3092_v44, 16  ;;  %v831_v15 = vshll.u32 %v3092_v44, 16  ;;  %v1372_v23 = vrot.slane %v796_v49, 4  ;;  %757 = vst.msk [vmem:[#allocation2 + $0x44] sm:$0xf] %vm739_vm3, %v4467_v1 }
  0x24   : > { %1223 = vrot.lane.b32.xlu1 %v707_v40, %s2975_s26  ;;  %v3126_v20 = vor.u32 %v991_v12, %v3116_v10  ;;  %v1383_v21 = vor.u32 %v1382_v17, %v1381_v13  ;;  %v1373_v24 = vrot.slane %v799_v50, 5  ;;  %v571_v33 = vmul.f32 %v3056_v5, %v2887_v29  ;;  %758 = vst.msk [vmem:[#allocation2 + $0x48] sm:$0xf] %vm739_vm3, %v4467_v1 }
  0x25   : > { %1531 = vrot.lane.b32.xlu0 %v1380_v9, %s2977_s12  ;;  %1535 = vrot.lane.b32.xlu2 %v1389_v14, %s2977_s12  ;;  %v3129_v22 = vrot.slane %v828_v18, 7  ;;  %v610_v36 = vadd.f32 %v3066_v11, %v570_v26  ;;  %v2848_v38 = vunpack.c.h.bf16 %v2899_v31  ;;  %v1390_v39 = vrot.slane %v828_v18, 4  ;;  %759 = vst.msk [vmem:[#allocation2 + $0x4c] sm:$0xf] %vm739_vm3, %v4467_v1 }
  0x26   : > { %v1384_v27 = vrot.slane %v1383_v21, 4  ;;  %v1374_v35 = vor.u32 %v1373_v24, %v1372_v23  ;;  %v611_v37 = vadd.f32 %v3066_v11, %v571_v33  ;;  %v1391_v40 = vrot.slane %v831_v15, 5  ;;  %760 = vst.msk [vmem:[#allocation2 + $0x50] sm:$0xf] %vm739_vm3, %v4467_v1 }
  0x27   : > { %v3135_v28 = vor.u32 %v831_v15, %v3129_v22  ;;  %v2847_v42 = vunpack.c.l.bf16 %v2899_v31  ;;  %v552_v46 = vmul.f32 %v3056_v5, %v2848_v38  ;;  %v646_v49 = vmax.f32 %v610_v36, 0.0  ;;  %v3212_v38 = vld [vmem:[%s3051_s30 + $0x20] sm:$0xff]   ;;  %761 = vst.msk [vmem:[#allocation2 + $0x54] sm:$0xf] %vm739_vm3, %v4467_v1 }
  0x28   : > { %v1386_v34 = vsel %vm3141_vm2, %v1384_v27, %v1385_v58  ;;  %v647_v45 = vmax.f32 %v611_v37, 0.0  ;;  %v1375_v47 = vrot.slane %v1374_v35, 4  ;;  %v1392_v51 = vor.u32 %v1391_v40, %v1390_v39  ;;  %v2910_v39 = vld [vmem:[%s3051_s30 + $0x70] sm:$0xff]   ;;  %762 = vst.msk [vmem:[#allocation2 + $0x58] sm:$0xf] %vm739_vm3, %v4467_v1 }
  0x29   : > { %v551_v48 = vmul.f32 %v3056_v5, %v2847_v42  ;;  %v592_v50 = vadd.f32 %v3066_v11, %v552_v46  ;;  %v2888_v52 = vunpack.c.h.bf16 %v2909_v25  ;;  %v3162_v55 = vsel %vm3141_vm2, %v3060_v8, %v3042_v3  ;;  %763 = vst.msk [vmem:[#allocation2 + $0x5c] sm:$0xf] %vm739_vm3, %v4467_v1 }
  0x2a   : > { %4475 = vst [vmem:[#allocation4_spill] sm:$0xff] %v3162_v55  ;;  %v3164_v58 = vpack.c.bf16 %v647_v45, %v647_v45  ;;  %v4455_v59 = vshll.u32 %v3137_v30, 16  ;;  %v4456_v60 = vshrl.u32 %v3137_v30, 16  ;;  %v1377_v62 = vsel %vm3141_vm2, %v1375_v47, %v3098_v54 }
  0x2b   : > { %v628_v56 = vmax.f32 %v592_v50, 0.0  ;;  %v3171_v9 = vpack.c.bf16 %v646_v49, %v646_v49  ;;  %v1393_v3 = vrot.slane %v1392_v51, 4  ;;  %v572_v16 = vmul.f32 %v3056_v5, %v2888_v52  ;;  %764 = vst.msk [vmem:[#allocation2 + $0x60] sm:$0xf] %vm739_vm3, %v4467_v1 }
  0x2c   : > { %1219 = vrot.lane.b32.xlu1 %v705_v41, %s2975_s26  ;;  %v591_v41 = vadd.f32 %v3066_v11, %v551_v48  ;;  %v1004_v14 = vshrl.u32 %v3164_v58, 16  ;;  %v1007_v21 = vshll.u32 %v3164_v58, 16  ;;  %v1394_v15 = vrot.slane %v4455_v59, 5  ;;  %765 = vst.msk [vmem:[#allocation2 + $0x64] sm:$0xf] %vm739_vm3, %v4467_v1 }
  0x2d   : > { %1229 = vrot.lane.b32.xlu0 %v3137_v30, %s2975_s26  ;;  %1533 = vrot.lane.b32.xlu2 %v1386_v34, %s2977_s12  ;;  %v3173_v13 = vpack.c.bf16 %v628_v56, %v628_v56  ;;  %v4454_v18 = vshrl.u32 %v3171_v9, 16  ;;  %v1396_v23 = vrot.slane %v4456_v60, 4  ;;  %v4453_v25 = vshll.u32 %v3171_v9, 16  ;;  %766 = vst.msk [vmem:[#allocation2 + $0x68] sm:$0xf] %vm739_vm3, %v4467_v1 }
  0x2e   : > { %v627_v6 = vmax.f32 %v591_v41, 0.0  ;;  %v3186_v19 = vrot.slane %v1004_v14, 7  ;;  %v612_v31 = vadd.f32 %v3066_v11, %v572_v16  ;;  %v1395_v35 = vsel %vm3141_vm2, %v1393_v3, %v1394_v15  ;;  %767 = vst.msk [vmem:[#allocation2 + $0x6c] sm:$0xf] %vm739_vm3, %v4467_v1 }
  0x2f   : > { %v852_v54 = vshrl.u32 %v3173_v13, 16  ;;  %v855_v27 = vshll.u32 %v3173_v13, 16  ;;  %v1486_v37 = vrot.slane %v4454_v18, 4  ;;  %v2851_v42 = vunpack.c.l.bf16 %v3212_v38  ;;  %768 = vst.msk [vmem:[#allocation2 + $0x70] sm:$0xf] %vm739_vm3, %v4467_v1 }
  0x30   : > { %v3181_v17 = vpack.c.bf16 %v627_v6, %v627_v6  ;;  %v3197_v29 = vor.u32 %v1007_v21, %v3186_v19  ;;  %v1397_v45 = vor.u32 %v1396_v23, %v1394_v15  ;;  %v1484_v46 = vrot.slane %v4453_v25, 5  ;;  %769 = vst.msk [vmem:[#allocation2 + $0x74] sm:$0xf] %vm739_vm3, %v4467_v1 }
  0x31   : > { %v854_v26 = vrot.slane %v852_v54, 7  ;;  %v2892_v47 = vunpack.c.h.bf16 %v2910_v39  ;;  %v648_v48 = vmax.f32 %v612_v31, 0.0  ;;  %v553_v49 = vmul.f32 %v3056_v5, %v2851_v42  ;;  %770 = vst.msk [vmem:[#allocation2 + $0x78] sm:$0xf] %vm739_vm3, %v4467_v1 }
  0x32   : > { %v844_v24 = vshrl.u32 %v3181_v17, 16  ;;  %v847_v34 = vshll.u32 %v3181_v17, 16  ;;  %v1480_v50 = vrot.slane %v988_v2, 4  ;;  %v1481_v51 = vrot.slane %v991_v12, 5 }
  0x33   : > { %v3207_v36 = vor.u32 %v855_v27, %v854_v26  ;;  %v1487_v52 = vor.u32 %v1486_v37, %v1484_v46  ;;  %v574_v41 = vmul.f32 %v3056_v5, %v2892_v47  ;;  %v593_v56 = vadd.f32 %v3066_v11, %v553_v49 }
  0x34   : > { %1525 = vrot.lane.b32.xlu1 %v3162_v55, %s2977_s12  ;;  %v3202_v33 = vrot.slane %v844_v24, 7  ;;  %v3236_v3 = vpack.c.bf16 %v648_v48, %v648_v48  ;;  %v3238_v16 = vrot.slane %v855_v27, 5  ;;  %v1405_v15 = vrot.slane %v852_v54, 4 }
  0x35   : > { %1267 = vrot.lane.b32.xlu0 %v3090_v43, %s2975_s26  ;;  %1529 = vrot.lane.b32.xlu2 %v1377_v62, %s2977_s12  ;;  %v1398_v62 = vrot.slane %v1397_v45, 4  ;;  %v614_v6 = vadd.f32 %v3066_v11, %v574_v41  ;;  %v629_v2 = vmax.f32 %v593_v56, 0.0  ;;  %v1482_v23 = vor.u32 %v1481_v51, %v1480_v50 }
  0x36   : > { %v3218_v40 = vor.u32 %v847_v34, %v3202_v33  ;;  %v1488_v43 = vrot.slane %v1487_v52, 4  ;;  %v1489_v42 = vrot.slane %v1004_v14, 4  ;;  %v1490_v45 = vrot.slane %v1007_v21, 5 }
  0x37   : > { %v650_v12 = vmax.f32 %v614_v6, 0.0  ;;  %v3240_v26 = vpack.c.bf16 %v629_v2, %v629_v2  ;;  %v1483_v37 = vrot.slane %v1482_v23, 4  ;;  %v4452_v2 = vshrl.u32 %v3236_v3, 16 }
  0x38   : > { %v1491_v56 = vor.u32 %v1490_v45, %v1489_v42  ;;  %v2852_v23 = vunpack.c.h.bf16 %v3212_v38  ;;  %v1399_v38 = vrot.slane %v844_v24, 4  ;;  %vm2370_vm0 = vcmask 57344  }
  0x39   : > { %v3242_v31 = vpack.c.bf16 %v650_v12, %v650_v12  ;;  %v860_v27 = vshrl.u32 %v3240_v26, 16  ;;  %v863_v48 = vshll.u32 %v3240_v26, 16  ;;  %v1485_v41 = vsel %vm3141_vm2, %v1483_v37, %v1484_v46  ;;  %v2901_v12 = vld [vmem:[%s3051_s30 + $0x28] sm:$0xff]  }
  0x3a   : > { %v1492_v46 = vrot.slane %v1491_v56, 4  ;;  %v1400_v37 = vrot.slane %v847_v34, 5  ;;  %v1495_v45 = vrot.slane %v4452_v2, 4 }
  0x3b   : > { %v3254_v47 = vrot.slane %v860_v27, 7  ;;  %v1031_v51 = vshll.u32 %v3242_v31, 16 }
  0x3c   : > { %1269 = vrot.lane.b32.xlu1 %v3171_v9, %s2975_s26  ;;  %v1401_v34 = vor.u32 %v1400_v37, %v1399_v38 }
  0x3d   : > { %1537 = vrot.lane.b32.xlu0 %v1395_v35, %s2977_s12  ;;  %1227 = vrot.lane.b32.xlu2 %v3092_v44, %s2975_s26  ;;  %v2891_v44 = vunpack.c.l.bf16 %v2910_v39  ;;  %v1406_v35 = vor.u32 %v1405_v15, %v3238_v16  ;;  %v1028_v39 = vshrl.u32 %v3242_v31, 16  ;;  %v3262_v14 = vor.u32 %v863_v48, %v3254_v47 }
  0x3e   : > { %v4449_v15 = vshll.u32 %v3236_v3, 16 }
  0x3f   : > { %v573_v54 = vmul.f32 %v3056_v5, %v2891_v44  ;;  %v1030_v50 = vrot.slane %v1028_v39, 7  ;;  %v1407_v52 = vrot.slane %v1406_v35, 4  ;;  %v2855_v44 = vunpack.c.l.bf16 %v2901_v12 }
  0x40   : > { %v1493_v42 = vrot.slane %v4449_v15, 5 }
  0x41   : > { %v613_v49 = vadd.f32 %v3066_v11, %v573_v54  ;;  %v555_v24 = vmul.f32 %v3056_v5, %v2855_v44  ;;  %v1402_v44 = vrot.slane %v1401_v34, 4 }
  0x43   : > { %v649_v21 = vmax.f32 %v613_v49, 0.0 }
  0x44   : > { %1539 = vrot.lane.b32.xlu1 %v1398_v62, %s2977_s12  ;;  %v3266_v62 = vor.u32 %v1031_v51, %v1030_v50  ;;  %v1494_v50 = vsel %vm3141_vm2, %v1492_v46, %v1493_v42  ;;  %v595_v46 = vadd.f32 %v3066_v11, %v555_v24 }
  0x45   : > { %1273 = vrot.lane.b32.xlu0 %v3236_v3, %s2975_s26  ;;  %1579 = vrot.lane.b32.xlu2 %v1488_v43, %s2977_s12  ;;  %v3268_v6 = vpack.c.bf16 %v649_v21, %v649_v21 }
  0x47   : > { %v1020_v43 = vshrl.u32 %v3268_v6, 16  ;;  %v1023_v54 = vshll.u32 %v3268_v6, 16 }
  0x49   : > { %v3281_v35 = vrot.slane %v1020_v43, 7  ;;  %v1499_v25 = vrot.slane %v1023_v54, 5 }
  0x4b   : > { %v3296_v49 = vor.u32 %v1023_v54, %v3281_v35 }
  0x4c   : > { %1577 = vrot.lane.b32.xlu1 %v1485_v41, %s2977_s12  ;;  %v1496_v41 = vor.u32 %v1495_v45, %v1493_v42  ;;  %v3314_v42 = vrot.slane %v1031_v51, 5  ;;  %v1504_v45 = vrot.slane %v1028_v39, 4 }
  0x4d   : > { %1543 = vrot.lane.b32.xlu0 %v1407_v52, %s2977_s12  ;;  %1233 = vrot.lane.b32.xlu2 %v3173_v13, %s2975_s26  ;;  %v554_v13 = vmul.f32 %v3056_v5, %v2852_v23  ;;  %v3302_v52 = vld [vmem:[%s3051_s30 + $0x78] sm:$0xff]  }
  0x4e   : > { %v2895_v21 = vunpack.c.l.bf16 %v3302_v52  ;;  %v1497_v37 = vrot.slane %v1496_v41, 4  ;;  %v1505_v51 = vor.u32 %v1504_v45, %v3314_v42  ;;  %v3342_v41 = vrot.slane %v4467_v1, 7 }
  0x4f   : > { %v594_v56 = vadd.f32 %v3066_v11, %v554_v13  ;;  %v2856_v13 = vunpack.c.h.bf16 %v2901_v12 }
  0x50   : > { %v575_v23 = vmul.f32 %v3056_v5, %v2895_v21  ;;  %v786_v45 = vrot.slane %v3342_v41, 4 }
  0x51   : > { %v630_v0 = vmax.f32 %v594_v56, 0.0  ;;  %v556_v39 = vmul.f32 %v3056_v5, %v2856_v13  ;;  %v1506_v56 = vrot.slane %v1505_v51, 4  ;;  %v1408_v13 = vrot.slane %v860_v27, 4  ;;  %v2907_v27 = vld [vmem:[%s3051_s30 + $0x58] sm:$0xff]  }
  0x52   : > { %v615_v38 = vadd.f32 %v3066_v11, %v575_v23  ;;  %v2879_v60 = vunpack.c.l.bf16 %v2907_v27 }
  0x53   : > { %v596_v23 = vadd.f32 %v3066_v11, %v556_v39  ;;  %v3377_v39 = vsel %vm3350_vm6, %v786_v45, %v3342_v41 }
  0x54   : > { %1231 = vrot.lane.b32.xlu1 %v3181_v17, %s2975_s26  ;;  %v651_v15 = vmax.f32 %v615_v38, 0.0  ;;  %v631_v17 = vmax.f32 %v595_v46, 0.0  ;;  %v2896_v38 = vunpack.c.h.bf16 %v3302_v52  ;;  %v1409_v52 = vrot.slane %v863_v48, 5  ;;  %1110 = vst.msk [vmem:[#allocation2 + $0x4] sm:$0xf] %vm1103_vm7, %v3377_v39 }
  0x55   : > { %1581 = vrot.lane.b32.xlu0 %v1494_v50, %s2977_s12  ;;  %1271 = vrot.lane.b32.xlu2 %v3164_v58, %s2975_s26  ;;  %v1404_v50 = vsel %vm3141_vm2, %v1402_v44, %v3238_v16  ;;  %v3321_v58 = vpack.c.bf16 %v630_v0, %v630_v0 }
  0x56   : > { %v3319_v21 = vpack.c.bf16 %v651_v15, %v651_v15  ;;  %v3332_v15 = vpack.c.bf16 %v631_v17, %v631_v17  ;;  %v576_v45 = vmul.f32 %v3056_v5, %v2896_v38  ;;  %v1410_v18 = vor.u32 %v1409_v52, %v1408_v13 }
  0x57   : > { %v4450_v16 = vshrl.u32 %v3321_v58, 16  ;;  %v4451_v34 = vshll.u32 %v3321_v58, 16 }
  0x58   : > { %v4458_v12 = vshrl.u32 %v3319_v21, 16  ;;  %v4457_v24 = vshll.u32 %v3319_v21, 16  ;;  %v876_v17 = vshrl.u32 %v3332_v15, 16 }
  0x59   : > { %v3372_v51 = vrot.slane %v4451_v34, 5  ;;  %v879_v34 = vshll.u32 %v3332_v15, 16 }
  0x5a   : > { %v3336_v0 = vrot.slane %v4458_v12, 7  ;;  %v3387_v48 = vrot.slane %v876_v17, 7 }
  0x5b   : > { %v1418_v59 = vrot.slane %v879_v34, 5 }
  0x5c   : > { %1583 = vrot.lane.b32.xlu1 %v1497_v37, %s2977_s12  ;;  %v3348_v46 = vor.u32 %v4457_v24, %v3336_v0  ;;  %v1414_v37 = vrot.slane %v4450_v16, 4  ;;  %v616_v24 = vadd.f32 %v3066_v11, %v576_v45 }
  0x5d   : > { %1235 = vrot.lane.b32.xlu0 %v3240_v26, %s2975_s26  ;;  %1541 = vrot.lane.b32.xlu2 %v1404_v50, %s2977_s12  ;;  %v2902_v50 = vld [vmem:[%s3051_s30 + $0x30] sm:$0xff]   ;;  %v632_v26 = vmax.f32 %v596_v23, 0.0  ;;  %v3401_v23 = vor.u32 %v879_v34, %v3387_v48  ;;  %v818_v34 = vrot.slane %v3096_v53, 4 }
  0x5e   : > { %4476 = vst [vmem:[#allocation5_spill] sm:$0xff] %v3348_v46  ;;  %v2860_v16 = vunpack.c.h.bf16 %v2902_v50  ;;  %v1415_v2 = vor.u32 %v1414_v37, %v3372_v51 }
  0x5f   : > { %v3408_v37 = vpack.c.bf16 %v632_v26, %v632_v26 }
  0x60   : > { %v558_v38 = vmul.f32 %v3056_v5, %v2860_v16  ;;  %v1416_v12 = vrot.slane %v1415_v2, 4  ;;  %v567_v16 = vmul.f32 %v3056_v5, %v2879_v60  ;;  %v802_v2 = vrot.slane %v3100_v57, 4 }
  0x61   : > { %v3437_v57 = vsel %vm3350_vm6, %v818_v34, %v3112_v7  ;;  %v4460_v7 = vshll.u32 %v3408_v37, 16 }
  0x62   : > { %v598_v52 = vadd.f32 %v3066_v11, %v558_v38  ;;  %v607_v53 = vadd.f32 %v3066_v11, %v567_v16  ;;  %1118 = vst.msk [vmem:[#allocation2 + $0x14] sm:$0xf] %vm1103_vm7, %v3437_v57 }
  0x63   : > { %v3473_v16 = vrot.slane %v4460_v7, 5 }
  0x64   : > { %1237 = vrot.lane.b32.xlu1 %v3321_v58, %s2975_s26 }
  0x65   : > { %1587 = vrot.lane.b32.xlu0 %v1506_v56, %s2977_s12  ;;  %1277 = vrot.lane.b32.xlu2 %v3242_v31, %s2975_s26  ;;  %v1498_v56 = vrot.slane %v1020_v43, 4  ;;  %v2880_v31 = vunpack.c.h.bf16 %v2907_v27  ;;  %v1417_v43 = vrot.slane %v876_v17, 4  ;;  %v2859_v17 = vunpack.c.l.bf16 %v2902_v50 }
  0x66   : > { %v652_v27 = vmax.f32 %v616_v24, 0.0 }
  0x67   : > { %v1500_v54 = vor.u32 %v1499_v25, %v1498_v56  ;;  %v568_v13 = vmul.f32 %v3056_v5, %v2880_v31  ;;  %v1411_v25 = vrot.slane %v1410_v18, 4  ;;  %v1419_v60 = vor.u32 %v1418_v59, %v1417_v43 }
  0x68   : > { %v3442_v18 = vsel %vm3350_vm6, %v802_v2, %v3106_v63  ;;  %v557_v24 = vmul.f32 %v3056_v5, %v2859_v17  ;;  %v3457_v26 = vpack.c.bf16 %v652_v27, %v652_v27  ;;  %v4461_v56 = vshrl.u32 %v3408_v37, 16 }
  0x69   : > { %v1501_v59 = vrot.slane %v1500_v54, 4  ;;  %v1413_v50 = vsel %vm3141_vm2, %v1411_v25, %v3372_v51  ;;  %v1420_v45 = vrot.slane %v1419_v60, 4  ;;  %v643_v31 = vmax.f32 %v607_v53, 0.0  ;;  %1114 = vst.msk [vmem:[#allocation2 + $0xc] sm:$0xf] %vm1103_vm7, %v3442_v18  ;;  %v2830_v18 = vld [vmem:[%s4444_s5] sm:$0xff] }
  0x6a   : > { %v597_v63 = vadd.f32 %v3066_v11, %v557_v24  ;;  %v4479_v2 = vshrl.u32 %v3319_v21, 16  ;;  %v4480_v27 = vshll.u32 %v3319_v21, 16  ;;  %v4463_v24 = vshll.u32 %v3457_v26, 16 }
  0x6b   : > { %v1503_v51 = vsel %vm3141_vm2, %v1501_v59, %v3314_v42  ;;  %v4459_v42 = vshrl.u32 %v3457_v26, 16  ;;  %v3497_v60 = vpack.c.bf16 %v643_v31, %v643_v31 }
  0x6c   : > { %1275 = vrot.lane.b32.xlu1 %v3268_v6, %s2975_s26  ;;  %v608_v6 = vadd.f32 %v3066_v11, %v568_v13  ;;  %v633_v54 = vmax.f32 %v597_v63, 0.0  ;;  %v1422_v13 = vsel %vm3141_vm2, %v1420_v45, %v3473_v16  ;;  %v3495_v25 = vrot.slane %v4479_v2, 4  ;;  %v2903_v2 = vld [vmem:[%s3051_s30 + $0x38] sm:$0xff]  }
  0x6d   : > { %1241 = vrot.lane.b32.xlu0 %v3408_v37, %s2975_s26  ;;  %1547 = vrot.lane.b32.xlu2 %v1416_v12, %s2977_s12  ;;  %v634_v12 = vmax.f32 %v598_v52, 0.0  ;;  %v3488_v52 = vrot.slane %v4461_v56, 4  ;;  %v3491_v34 = vpop.permute.xlu2 %1527  ;;  %v3505_v53 = vrot.slane %v4480_v27, 5  ;;  %v1513_v31 = vrot.slane %v4459_v42, 4 }
  0x6e   : > { %v644_v38 = vmax.f32 %v608_v6, 0.0  ;;  %v3508_v6 = vpack.c.bf16 %v633_v54, %v633_v54  ;;  %v972_v27 = vshrl.u32 %v3497_v60, 16  ;;  %v3544_v56 = vrot.slane %v4463_v24, 5 }
  0x6f   : > { %v3467_v43 = vpack.c.bf16 %v634_v12, %v634_v12  ;;  %v2780_v12 = vld [vmem:[%s4444_s5 + $0x20] sm:$0xf]  ;;  %v2864_v55 = vunpack.c.h.bf16 %v2903_v2 }
  0x70   : > { %v3501_v17 = vpack.c.bf16 %v644_v38, %v644_v38  ;;  %v2105_v63 = vunpack.c.l.b16 %v2780_v12  ;;  %v4462_v45 = vshrl.u32 %v3508_v6, 16  ;;  %v4466_v38 = vshll.u32 %v3508_v6, 16 }
  0x71   : > { %v900_v59 = vshrl.u32 %v3467_v43, 16  ;;  %v3565_v24 = vrot.slane %v972_v27, 7 }
  0x72   : > { %v2107_v54 = vpack.c.b16 %v2105_v63, %v2105_v63  ;;  %v3534_v42 = vrot.slane %v4462_v45, 7  ;;  %v1424_v63 = vor.u32 %v3488_v52, %v3473_v16  ;;  %v975_v45 = vshll.u32 %v3497_v60, 16 }
  0x73   : > { %v4484_v52 = vshll.u32 %v3501_v17, 16  ;;  %4486 = vst [vmem:[#allocation10_spill] sm:$0xff] %v3565_v24 }
  0x74   : > { %1545 = vrot.lane.b32.xlu1 %v1413_v50, %s2977_s12  ;;  %v903_v50 = vshll.u32 %v3467_v43, 16  ;;  %4482 = vst [vmem:[#allocation7_spill] sm:$0xff] %v3534_v42  ;;  %v3559_v16 = vor.u32 %v4466_v38, %v3534_v42  ;;  %v4491_v42 = vmov 0  }
  0x75   : > { %1279 = vrot.lane.b32.xlu0 %v3319_v21, %s2975_s26  ;;  %1585 = vrot.lane.b32.xlu2 %v1503_v51, %s2977_s12  ;;  %v902_v21 = vrot.slane %v900_v59, 7  ;;  %v4464_v51 = vshrl.u32 %v3501_v17, 16  ;;  %771 = vst.msk [vmem:[#allocation2 + $0x7c] sm:$0xf] %vm739_vm3, %v4491_v42 }
  0x76   : > { %4483 = vst [vmem:[#allocation8_spill] sm:$0xff] %v3559_v16  ;;  %v3583_v16 = vld [vmem:[%s4444_s5 + $0x18] sm:$0xff]  ;;  %v3598_v1 = vrot.slane %v903_v50, 5 }
  0x77   : > { %v3530_v12 = vor.u32 %v903_v50, %v902_v21  ;;  %v982_v7 = vrot.slane %v4464_v51, 7  ;;  %v3547_v21 = vsel %vm1889_vm10, %v2107_v54, 0  ;;  %v2863_v51 = vunpack.c.l.bf16 %v2903_v2  ;;  %772 = vst.msk [vmem:[#allocation2 + $0x80] sm:$0xf] %vm739_vm3, %v4491_v42 }
  0x78   : > { %2121 = vmatpush.bf16.msra.mxu2 %v3547_v21  ;;  %773 = vst.msk [vmem:[#allocation2 + $0x84] sm:$0xf] %vm739_vm3, %v4491_v42 }
  0x79   : > { %4481 = vst [vmem:[#allocation6_spill] sm:$0xff] %v3530_v12  ;;  %v3563_v54 = vor.u32 %v4484_v52, %v982_v7  ;;  %v1509_v7 = vor.u32 %v3505_v53, %v3495_v25  ;;  %v3578_v52 = vor.u32 %v975_v45, %v3565_v24  ;;  %v1106_v53 = vld [vmem:[#allocation2] sm:$0xf]  ;;  %v560_v12 = vmul.f32 %v3056_v5, %v2864_v55 }
  0x7a   : > { %v4490_v24 = vshrl.u32 %v3137_v30, 16  ;;  %v1107_v55 = vsel %vm3592_vm11, %v3342_v41, %v1106_v53  ;;  %774 = vst.msk [vmem:[#allocation2 + $0x88] sm:$0xf] %vm739_vm3, %v4491_v42 }
  0x7b   : > { %4485 = vst [vmem:[#allocation9_spill] sm:$0xff] %v3563_v54  ;;  %v600_v50 = vadd.f32 %v3066_v11, %v560_v12 }
  0x7c   : > { %1281 = vrot.lane.b32.xlu1 %v3457_v26, %s2975_s26  ;;  %4487 = vst [vmem:[#allocation11_spill] sm:$0xff] %v3578_v52  ;;  %v1432_v52 = vrot.slane %v900_v59, 4  ;;  %2122 = vmatpush.bf16.msra.mxu2 %v3583_v16 }
  0x7d   : > { %1549 = vrot.lane.b32.xlu0 %v1422_v13, %s2977_s12  ;;  %1239 = vrot.lane.b32.xlu2 %v3332_v15, %s2975_s26  ;;  %v1514_v13 = vor.u32 %v1513_v31, %v3544_v56  ;;  %v2669_v15 = vld [vmem:[%s4444_s5 + $0x14] sm:$0xf]  ;;  %v559_v31 = vmul.f32 %v3056_v5, %v2863_v51  ;;  %v838_v51 = vrot.slane %v4490_v24, 7  ;;  %v1510_v24 = vrot.slane %v1509_v7, 4  ;;  %775 = vst.msk [vmem:[#allocation2 + $0x8c] sm:$0xf] %vm739_vm3, %v4491_v42 }
  0x7e   : > { %v1836_v54 = vunpack.c.l.b16 %v2669_v15  ;;  %v1433_v15 = vor.u32 %v1432_v52, %v3598_v1  ;;  %v1472_v7 = vrot.slane %v975_v45, 5  ;;  %v4494_v52 = vshll.u32 %v3137_v30, 16  ;;  %1178 = vst.msk [vmem:[#allocation2 + $0x8c] sm:$0xf] %vm1103_vm7, %v3377_v39  ;;  %v1111_v42 = vld [vmem:[#allocation2 + $0x8] sm:$0xf] }
  0x7f   : > { %v1218_v38 = vpop.permute.xlu0 %1217  ;;  %v3596_v2 = vpop.permute.xlu2 %1535  ;;  %v599_v8 = vadd.f32 %v3066_v11, %v559_v31  ;;  %v1515_v46 = vrot.slane %v1514_v13, 4  ;;  %v1471_v13 = vrot.slane %v972_v27, 4  ;;  %v834_v27 = vrot.slane %v3129_v22, 4  ;;  %v1746_v45 = vld [vmem:[%s4444_s5 + $0x8] sm:$0xf] }
  0x80   : > { %1325 = vst.msk [vmem:[#allocation2 + $0x4] sm:$0xf] %vm1323_vm8, %v1218_v38  ;;  %v1425_v38 = vrot.slane %v1424_v63, 4  ;;  %v1838_v59 = vpack.c.b16 %v1836_v54, %v1836_v54  ;;  %v636_v54 = vmax.f32 %v600_v50, 0.0  ;;  %v841_v53 = vor.u32 %v4494_v52, %v838_v51 }
  0x81   : > { %v635_v63 = vmax.f32 %v599_v8, 0.0  ;;  %v1115_v8 = vld [vmem:[#allocation2 + $0x10] sm:$0xf]  ;;  %v4495_v22 = vshrl.u32 %v3171_v9, 16  ;;  %1108 = vst [vmem:[#allocation2] sm:$0xf] %v1107_v55  ;;  %v1512_v39 = vsel %vm3141_vm2, %v1510_v24, %v3544_v56 }
  0x82   : > { %v1891_v31 = vsel %vm1889_vm10, %v1838_v59, 0  ;;  %v1434_v52 = vrot.slane %v1433_v15, 4 }
  0x83   : > { %v3633_v59 = vpack.c.bf16 %v635_v63, %v635_v63  ;;  %1899 = vmatpush.bf16.msra.mxu0 %v1891_v31  ;;  %v998_v50 = vrot.slane %v4495_v22, 7  ;;  %v2831_v63 = vld [vmem:[%s4444_s5 + $0xc] sm:$0xff]  ;;  %2912 = vmatpush.bf16.msra.mxu3 %v1891_v31  ;;  %v1112_v31 = vsel %vm3592_vm11, %v3110_v4, %v1111_v42  ;;  %v994_v42 = vrot.slane %v3116_v10, 4 }
  0x84   : > { %1551 = vrot.lane.b32.xlu1 %v1425_v38, %s2977_s12  ;;  %v3638_v38 = vpack.c.bf16 %v636_v54, %v636_v54  ;;  %v1992_v54 = vunpack.c.l.b16 %v1746_v45  ;;  %v1119_v45 = vld [vmem:[#allocation2 + $0x18] sm:$0xf]  ;;  %1113 = vst [vmem:[#allocation2 + $0x8] sm:$0xf] %v1112_v31  ;;  %v4497_v31 = vshrl.u32 %v3508_v6, 16 }
  0x85   : > { %1265 = vrot.lane.b32.xlu0 %v3501_v17, %s2975_s26  ;;  %1591 = vrot.lane.b32.xlu2 %v1515_v46, %s2977_s12  ;;  %v842_v46 = vsel %vm3350_vm6, %v834_v27, %v841_v53  ;;  %v908_v24 = vshrl.u32 %v3633_v59, 16  ;;  %v1116_v27 = vsel %vm3592_vm11, %v3103_v61, %v1115_v8  ;;  %v1473_v53 = vor.u32 %v1472_v7, %v1471_v13  ;;  %v2904_v7 = vld [vmem:[%s3051_s30 + $0x40] sm:$0xff]  }
  0x86   : > { %v916_v56 = vshrl.u32 %v3638_v38, 16  ;;  %v911_v61 = vshll.u32 %v3633_v59, 16  ;;  %1117 = vst [vmem:[#allocation2 + $0x10] sm:$0xf] %v1116_v27  ;;  %v1120_v57 = vsel %vm3592_vm11, %v3135_v28, %v1119_v45  ;;  %v1159_v28 = vld [vmem:[#allocation2 + $0x68] sm:$0xf] }
  0x87   : > { %v1216_v30 = vpop.permute.xlu0 %1215  ;;  %v1637_v51 = vld [vmem:[#allocation2 + $0x4] sm:$0xf]  ;;  %v3657_v22 = vpop.permute.xlu2 %1533  ;;  %1900 = vmatpush.bf16.msra.mxu0 %v2831_v63  ;;  %2913 = vmatpush.bf16.msra.mxu3 %v2831_v63  ;;  %v2868_v63 = vunpack.c.h.bf16 %v2904_v7  ;;  %1122 = vst.msk [vmem:[#allocation2 + $0x1c] sm:$0xf] %vm1103_vm7, %v842_v46  ;;  %v1426_v45 = vrot.slane %v4497_v31, 4  ;;  %v1160_v10 = vsel %vm3592_vm11, %v3126_v20, %v1159_v28  ;;  %v4500_v46 = vshrl.u32 %v3501_v17, 16 }
  0x88   : > { %1324 = vst.msk [vmem:[#allocation2] sm:$0xf] %vm1323_vm8, %v1216_v30  ;;  %v1638_v55 = vsel %vm3621_vm13, %v3491_v34, %v1637_v51  ;;  %v1994_v34 = vpack.c.b16 %v1992_v54, %v1992_v54  ;;  %v918_v15 = vrot.slane %v916_v56, 7  ;;  %v919_v30 = vshll.u32 %v3638_v38, 16 }
  0x89   : > { %1639 = vst [vmem:[#allocation2 + $0x4] sm:$0xf] %v1638_v55  ;;  %v3672_v51 = vrot.slane %v908_v24, 7  ;;  %v1474_v54 = vrot.slane %v1473_v53, 4  ;;  %v4496_v55 = vshll.u32 %v3171_v9, 16  ;;  %v4499_v9 = vshll.u32 %v3501_v17, 16 }
  0x8a   : > { %v2000_v4 = vsel %vm1889_vm10, %v1994_v34, 0  ;;  %v3681_v13 = vor.u32 %v919_v30, %v918_v15  ;;  %1121 = vst [vmem:[#allocation2 + $0x18] sm:$0xf] %v1120_v57  ;;  %v4498_v34 = vshll.u32 %v3508_v6, 16  ;;  %v1477_v53 = vrot.slane %v4500_v46, 4 }
  0x8b   : > { %2008 = vmatpush.bf16.msra.mxu1 %v2000_v4  ;;  %v3686_v8 = vor.u32 %v911_v61, %v3672_v51  ;;  %2914 = vmatpush.bf16.msrb.mxu3 %v2000_v4  ;;  %v3718_v20 = vrot.slane %v919_v30, 5  ;;  %1161 = vst [vmem:[#allocation2 + $0x68] sm:$0xf] %v1160_v10 }
  0x8c   : > { %1589 = vrot.lane.b32.xlu1 %v1512_v39, %s2977_s12  ;;  %v1001_v39 = vor.u32 %v4496_v55, %v998_v50  ;;  %v1427_v15 = vrot.slane %v4498_v34, 5  ;;  %v1475_v50 = vrot.slane %v4499_v9, 5 }
  0x8d   : > { %1555 = vrot.lane.b32.xlu0 %v1434_v52, %s2977_s12  ;;  %1245 = vrot.lane.b32.xlu2 %v3467_v43, %s2975_s26  ;;  %v562_v43 = vmul.f32 %v3056_v5, %v2868_v63  ;;  %v1441_v5 = vrot.slane %v916_v56, 4 }
  0x8e   : > { %v1222_v52 = vpop.permute.xlu1 %1221  ;;  %v1002_v57 = vsel %vm3350_vm6, %v994_v42, %v1001_v39  ;;  %v1476_v63 = vsel %vm3141_vm2, %v1474_v54, %v1475_v50  ;;  %v1428_v17 = vor.u32 %v1427_v15, %v1426_v45 }
  0x8f   : > { %v1226_v27 = vpop.permute.xlu0 %1225  ;;  %v3713_v4 = vpop.permute.xlu2 %1529  ;;  %2009 = vmatpush.bf16.msra.mxu1 %v2830_v18  ;;  %2915 = vmatpush.bf16.msrb.mxu3 %v2830_v18  ;;  %1327 = vst.msk [vmem:[#allocation2 + $0xc] sm:$0xf] %vm1323_vm8, %v1222_v52  ;;  %v602_v28 = vadd.f32 %v3066_v11, %v562_v43  ;;  %v1442_v30 = vor.u32 %v1441_v5, %v3718_v20  ;;  %v2867_v18 = vunpack.c.l.bf16 %v2904_v7  ;;  %v4501_v11 = vshrl.u32 %v3236_v3, 16 }
  0x90   : > { %1329 = vst.msk [vmem:[#allocation2 + $0x14] sm:$0xf] %vm1323_vm8, %v1226_v27  ;;  %v1478_v27 = vor.u32 %v1477_v53, %v1475_v50  ;;  %v1429_v31 = vrot.slane %v1428_v17, 4  ;;  %v3750_v50 = vld [vmem:[%s4443_s4] ss:$0 sm:$0xff]  ;;  %v850_v53 = vrot.slane %v3202_v33, 4 }
  0x91   : > { %1162 = vst.msk [vmem:[#allocation2 + $0x6c] sm:$0xf] %vm1103_vm7, %v1002_v57  ;;  %v638_v55 = vmax.f32 %v602_v28, 0.0  ;;  %v1014_v42 = vrot.slane %v4501_v11, 7  ;;  %v1443_v9 = vrot.slane %v1442_v30, 4  ;;  %v1010_v5 = vrot.slane %v3186_v19, 4 }
  0x92   : > { %v1479_v15 = vrot.slane %v1478_v27, 4  ;;  %v4502_v28 = vshll.u32 %v3236_v3, 16  ;;  %v1431_v17 = vsel %vm3141_vm2, %v1429_v31, %v3598_v1  ;;  %v858_v33 = vsel %vm3350_vm6, %v850_v53, %v3207_v36  ;;  %v2905_v3 = vld [vmem:[%s3051_s30 + $0x48] sm:$0xff]  }
  0x93   : > { %v3728_v56 = vpack.c.bf16 %v638_v55, %v638_v55  ;;  %1126 = vst.msk [vmem:[#allocation2 + $0x24] sm:$0xf] %vm1103_vm7, %v858_v33  ;;  %v2871_v30 = vunpack.c.l.bf16 %v2905_v3  ;;  %v1436_v36 = vrot.slane %v911_v61, 5  ;;  %v1163_v61 = vld [vmem:[#allocation2 + $0x70] sm:$0xf] }
  0x94   : > { %1243 = vrot.lane.b32.xlu1 %v3508_v6, %s2975_s26  ;;  %v3737_v6 = vld [vmem:[%s4442_s3] ss:$0 sm:$0xff] }
  0x95   : > { %1573 = vrot.lane.b32.xlu0 %v1476_v63, %s2977_s12  ;;  %1263 = vrot.lane.b32.xlu2 %v3497_v60, %s2975_s26  ;;  %v561_v45 = vmul.f32 %v3737_v6, %v2867_v18  ;;  %v932_v10 = vshrl.u32 %v3728_v56, 16  ;;  %v935_v46 = vshll.u32 %v3728_v56, 16  ;;  %v1017_v63 = vor.u32 %v4502_v28, %v1014_v42 }
  0x96   : > { %v1224_v39 = vpop.permute.xlu1 %1223  ;;  %v1641_v34 = vld [vmem:[#allocation2 + $0xc] sm:$0xf]  ;;  %v1435_v18 = vrot.slane %v908_v24, 4 }
  0x97   : > { %v1645_v54 = vld [vmem:[#allocation2 + $0x14] sm:$0xf]  ;;  %v1532_v52 = vpop.permute.xlu0 %1531  ;;  %1328 = vst.msk [vmem:[#allocation2 + $0x10] sm:$0xf] %vm1323_vm8, %v1224_v39  ;;  %v1228_v60 = vpop.permute.xlu2 %1227  ;;  %v934_v57 = vrot.slane %v932_v10, 7  ;;  %v1018_v19 = vsel %vm3350_vm6, %v1010_v5, %v1017_v63  ;;  %v3829_v33 = vrot.slane %v935_v46, 5 }
  0x98   : > { %v1646_v7 = vsel %vm3621_vm13, %v3596_v2, %v1645_v54  ;;  %v1642_v43 = vsel %vm3621_vm13, %v1532_v52, %v1641_v34  ;;  %v601_v2 = vadd.f32 %v3750_v50, %v561_v45  ;;  %1644 = vst.msk [vmem:[#allocation2 + $0x10] sm:$0xf] %vm1633_vm12, %v3657_v22  ;;  %v2872_v22 = vunpack.c.h.bf16 %v2905_v3 }
  0x99   : > { %1647 = vst [vmem:[#allocation2 + $0x14] sm:$0xf] %v1646_v7  ;;  %v3769_v27 = vor.u32 %v935_v46, %v934_v57  ;;  %v563_v52 = vmul.f32 %v3737_v6, %v2871_v30  ;;  %v1164_v7 = vsel %vm3592_vm11, %v3197_v29, %v1163_v61 }
  0x9a   : > { %1643 = vst [vmem:[#allocation2 + $0xc] sm:$0xf] %v1642_v43  ;;  %v637_v55 = vmax.f32 %v601_v2, 0.0  ;;  %v564_v39 = vmul.f32 %v3737_v6, %v2872_v22  ;;  %v1437_v43 = vor.u32 %v1436_v36, %v1435_v18 }
  0x9b   : > { %1330 = vst.msk [vmem:[#allocation2 + $0x18] sm:$0xf] %vm1323_vm8, %v1228_v60 }
  0x9c   : > { %1575 = vrot.lane.b32.xlu1 %v1479_v15, %s2977_s12  ;;  %v3777_v1 = vpack.c.bf16 %v637_v55, %v637_v55  ;;  %1166 = vst.msk [vmem:[#allocation2 + $0x74] sm:$0xf] %vm1103_vm7, %v1018_v19  ;;  %v604_v34 = vadd.f32 %v3750_v50, %v564_v39  ;;  %v603_v15 = vadd.f32 %v3750_v50, %v563_v52  ;;  %v1438_v5 = vrot.slane %v1437_v43, 4 }
  0x9d   : > { %1559 = vrot.lane.b32.xlu0 %v1443_v9, %s2977_s12  ;;  %1553 = vrot.lane.b32.xlu2 %v1431_v17, %s2977_s12  ;;  %1165 = vst [vmem:[#allocation2 + $0x70] sm:$0xf] %v1164_v7  ;;  %v1123_v9 = vld [vmem:[#allocation2 + $0x20] sm:$0xf]  ;;  %v1450_v19 = vrot.slane %v932_v10, 4 }
  0x9e   : > { %v1220_v11 = vpop.permute.xlu1 %1219  ;;  %v924_v54 = vshrl.u32 %v3777_v1, 16  ;;  %v927_v24 = vshll.u32 %v3777_v1, 16  ;;  %v639_v2 = vmax.f32 %v603_v15, 0.0  ;;  %v640_v29 = vmax.f32 %v604_v34, 0.0 }
  0x9f   : > { %v1230_v42 = vpop.permute.xlu0 %1229  ;;  %1326 = vst.msk [vmem:[#allocation2 + $0x8] sm:$0xf] %vm1323_vm8, %v1220_v11  ;;  %v3789_v31 = vpop.permute.xlu2 %1579  ;;  %v1124_v53 = vsel %vm3592_vm11, %v3218_v40, %v1123_v9  ;;  %v1440_v30 = vsel %vm3141_vm2, %v1438_v5, %v3718_v20  ;;  %v1451_v36 = vor.u32 %v1450_v19, %v3829_v33 }
  0xa0   : > { %1640 = vst.msk [vmem:[#allocation2 + $0x8] sm:$0xf] %vm1633_vm12, %v3713_v4  ;;  %v3796_v45 = vrot.slane %v924_v54, 7  ;;  %v3803_v60 = vld [vmem:[#allocation2 + $0x10] sm:$0xff]  ;;  %v3820_v57 = vpack.c.bf16 %v639_v2, %v639_v2  ;;  %v3833_v3 = vpack.c.bf16 %v640_v29, %v640_v29  ;;  %v4503_v2 = vshrl.u32 %v3321_v58, 16 }
  0xa1   : > { %1331 = vst.msk [vmem:[#allocation2 + $0x1c] sm:$0xf] %vm1323_vm8, %v1230_v42  ;;  %2789 = vmatmul.msk.bf16.vlgmr.msra.gmra.mxu2 %vm1840_vm14, %v3803_v60  ;;  %v2906_v42 = vld [vmem:[%s3051_s30 + $0x50] sm:$0xff]  }
  0xa2   : > { %v3809_v4 = vor.u32 %v927_v24, %v3796_v45  ;;  %1125 = vst [vmem:[#allocation2 + $0x20] sm:$0xf] %v1124_v53  ;;  %v940_v17 = vshrl.u32 %v3820_v57, 16  ;;  %v943_v55 = vshll.u32 %v3820_v57, 16  ;;  %v951_v18 = vshll.u32 %v3833_v3, 16 }
  0xa3   : > { %v2875_v39 = vunpack.c.l.bf16 %v2906_v42  ;;  %v2876_v20 = vunpack.c.h.bf16 %v2906_v42  ;;  %v870_v29 = vrot.slane %v4503_v2, 7  ;;  %v1452_v53 = vrot.slane %v1451_v36, 4 }
  0xa4   : > { %1249 = vrot.lane.b32.xlu1 %v3638_v38, %s2975_s26  ;;  %v1454_v22 = vrot.slane %v943_v55, 5  ;;  %v3842_v46 = vrot.slane %v940_v17, 7  ;;  %v3857_v61 = vrot.slane %v951_v18, 5 }
  0xa5   : > { %1251 = vrot.lane.b32.xlu0 %v3777_v1, %s2975_s26  ;;  %1247 = vrot.lane.b32.xlu2 %v3633_v59, %s2975_s26  ;;  %v1453_v59 = vrot.slane %v940_v17, 4  ;;  %v565_v43 = vmul.f32 %v3737_v6, %v2875_v39  ;;  %v566_v9 = vmul.f32 %v3737_v6, %v2876_v20  ;;  %v1444_v6 = vrot.slane %v924_v54, 4 }
  0xa6   : > { %v1526_v28 = vpop.permute.xlu1 %1525  ;;  %v3847_v11 = vor.u32 %v943_v55, %v3842_v46  ;;  %v1445_v55 = vrot.slane %v927_v24, 5 }
  0xa7   : > { %v1268_v63 = vpop.permute.xlu0 %1267  ;;  %1634 = vst.msk [vmem:[#allocation2] sm:$0xf] %vm1633_vm12, %v1526_v28  ;;  %v3827_v40 = vld [vmem:[#allocation2 + $0x8] sm:$0xff]  ;;  %v1234_v38 = vpop.permute.xlu2 %1233  ;;  %v1455_v10 = vor.u32 %v1454_v22, %v1453_v59  ;;  %v605_v28 = vadd.f32 %v3750_v50, %v565_v43 }
  0xa8   : > { %1350 = vst.msk [vmem:[#allocation2 + $0x68] sm:$0xf] %vm1323_vm8, %v1268_v63  ;;  %2738 = vmatmul.msk.bf16.vlgmr.msra.gmra.mxu0 %vm1840_vm14, %v3827_v40  ;;  %v606_v63 = vadd.f32 %v3750_v50, %v566_v9  ;;  %v1127_v59 = vld [vmem:[#allocation2 + $0x28] sm:$0xf]  ;;  %v866_v50 = vrot.slane %v3254_v47, 4  ;;  %v1446_v54 = vor.u32 %v1445_v55, %v1444_v6 }
  0xa9   : > { %1333 = vst.msk [vmem:[#allocation2 + $0x24] sm:$0xf] %vm1323_vm8, %v1234_v38  ;;  %v1456_v52 = vrot.slane %v1455_v10, 4  ;;  %v641_v38 = vmax.f32 %v605_v28, 0.0  ;;  %v1128_v22 = vsel %vm3592_vm11, %v3262_v14, %v1127_v59  ;;  %v1649_v24 = vld [vmem:[#allocation2 + $0x1c] sm:$0xf] }
  0xaa   : > { %v642_v19 = vmax.f32 %v606_v63, 0.0  ;;  %1129 = vst [vmem:[#allocation2 + $0x28] sm:$0xf] %v1128_v22  ;;  %v1447_v10 = vrot.slane %v1446_v54, 4  ;;  %v1167_v55 = vld [vmem:[#allocation2 + $0x78] sm:$0xf] }
  0xab   : > { %v1458_v17 = vsel %vm3141_vm2, %v1456_v52, %v3857_v61  ;;  %v3891_v36 = vpack.c.bf16 %v641_v38, %v641_v38 }
  0xac   : > { %1557 = vrot.lane.b32.xlu1 %v1440_v30, %s2977_s12  ;;  %v4504_v30 = vshll.u32 %v3321_v58, 16 }
  0xad   : > { %1257 = vrot.lane.b32.xlu0 %v3833_v3, %s2975_s26  ;;  %1253 = vrot.lane.b32.xlu2 %v3728_v56, %s2975_s26  ;;  %v1026_v56 = vrot.slane %v3281_v35, 4  ;;  %v959_v2 = vshll.u32 %v3891_v36, 16 }
  0xae   : > { %v1270_v7 = vpop.permute.xlu1 %1269  ;;  %v2812_v34 = vld [vmem:[#allocation2] sm:$0xff]  ;;  %v873_v1 = vor.u32 %v4504_v30, %v870_v29 }
  0xaf   : > { %v1538_v15 = vpop.permute.xlu0 %1537  ;;  %1351 = vst.msk [vmem:[#allocation2 + $0x6c] sm:$0xf] %vm1323_vm8, %v1270_v7  ;;  %v1272_v5 = vpop.permute.xlu2 %1271  ;;  %2762 = vmatmul.msk.bf16.vlgmr.msra.gmra.mxu1 %vm1840_vm14, %v2812_v34  ;;  %v1034_v35 = vsel %vm3350_vm6, %v1026_v56, %v3266_v62  ;;  %v726_v62 = vpack.c.bf16 %v642_v19, %v642_v19  ;;  %v1463_v63 = vrot.slane %v959_v2, 5 }
  0xb0   : > { %1648 = vst.msk [vmem:[#allocation2 + $0x18] sm:$0xf] %vm1633_vm12, %v1538_v15  ;;  %v874_v47 = vsel %vm3350_vm6, %v866_v50, %v873_v1  ;;  %v1449_v15 = vsel %vm3141_vm2, %v1447_v10, %v3829_v33  ;;  %v882_v1 = vrot.slane %v3387_v48, 4 }
  0xb1   : > { %1352 = vst.msk [vmem:[#allocation2 + $0x70] sm:$0xf] %vm1323_vm8, %v1272_v5  ;;  %v964_v14 = vshrl.u32 %v726_v62, 16  ;;  %v967_v58 = vshll.u32 %v726_v62, 16  ;;  %v4505_v5 = vshrl.u32 %v3408_v37, 16 }
  0xb2   : > { %1170 = vst.msk [vmem:[#allocation2 + $0x7c] sm:$0xf] %vm1103_vm7, %v1034_v35  ;;  %v948_v35 = vshrl.u32 %v3833_v3, 16  ;;  %v1147_v3 = vld [vmem:[#allocation2 + $0x50] sm:$0xf] }
  0xb3   : > { %1130 = vst.msk [vmem:[#allocation2 + $0x2c] sm:$0xf] %vm1103_vm7, %v874_v47  ;;  %v3904_v43 = vrot.slane %v967_v58, 5  ;;  %v1468_v9 = vrot.slane %v964_v14, 4  ;;  %v886_v56 = vrot.slane %v4505_v5, 7  ;;  %v966_v50 = vrot.slane %v964_v14, 7 }
  0xb4   : > { %1563 = vrot.lane.b32.xlu1 %v1452_v53, %s2977_s12  ;;  %v1653_v53 = vld [vmem:[#allocation2 + $0x24] sm:$0xf]  ;;  %v1459_v22 = vrot.slane %v948_v35, 4 }
  0xb5   : > { %1565 = vrot.lane.b32.xlu0 %v1458_v17, %s2977_s12  ;;  %1561 = vrot.lane.b32.xlu2 %v1449_v15, %s2977_s12  ;;  %v1469_v29 = vor.u32 %v1468_v9, %v3904_v43 }
  0xb6   : > { %v1689_v42 = vld [vmem:[#allocation2 + $0x6c] sm:$0xf]  ;;  %v1540_v39 = vpop.permute.xlu1 %1539  ;;  %v1460_v47 = vor.u32 %v1459_v22, %v3857_v61  ;;  %v4508_v61 = vmov 0.0|0.0   ;;  %v4515_v22 = vld [vmem:[#allocation9_spill] sm:$0xff] }
  0xb7   : > { %v1274_v20 = vpop.permute.xlu0 %1273  ;;  %v1690_v52 = vsel %vm3621_vm13, %v3789_v31, %v1689_v42  ;;  %v1650_v7 = vsel %vm3621_vm13, %v1540_v39, %v1649_v24  ;;  %v1542_v34 = vpop.permute.xlu2 %1541  ;;  %v956_v31 = vshrl.u32 %v3891_v36, 16  ;;  %v1470_v33 = vrot.slane %v1469_v29, 4 }
  0xb8   : > { %1353 = vst.msk [vmem:[#allocation2 + $0x74] sm:$0xf] %vm1323_vm8, %v1274_v20  ;;  %2739 = vmatmul.msk.bf16.gmra.mxu0 %vm1840_vm14, %v3803_v60  ;;  %v4506_v24 = vshll.u32 %v3408_v37, 16  ;;  %v1461_v48 = vrot.slane %v1460_v47, 4  ;;  %v4507_v39 = vshrl.u32 %v3457_v26, 16  ;;  %v4516_v47 = vld [vmem:[#allocation4_spill] sm:$0xff] }
  0xb9   : > { %1691 = vst [vmem:[#allocation2 + $0x6c] sm:$0xf] %v1690_v52  ;;  %v1462_v28 = vrot.slane %v956_v31, 4  ;;  %v3927_v54 = vrot.slane %v956_v31, 7  ;;  %v1042_v31 = vrot.slane %v3336_v0, 4 }
  0xba   : > { %1651 = vst [vmem:[#allocation2 + $0x1c] sm:$0xf] %v1650_v7  ;;  %v1046_v20 = vrot.slane %v4507_v39, 7  ;;  %v4517_v39 = vld [vmem:[#allocation11_spill] sm:$0xff] }
  0xbb   : > { %v1464_v30 = vor.u32 %v1463_v63, %v1462_v28  ;;  %v3940_v10 = vor.u32 %v959_v2, %v3927_v54  ;;  %v4509_v2 = vshll.u32 %v3457_v26, 16 }
  0xbc   : > { %1255 = vrot.lane.b32.xlu1 %v3820_v57, %s2975_s26  ;;  %v1168_v57 = vsel %vm3592_vm11, %v3296_v49, %v1167_v55  ;;  %v889_v49 = vor.u32 %v4506_v24, %v886_v56  ;;  %v4511_v56 = vld [vmem:[#allocation3_spill] sm:$0xff] }
  0xbd   : > { %1571 = vrot.lane.b32.xlu0 %v1470_v33, %s2977_s12  ;;  %1169 = vst [vmem:[#allocation2 + $0x78] sm:$0xf] %v1168_v57  ;;  %v1465_v37 = vrot.slane %v1464_v30, 4  ;;  %1567 = vrot.lane.b32.xlu2 %v1461_v48, %s2977_s12  ;;  %v1049_v29 = vor.u32 %v4509_v2, %v1046_v20  ;;  %v4514_v57 = vld [vmem:[#allocation6_spill] sm:$0xff] }
  0xbe   : > { %v1578_v6 = vpop.permute.xlu1 %1577  ;;  %v890_v42 = vsel %vm3350_vm6, %v882_v1, %v889_v49 }
  0xbf   : > { %v1544_v17 = vpop.permute.xlu0 %1543  ;;  %1688 = vst.msk [vmem:[#allocation2 + $0x68] sm:$0xf] %vm1633_vm12, %v1578_v6  ;;  %v1278_v19 = vpop.permute.xlu2 %1277  ;;  %2763 = vmatmul.msk.bf16.gmra.mxu1 %vm1840_vm14, %v3827_v40  ;;  %v3937_v40 = vor.u32 %v967_v58, %v966_v50  ;;  %v1467_v9 = vsel %vm3141_vm2, %v1465_v37, %v3904_v43  ;;  %v1050_v32 = vsel %vm3350_vm6, %v1042_v31, %v1049_v29  ;;  %v1155_v37 = vld [vmem:[#allocation2 + $0x60] sm:$0xf]  ;;  %v914_v29 = vrot.slane %v3672_v51, 4 }
  0xc0   : > { %v1654_v38 = vsel %vm3621_vm13, %v1544_v17, %v1653_v53  ;;  %1355 = vst.msk [vmem:[#allocation2 + $0x7c] sm:$0xf] %vm1323_vm8, %v1278_v19  ;;  %v4510_v53 = vld [vmem:[#allocation5_spill] sm:$0xff]  ;;  %v1156_v20 = vsel %vm3592_vm11, %v4517_v39, %v1155_v37 }
  0xc1   : > { %v3925_v59 = vld [vmem:[#allocation2 + $0x18] sm:$0xff]  ;;  %1655 = vst [vmem:[#allocation2 + $0x24] sm:$0xf] %v1654_v38  ;;  %v4513_v38 = vld [vmem:[#allocation10_spill] sm:$0xff] }
  0xc2   : > { %2790 = vmatmul.msk.bf16.gmra.mxu2 %vm1840_vm14, %v3925_v59  ;;  %1134 = vst.msk [vmem:[#allocation2 + $0x34] sm:$0xf] %vm1103_vm7, %v890_v42  ;;  %v978_v19 = vrot.slane %v4513_v38, 4 }
  0xc3   : > { %1174 = vst.msk [vmem:[#allocation2 + $0x84] sm:$0xf] %vm1103_vm7, %v1050_v32 }
  0xc4   : > { %1261 = vrot.lane.b32.xlu1 %v726_v62, %s2975_s26  ;;  %v1131_v62 = vld [vmem:[#allocation2 + $0x30] sm:$0xf]  ;;  %v986_v30 = vsel %vm3350_vm6, %v978_v19, %v4515_v22  ;;  %1157 = vst [vmem:[#allocation2 + $0x60] sm:$0xf] %v1156_v20  ;;  %v1143_v22 = vld [vmem:[#allocation2 + $0x48] sm:$0xf] }
  0xc5   : > { %1283 = vrot.lane.b32.xlu0 %v4508_v61, %s2975_s26  ;;  %v1132_v15 = vsel %vm3592_vm11, %v3401_v23, %v1131_v62  ;;  %1259 = vrot.lane.b32.xlu2 %v3891_v36, %s2975_s26  ;;  %1158 = vst.msk [vmem:[#allocation2 + $0x64] sm:$0xf] %vm1103_vm7, %v986_v30 }
  0xc6   : > { %v1232_v14 = vpop.permute.xlu1 %1231  ;;  %v3949_v58 = vld [vmem:[#allocation2 + $0x68] sm:$0xff]  ;;  %1133 = vst [vmem:[#allocation2 + $0x30] sm:$0xf] %v1132_v15 }
  0xc7   : > { %v1582_v52 = vpop.permute.xlu0 %1581  ;;  %1332 = vst.msk [vmem:[#allocation2 + $0x20] sm:$0xf] %vm1323_vm8, %v1232_v14  ;;  %v1548_v7 = vpop.permute.xlu2 %1547  ;;  %2750 = vmatmul.msk.bf16.vlgmr.msra.gmra.mxu3 %vm1840_vm14, %v3949_v58  ;;  %v1135_v14 = vld [vmem:[#allocation2 + $0x38] sm:$0xf] }
  0xc8   : > { %1652 = vst.msk [vmem:[#allocation2 + $0x20] sm:$0xf] %vm1633_vm12, %v1542_v34  ;;  %2740 = vmatmul.msk.bf16.gmra.mxu0 %vm1840_vm14, %v3925_v59  ;;  %2916 = vmatpush.bf16.msra.mxu3 %v3547_v21  ;;  %v1171_v34 = vld [vmem:[#allocation2 + $0x80] sm:$0xf]  ;;  %v1693_v21 = vld [vmem:[#allocation2 + $0x74] sm:$0xf] }
  0xc9   : > { %1692 = vst.msk [vmem:[#allocation2 + $0x70] sm:$0xf] %vm1633_vm12, %v1582_v52  ;;  %v1172_v23 = vsel %vm3592_vm11, %v4510_v53, %v1171_v34  ;;  %v4518_v52 = vld [vmem:[#allocation8_spill] sm:$0xff]  ;;  %v922_v53 = vsel %vm3350_vm6, %v914_v29, %v3681_v13 }
  0xca   : > { %1173 = vst [vmem:[#allocation2 + $0x80] sm:$0xf] %v1172_v23 }
  0xcb   : > { %1142 = vst.msk [vmem:[#allocation2 + $0x44] sm:$0xf] %vm1103_vm7, %v922_v53 }
  0xcc   : > { %1569 = vrot.lane.b32.xlu1 %v1467_v9, %s2977_s12  ;;  %2917 = vmatpush.bf16.msra.mxu3 %v3583_v16  ;;  %v1697_v16 = vld [vmem:[#allocation2 + $0x7c] sm:$0xf] }
  0xcd   : > { %1285 = vrot.lane.b32.xlu2 %v4508_v61, %s2975_s26  ;;  %v1136_v61 = vsel %vm3592_vm11, %v4518_v52, %v1135_v14 }
  0xce   : > { %v1584_v43 = vpop.permute.xlu1 %1583  ;;  %1137 = vst [vmem:[#allocation2 + $0x38] sm:$0xf] %v1136_v61  ;;  %v962_v61 = vrot.slane %v3927_v54, 4 }
  0xcf   : > { %v1236_v0 = vpop.permute.xlu0 %1235  ;;  %v1694_v26 = vsel %vm3621_vm13, %v1584_v43, %v1693_v21  ;;  %v2816_v33 = vld [vmem:[#allocation2 + $0x20] sm:$0xff]  ;;  %v1586_v5 = vpop.permute.xlu2 %1585  ;;  %2764 = vmatmul.msk.bf16.gmra.mxu1 %vm1840_vm14, %v3803_v60  ;;  %v4512_v60 = vld [vmem:[#allocation7_spill] sm:$0xff] }
  0xd0   : > { %1334 = vst.msk [vmem:[#allocation2 + $0x28] sm:$0xf] %vm1323_vm8, %v1236_v0  ;;  %v898_v55 = vrot.slane %v4512_v60, 4 }
  0xd1   : > { %1695 = vst [vmem:[#allocation2 + $0x74] sm:$0xf] %v1694_v26 }
  0xd2   : > { %2791 = vmatmul.msk.bf16.gmra.mxu2 %vm1840_vm14, %v2816_v33  ;;  %v906_v50 = vsel %vm3350_vm6, %v898_v55, %v4514_v57 }
  0xd3   : > { %1138 = vst.msk [vmem:[#allocation2 + $0x3c] sm:$0xf] %vm1103_vm7, %v906_v50 }
  0xd4   : > { %1595 = vrot.lane.b32.xlu1 %v4511_v56, %s2977_s12 }
  0xd5   : > { %1593 = vrot.lane.b32.xlu2 %v4516_v47, %s2977_s12 }
  0xd6   : > { %v1238_v28 = vpop.permute.xlu1 %1237 }
  0xd7   : > { %v1588_v63 = vpop.permute.xlu0 %1587  ;;  %1335 = vst.msk [vmem:[#allocation2 + $0x2c] sm:$0xf] %vm1323_vm8, %v1238_v28  ;;  %v1240_v17 = vpop.permute.xlu2 %1239 }
  0xd8   : > { %v3992_v36 = vld [vmem:[#allocation2 + $0x70] sm:$0xff]  ;;  %v1698_v6 = vsel %vm3621_vm13, %v1588_v63, %v1697_v16  ;;  %2741 = vmatmul.msk.bf16.gmra.mxu0 %vm1840_vm14, %v2816_v33  ;;  %1336 = vst.msk [vmem:[#allocation2 + $0x30] sm:$0xf] %vm1323_vm8, %v1240_v17  ;;  %v1139_v16 = vld [vmem:[#allocation2 + $0x40] sm:$0xf]  ;;  %v930_v17 = vrot.slane %v3796_v45, 4 }
  0xd9   : > { %1699 = vst [vmem:[#allocation2 + $0x7c] sm:$0xf] %v1698_v6  ;;  %2751 = vmatmul.msk.bf16.gmra.mxu3 %vm1840_vm14, %v3992_v36  ;;  %v1140_v28 = vsel %vm3592_vm11, %v3686_v8, %v1139_v16 }
  0xda   : > { %1141 = vst [vmem:[#allocation2 + $0x40] sm:$0xf] %v1140_v28  ;;  %v938_v8 = vsel %vm3350_vm6, %v930_v17, %v3769_v27 }
  0xdb   : > { %1146 = vst.msk [vmem:[#allocation2 + $0x4c] sm:$0xf] %vm1103_vm7, %v938_v8 }
  0xde   : > { %v1657_v1 = vld [vmem:[#allocation2 + $0x2c] sm:$0xf]  ;;  %v1276_v24 = vpop.permute.xlu1 %1275 }
  0xdf   : > { %v1242_v49 = vpop.permute.xlu0 %1241  ;;  %v1658_v42 = vsel %vm3621_vm13, %v1548_v7, %v1657_v1  ;;  %1354 = vst.msk [vmem:[#allocation2 + $0x78] sm:$0xf] %vm1323_vm8, %v1276_v24  ;;  %v1592_v48 = vpop.permute.xlu2 %1591  ;;  %2765 = vmatmul.msk.bf16.gmra.mxu1 %vm1840_vm14, %v3925_v59  ;;  %v1144_v1 = vsel %vm3592_vm11, %v3809_v4, %v1143_v22  ;;  %v950_v24 = vrot.slane %v948_v35, 7 }
  0xe0   : > { %1659 = vst [vmem:[#allocation2 + $0x2c] sm:$0xf] %v1658_v42 }
  0xe1   : > { %1696 = vst.msk [vmem:[#allocation2 + $0x78] sm:$0xf] %vm1633_vm12, %v1586_v5  ;;  %v953_v47 = vor.u32 %v951_v18, %v950_v24 }
  0xe2   : > { %1337 = vst.msk [vmem:[#allocation2 + $0x34] sm:$0xf] %vm1323_vm8, %v1242_v49  ;;  %v946_v49 = vrot.slane %v3842_v46, 4  ;;  %v1148_v46 = vsel %vm3592_vm11, %v3847_v11, %v1147_v3 }
  0xe3   : > { %1145 = vst [vmem:[#allocation2 + $0x48] sm:$0xf] %v1144_v1 }
  0xe4   : > { %v954_v4 = vsel %vm3350_vm6, %v946_v49, %v953_v47  ;;  %1149 = vst [vmem:[#allocation2 + $0x50] sm:$0xf] %v1148_v46 }
  0xe5   : > { %1150 = vst.msk [vmem:[#allocation2 + $0x54] sm:$0xf] %vm1103_vm7, %v954_v4 }
  0xe6   : > { %v1546_v7 = vpop.permute.xlu1 %1545 }
  0xe7   : > { %v1280_v62 = vpop.permute.xlu0 %1279  ;;  %1656 = vst.msk [vmem:[#allocation2 + $0x28] sm:$0xf] %vm1633_vm12, %v1546_v7  ;;  %v1246_v59 = vpop.permute.xlu2 %1245 }
  0xe8   : > { %v4026_v15 = vld [vmem:[#allocation2 + $0x78] sm:$0xff]  ;;  %1356 = vst.msk [vmem:[#allocation2 + $0x80] sm:$0xf] %vm1323_vm8, %v1280_v62 }
  0xe9   : > { %1339 = vst.msk [vmem:[#allocation2 + $0x3c] sm:$0xf] %vm1323_vm8, %v1246_v59  ;;  %2752 = vmatmul.msk.bf16.gmra.mxu3 %vm1840_vm14, %v4026_v15  ;;  %v1661_v32 = vld [vmem:[#allocation2 + $0x34] sm:$0xf] }
  0xee   : > { %v1282_v9 = vpop.permute.xlu1 %1281  ;;  %v2817_v34 = vld [vmem:[#allocation2 + $0x28] sm:$0xff] }
  0xef   : > { %v1550_v31 = vpop.permute.xlu0 %1549  ;;  %1357 = vst.msk [vmem:[#allocation2 + $0x84] sm:$0xf] %vm1323_vm8, %v1282_v9  ;;  %v1264_v2 = vpop.permute.xlu2 %1263  ;;  %2742 = vmatmul.msk.bf16.gmra.mxu0 %vm1840_vm14, %v2817_v34  ;;  %2766 = vmatmul.msk.bf16.gmra.mxu1 %vm1840_vm14, %v2816_v33  ;;  %v970_v9 = vsel %vm3350_vm6, %v962_v61, %v3937_v40 }
  0xf0   : > { %1660 = vst.msk [vmem:[#allocation2 + $0x30] sm:$0xf] %vm1633_vm12, %v1550_v31  ;;  %2792 = vmatmul.msk.bf16.gmra.mxu2 %vm1840_vm14, %v2817_v34  ;;  %v1665_v33 = vld [vmem:[#allocation2 + $0x3c] sm:$0xf] }
  0xf1   : > { %1348 = vst.msk [vmem:[#allocation2 + $0x60] sm:$0xf] %vm1323_vm8, %v1264_v2 }
  0xf2   : > { %1154 = vst.msk [vmem:[#allocation2 + $0x5c] sm:$0xf] %vm1103_vm7, %v970_v9 }
  0xf6   : > { %v1701_v23 = vld [vmem:[#allocation2 + $0x84] sm:$0xf]  ;;  %v1552_v21 = vpop.permute.xlu1 %1551 }
  0xf7   : > { %v1266_v43 = vpop.permute.xlu0 %1265  ;;  %v1702_v0 = vsel %vm3621_vm13, %v1592_v48, %v1701_v23  ;;  %v1662_v26 = vsel %vm3621_vm13, %v1552_v21, %v1661_v32  ;;  %v1554_v51 = vpop.permute.xlu2 %1553  ;;  %v1151_v23 = vld [vmem:[#allocation2 + $0x58] sm:$0xf] }
  0xf8   : > { %1349 = vst.msk [vmem:[#allocation2 + $0x64] sm:$0xf] %vm1323_vm8, %v1266_v43  ;;  %v1152_v21 = vsel %vm3592_vm11, %v3940_v10, %v1151_v23 }
  0xf9   : > { %1703 = vst [vmem:[#allocation2 + $0x84] sm:$0xf] %v1702_v0 }
  0xfa   : > { %1663 = vst [vmem:[#allocation2 + $0x34] sm:$0xf] %v1662_v26 }
  0xfb   : > { %1153 = vst [vmem:[#allocation2 + $0x58] sm:$0xf] %v1152_v21 }
  0xfe   : > { %v1590_v5 = vpop.permute.xlu1 %1589 }
  0xff   : > { %v1556_v13 = vpop.permute.xlu0 %1555  ;;  %1700 = vst.msk [vmem:[#allocation2 + $0x80] sm:$0xf] %vm1633_vm12, %v1590_v5  ;;  %2767 = vmatmul.msk.bf16.gmra.mxu1 %vm1840_vm14, %v2817_v34  ;;  %v1248_v6 = vpop.permute.xlu2 %1247  ;;  %v1685_v45 = vld [vmem:[#allocation2 + $0x64] sm:$0xf] }
 0x100   : > { %v1666_v56 = vsel %vm3621_vm13, %v1556_v13, %v1665_v33  ;;  %1340 = vst.msk [vmem:[#allocation2 + $0x40] sm:$0xf] %vm1323_vm8, %v1248_v6 }
 0x101   : > { %v2818_v63 = vld [vmem:[#allocation2 + $0x30] sm:$0xff]  ;;  %1667 = vst [vmem:[#allocation2 + $0x3c] sm:$0xf] %v1666_v56 }
 0x102   : > { %2743 = vmatmul.msk.bf16.gmra.mxu0 %vm1840_vm14, %v2818_v63  ;;  %2793 = vmatmul.msk.bf16.gmra.mxu2 %vm1840_vm14, %v2818_v63 }
 0x106   : > { %v1244_v60 = vpop.permute.xlu1 %1243  ;;  %v4059_v55 = vld [vmem:[#allocation2 + $0x80] sm:$0xff] }
 0x107   : > { %v1574_v38 = vpop.permute.xlu0 %1573  ;;  %1338 = vst.msk [vmem:[#allocation2 + $0x38] sm:$0xf] %vm1323_vm8, %v1244_v60  ;;  %2753 = vmatmul.msk.bf16.gmra.mxu3 %vm1840_vm14, %v4059_v55  ;;  %v1254_v19 = vpop.permute.xlu2 %1253 }
 0x108   : > { %1664 = vst.msk [vmem:[#allocation2 + $0x38] sm:$0xf] %vm1633_vm12, %v1554_v51 }
 0x109   : > { %1684 = vst.msk [vmem:[#allocation2 + $0x60] sm:$0xf] %vm1633_vm12, %v1574_v38 }
 0x10a   : > { %1343 = vst.msk [vmem:[#allocation2 + $0x4c] sm:$0xf] %vm1323_vm8, %v1254_v19 }
 0x10e   : > { %v1576_v57 = vpop.permute.xlu1 %1575 }
 0x10f   : > { %v1560_v50 = vpop.permute.xlu0 %1559  ;;  %v1686_v30 = vsel %vm3621_vm13, %v1576_v57, %v1685_v45  ;;  %v2819_v27 = vld [vmem:[#allocation2 + $0x38] sm:$0xff]  ;;  %2768 = vmatmul.msk.bf16.gmra.mxu1 %vm1840_vm14, %v2818_v63  ;;  %v1562_v42 = vpop.permute.xlu2 %1561 }
 0x110   : > { %1687 = vst [vmem:[#allocation2 + $0x64] sm:$0xf] %v1686_v30 }
 0x111   : > { %v1673_v52 = vld [vmem:[#allocation2 + $0x4c] sm:$0xf] }
 0x112   : > { %2744 = vmatmul.msk.bf16.gmra.mxu0 %vm1840_vm14, %v2819_v27  ;;  %2794 = vmatmul.msk.bf16.gmra.mxu2 %vm1840_vm14, %v2819_v27 }
 0x116   : > { %v1250_v48 = vpop.permute.xlu1 %1249 }
 0x117   : > { %v1252_v37 = vpop.permute.xlu0 %1251  ;;  %1341 = vst.msk [vmem:[#allocation2 + $0x44] sm:$0xf] %vm1323_vm8, %v1250_v48  ;;  %v4087_v35 = vld [vmem:[#allocation2 + $0x60] sm:$0xff]  ;;  %v1568_v62 = vpop.permute.xlu2 %1567 }
 0x118   : > { %1342 = vst.msk [vmem:[#allocation2 + $0x48] sm:$0xf] %vm1323_vm8, %v1252_v37  ;;  %2774 = vmatmul.msk.bf16.vlgmr.msrb.gmra.mxu3 %vm1840_vm14, %v4087_v35 }
 0x119   : > { %1672 = vst.msk [vmem:[#allocation2 + $0x48] sm:$0xf] %vm1633_vm12, %v1562_v42 }
 0x11e   : > { %v1669_v18 = vld [vmem:[#allocation2 + $0x44] sm:$0xf]  ;;  %v1558_v39 = vpop.permute.xlu1 %1557 }
 0x11f   : > { %v1258_v20 = vpop.permute.xlu0 %1257  ;;  %v1670_v14 = vsel %vm3621_vm13, %v1560_v50, %v1669_v18  ;;  %1668 = vst.msk [vmem:[#allocation2 + $0x40] sm:$0xf] %vm1633_vm12, %v1558_v39  ;;  %2769 = vmatmul.msk.bf16.gmra.mxu1 %vm1840_vm14, %v2819_v27  ;;  %v1260_v0 = vpop.permute.xlu2 %1259 }
 0x120   : > { %1671 = vst [vmem:[#allocation2 + $0x44] sm:$0xf] %v1670_v14 }
 0x121   : > { %1345 = vst.msk [vmem:[#allocation2 + $0x54] sm:$0xf] %vm1323_vm8, %v1258_v20 }
 0x122   : > { %1346 = vst.msk [vmem:[#allocation2 + $0x58] sm:$0xf] %vm1323_vm8, %v1260_v0 }
 0x124   : > { %v2124_v44 = vpop.f32.mrf.mxu2 }
 0x125   : > { %v1902_v7 = vpop.f32.mrf.mxu0 }
 0x126   : > { %v1564_v59 = vpop.permute.xlu1 %1563 }
 0x127   : > { %v2820_v11 = vld [vmem:[#allocation2 + $0x40] sm:$0xff]  ;;  %v1674_v34 = vsel %vm3621_vm13, %v1564_v59, %v1673_v52  ;;  %v1566_v53 = vpop.permute.xlu0 %1565  ;;  %v1286_v0 = vpop.permute.xlu2 %1285 }
 0x128   : > { %v1677_v31 = vld [vmem:[#allocation2 + $0x54] sm:$0xf]  ;;  %2745 = vmatmul.msk.bf16.gmra.mxu0 %vm1840_vm14, %v2820_v11  ;;  %2775 = vmatmul.msk.bf16.gmra.mxu3 %vm1840_vm14, %v3949_v58  ;;  %1675 = vst [vmem:[#allocation2 + $0x4c] sm:$0xf] %v1674_v34 }
 0x129   : > { %v1678_v54 = vsel %vm3621_vm13, %v1568_v62, %v1677_v31  ;;  %2795 = vmatmul.msk.bf16.gmra.mxu2 %vm1840_vm14, %v2820_v11  ;;  %1359 = vst.msk [vmem:[#allocation2 + $0x8c] sm:$0xf] %vm1323_vm8, %v1286_v0 }
 0x12a   : > { %1679 = vst [vmem:[#allocation2 + $0x54] sm:$0xf] %v1678_v54 }
 0x12c   : > { %v2011_v40 = vpop.f32.mrf.mxu1  ;;  %v2126_v13 = vpop.f32.mrf.mxu2 }
 0x12d   : > { %v2012_v2 = vadd.f32 %v2011_v40, %v1902_v7  ;;  %v1904_v29 = vpop.f32.mrf.mxu0 }
 0x12e   : > { %v1256_v32 = vpop.permute.xlu1 %1255 }
 0x12f   : > { %v2204_v43 = vadd.f32 %v2124_v44, %v2012_v2  ;;  %2770 = vmatmul.msk.bf16.gmra.mxu1 %vm1840_vm14, %v2820_v11  ;;  %1344 = vst.msk [vmem:[#allocation2 + $0x50] sm:$0xf] %vm1323_vm8, %v1256_v32  ;;  %v2821_v51 = vld [vmem:[#allocation2 + $0x48] sm:$0xff]  ;;  %v1572_v50 = vpop.permute.xlu0 %1571 }
 0x130   : > { %1676 = vst.msk [vmem:[#allocation2 + $0x50] sm:$0xf] %vm1633_vm12, %v1566_v53 }
 0x131   : > { %v2236_v26 = vpack.c.bf16 %v2204_v43, %v2204_v43  ;;  %v2372_v56 = vmul.f32 %v2204_v43, %v2204_v43  ;;  %v2301_v63 = vsel %vm2300_vm15, %v2204_v43, 0.0 }
 0x133   : > { %2268 = vst.msk [vmem:[%s4125_s11] sm:$0xf] %vm1103_vm7, %v2236_v26  ;;  %v2404_v8 = vsel %vm2300_vm15, %v2372_v56, 0.0 }
 0x134   : > { %v2013_v10 = vpop.f32.mrf.mxu1 }
 0x135   : > { %v2014_v33 = vadd.f32 %v2013_v10, %v1904_v29  ;;  %v1907_v5 = vpop.f32.mrf.mxu0 }
 0x136   : > { %v1262_v16 = vpop.permute.xlu1 %1261 }
 0x137   : > { %v2205_v28 = vadd.f32 %v2126_v13, %v2014_v33  ;;  %1347 = vst.msk [vmem:[#allocation2 + $0x5c] sm:$0xf] %vm1323_vm8, %v1262_v16  ;;  %v2822_v42 = vld [vmem:[#allocation2 + $0x50] sm:$0xff] }
 0x138   : > { %2746 = vmatmul.msk.bf16.gmra.mxu0 %vm1840_vm14, %v2821_v51  ;;  %2776 = vmatmul.msk.bf16.gmra.mxu3 %vm1840_vm14, %v3992_v36 }
 0x139   : > { %v2237_v6 = vpack.c.bf16 %v2205_v28, %v2205_v28  ;;  %v2302_v17 = vsel %vm2300_vm15, %v2205_v28, 0.0  ;;  %v2373_v60 = vmul.f32 %v2205_v28, %v2205_v28  ;;  %2796 = vmatmul.msk.bf16.gmra.mxu2 %vm1840_vm14, %v2821_v51 }
 0x13a   : > { %v2303_v38 = vadd.f32 %v2302_v17, %v2301_v63  ;;  %v1175_v63 = vld [vmem:[#allocation2 + $0x88] sm:$0xf] }
 0x13b   : > { %2269 = vst.msk [vmem:[%s4125_s11 + $0x4] sm:$0xf] %vm1103_vm7, %v2237_v6  ;;  %v2405_v19 = vsel %vm2300_vm15, %v2373_v60, 0.0 }
 0x13c   : > { %v2016_v45 = vpop.f32.mrf.mxu1  ;;  %v2406_v57 = vadd.f32 %v2405_v19, %v2404_v8  ;;  %v1705_v19 = vld [vmem:[#allocation2 + $0x8c] sm:$0xf] }
 0x13d   : > { %v1909_v22 = vpop.f32.mrf.mxu0  ;;  %v2017_v24 = vadd.f32 %v2016_v45, %v1907_v5 }
 0x13e   : > { %v1681_v30 = vld [vmem:[#allocation2 + $0x5c] sm:$0xf]  ;;  %v1570_v27 = vpop.permute.xlu1 %1569 }
 0x13f   : > { %2771 = vmatmul.msk.bf16.gmra.mxu1 %vm1840_vm14, %v2821_v51  ;;  %v1682_v1 = vsel %vm3621_vm13, %v1572_v50, %v1681_v30  ;;  %1680 = vst.msk [vmem:[#allocation2 + $0x58] sm:$0xf] %vm1633_vm12, %v1570_v27  ;;  %v1594_v50 = vpop.permute.xlu2 %1593 }
 0x140   : > { %1683 = vst [vmem:[#allocation2 + $0x5c] sm:$0xf] %v1682_v1 }
 0x144   : > { %v2018_v47 = vpop.f32.mrf.mxu1 }
 0x145   : > { %v2129_v49 = vpop.f32.mrf.mxu2  ;;  %v1912_v37 = vpop.f32.mrf.mxu0  ;;  %v2019_v14 = vadd.f32 %v2018_v47, %v1909_v22 }
 0x146   : > { %v2206_v48 = vadd.f32 %v2129_v49, %v2017_v24  ;;  %v1596_v8 = vpop.permute.xlu1 %1595 }
 0x147   : > { %v2823_v53 = vld [vmem:[#allocation2 + $0x58] sm:$0xff] }
 0x148   : > { %v2238_v4 = vpack.c.bf16 %v2206_v48, %v2206_v48  ;;  %v2304_v3 = vsel %vm2300_vm15, %v2206_v48, 0.0  ;;  %v2374_v46 = vmul.f32 %v2206_v48, %v2206_v48  ;;  %2747 = vmatmul.msk.bf16.gmra.mxu0 %vm1840_vm14, %v2822_v42  ;;  %2777 = vmatmul.msk.bf16.gmra.mxu3 %vm1840_vm14, %v4026_v15 }
 0x149   : > { %v2305_v18 = vadd.f32 %v2304_v3, %v2303_v38  ;;  %2797 = vmatmul.msk.bf16.gmra.mxu2 %vm1840_vm14, %v2822_v42  ;;  %v1284_v38 = vpop.permute.xlu0 %1283 }
 0x14a   : > { %2270 = vst.msk [vmem:[%s4125_s11 + $0x8] sm:$0xf] %vm1103_vm7, %v2238_v4  ;;  %v2407_v39 = vsel %vm2300_vm15, %v2374_v46, 0.0  ;;  %v4154_v62 = vpop.f32.mrf.mxu3 }
 0x14b   : > { %v2408_v20 = vadd.f32 %v2407_v39, %v2406_v57  ;;  %v1706_v57 = vsel %vm3621_vm13, %v1596_v8, %v1705_v19 }
 0x14c   : > { %v2021_v61 = vpop.f32.mrf.mxu1  ;;  %1707 = vst [vmem:[#allocation2 + $0x8c] sm:$0xf] %v1706_v57 }
 0x14d   : > { %v2131_v52 = vpop.f32.mrf.mxu2  ;;  %v1914_v31 = vpop.f32.mrf.mxu0  ;;  %v2022_v40 = vadd.f32 %v2021_v61, %v1912_v37 }
 0x14e   : > { %v2207_v7 = vadd.f32 %v2131_v52, %v2019_v14 }
 0x14f   : > { %2772 = vmatmul.msk.bf16.gmra.mxu1 %vm1840_vm14, %v2822_v42 }
 0x150   : > { %v2239_v11 = vpack.c.bf16 %v2207_v7, %v2207_v7  ;;  %v2306_v59 = vsel %vm2300_vm15, %v2207_v7, 0.0  ;;  %v2375_v9 = vmul.f32 %v2207_v7, %v2207_v7 }
 0x151   : > { %v2307_v34 = vadd.f32 %v2306_v59, %v2305_v18 }
 0x152   : > { %2271 = vst.msk [vmem:[%s4125_s11 + $0xc] sm:$0xf] %vm1103_vm7, %v2239_v11  ;;  %v2409_v54 = vsel %vm2300_vm15, %v2375_v9, 0.0  ;;  %v4166_v10 = vpop.f32.mrf.mxu3 }
 0x153   : > { %v2410_v44 = vadd.f32 %v2409_v54, %v2408_v20 }
 0x154   : > { %v2023_v29 = vpop.f32.mrf.mxu1 }
 0x155   : > { %v2134_v2 = vpop.f32.mrf.mxu2  ;;  %v1917_v5 = vpop.f32.mrf.mxu0  ;;  %v2024_v13 = vadd.f32 %v2023_v29, %v1914_v31 }
 0x156   : > { %v2208_v23 = vadd.f32 %v2134_v2, %v2022_v40 }
 0x158   : > { %v2240_v32 = vpack.c.bf16 %v2208_v23, %v2208_v23  ;;  %v2308_v21 = vsel %vm2300_vm15, %v2208_v23, 0.0  ;;  %v2376_v43 = vmul.f32 %v2208_v23, %v2208_v23  ;;  %2748 = vmatmul.msk.bf16.gmra.mxu0 %vm1840_vm14, %v2823_v53  ;;  %2801 = vmatmul.msk.bf16.vlgmr.msra.gmra.mxu3 %vm1840_vm14, %v3992_v36  ;;  %v1176_v36 = vsel %vm3592_vm11, %v3342_v41, %v1175_v63 }
 0x159   : > { %v2309_v26 = vadd.f32 %v2308_v21, %v2307_v34  ;;  %2798 = vmatmul.msk.bf16.gmra.mxu2 %vm1840_vm14, %v2823_v53  ;;  %1177 = vst [vmem:[#allocation2 + $0x88] sm:$0xf] %v1176_v36 }
 0x15a   : > { %2272 = vst.msk [vmem:[%s4125_s11 + $0x10] sm:$0xf] %vm1103_vm7, %v2240_v32  ;;  %v2411_v51 = vsel %vm2300_vm15, %v2376_v43, 0.0 }
 0x15b   : > { %v2412_v33 = vadd.f32 %v2411_v51, %v2410_v44  ;;  %1358 = vst.msk [vmem:[#allocation2 + $0x88] sm:$0xf] %vm1323_vm8, %v1284_v38 }
 0x15c   : > { %v2026_v56 = vpop.f32.mrf.mxu1  ;;  %v4183_v22 = vpop.f32.mrf.mxu3  ;;  %1704 = vst.msk [vmem:[#allocation2 + $0x88] sm:$0xf] %vm1633_vm12, %v1594_v50 }
 0x15d   : > { %v2136_v16 = vpop.f32.mrf.mxu2  ;;  %v1919_v30 = vpop.f32.mrf.mxu0  ;;  %v2027_v49 = vadd.f32 %v2026_v56, %v1917_v5 }
 0x15e   : > { %v2209_v28 = vadd.f32 %v2136_v16, %v2024_v13 }
 0x15f   : > { %2773 = vmatmul.msk.bf16.gmra.mxu1 %vm1840_vm14, %v2823_v53 }
 0x160   : > { %v2241_v6 = vpack.c.bf16 %v2209_v28, %v2209_v28  ;;  %v2310_v17 = vsel %vm2300_vm15, %v2209_v28, 0.0  ;;  %v2377_v60 = vmul.f32 %v2209_v28, %v2209_v28 }
 0x161   : > { %v2311_v45 = vadd.f32 %v2310_v17, %v2309_v26 }
 0x162   : > { %2273 = vst.msk [vmem:[%s4125_s11 + $0x14] sm:$0xf] %vm1103_vm7, %v2241_v6  ;;  %v2413_v41 = vsel %vm2300_vm15, %v2377_v60, 0.0 }
 0x163   : > { %v2414_v25 = vadd.f32 %v2413_v41, %v2412_v33  ;;  %v2829_v40 = vld [vmem:[#allocation2 + $0x88] sm:$0xff] }
 0x164   : > { %v2028_v27 = vpop.f32.mrf.mxu1  ;;  %v4192_v24 = vpop.f32.mrf.mxu3 }
 0x165   : > { %v2029_v20 = vadd.f32 %v2028_v27, %v1919_v30 }
 0x168   : > { %2749 = vmatmul.msk.bf16.gmra.mxu0 %vm1840_vm14, %v4087_v35  ;;  %2802 = vmatmul.msk.bf16.gmra.mxu3 %vm1840_vm14, %v4026_v15 }
 0x169   : > { %2799 = vmatmul.msk.bf16.gmra.mxu2 %vm1840_vm14, %v4087_v35 }
 0x16c   : > { %v1922_v12 = vpop.f32.mrf.mxu0  ;;  %v2031_v1 = vpop.f32.mrf.mxu1 }
 0x16d   : > { %v4195_v39 = vpop.f32.mrf.mxu3  ;;  %v2032_v44 = vadd.f32 %v2031_v1, %v1922_v12 }
 0x173   : > { %v2139_v47 = vpop.f32.mrf.mxu2 }
 0x174   : > { %v2210_v42 = vadd.f32 %v2139_v47, %v2027_v49  ;;  %v2033_v48 = vpop.f32.mrf.mxu1  ;;  %v1924_v46 = vpop.f32.mrf.mxu0 }
 0x175   : > { %v4208_v54 = vpop.f32.mrf.mxu3  ;;  %v2034_v33 = vadd.f32 %v2033_v48, %v1924_v46 }
 0x176   : > { %v2242_v37 = vpack.c.bf16 %v2210_v42, %v2210_v42  ;;  %v2312_v4 = vsel %vm2300_vm15, %v2210_v42, 0.0  ;;  %v2378_v3 = vmul.f32 %v2210_v42, %v2210_v42 }
 0x177   : > { %v2313_v18 = vadd.f32 %v2312_v4, %v2311_v45 }
 0x178   : > { %2274 = vst.msk [vmem:[%s4125_s11 + $0x18] sm:$0xf] %vm1103_vm7, %v2242_v37  ;;  %v2415_v15 = vsel %vm2300_vm15, %v2378_v3, 0.0  ;;  %2803 = vmatmul.msk.bf16.gmra.mxu3 %vm1840_vm14, %v4059_v55 }
 0x179   : > { %v2416_v35 = vadd.f32 %v2415_v15, %v2414_v25  ;;  %2800 = vmatmul.msk.bf16.gmra.mxu2 %vm1840_vm14, %v3949_v58 }
 0x17b   : > { %v2141_v14 = vpop.f32.mrf.mxu2 }
 0x17c   : > { %v2211_v52 = vadd.f32 %v2141_v14, %v2029_v20  ;;  %v2036_v9 = vpop.f32.mrf.mxu1 }
 0x17e   : > { %v2243_v61 = vpack.c.bf16 %v2211_v52, %v2211_v52  ;;  %v2314_v7 = vsel %vm2300_vm15, %v2211_v52, 0.0  ;;  %v2379_v11 = vmul.f32 %v2211_v52, %v2211_v52 }
 0x17f   : > { %v2315_v59 = vadd.f32 %v2314_v7, %v2313_v18  ;;  %v1927_v31 = vpop.f32.mrf.mxu0 }
 0x180   : > { %2275 = vst.msk [vmem:[%s4125_s11 + $0x1c] sm:$0xf] %vm1103_vm7, %v2243_v61  ;;  %v2417_v34 = vsel %vm2300_vm15, %v2379_v11, 0.0  ;;  %v2037_v60 = vadd.f32 %v2036_v9, %v1927_v31 }
 0x181   : > { %v2418_v55 = vadd.f32 %v2417_v34, %v2416_v35 }
 0x184   : > { %v2038_v43 = vpop.f32.mrf.mxu1 }
 0x185   : > { %v2144_v58 = vpop.f32.mrf.mxu2 }
 0x186   : > { %v2212_v2 = vadd.f32 %v2144_v58, %v2032_v44 }
 0x187   : > { %v1929_v26 = vpop.f32.mrf.mxu0 }
 0x188   : > { %v2244_v29 = vpack.c.bf16 %v2212_v2, %v2212_v2  ;;  %v2316_v53 = vsel %vm2300_vm15, %v2212_v2, 0.0  ;;  %v2380_v23 = vmul.f32 %v2212_v2, %v2212_v2  ;;  %2804 = vmatmul.msk.bf16.gmra.mxu3 %vm1840_vm14, %v2829_v40  ;;  %v2039_v12 = vadd.f32 %v2038_v43, %v1929_v26 }
 0x189   : > { %v2317_v32 = vadd.f32 %v2316_v53, %v2315_v59 }
 0x18a   : > { %2276 = vst.msk [vmem:[%s4125_s11 + $0x20] sm:$0xf] %vm1103_vm7, %v2244_v29  ;;  %v2419_v21 = vsel %vm2300_vm15, %v2380_v23, 0.0  ;;  %v4215_v51 = vpop.f32.mrf.mxu3 }
 0x18b   : > { %v2420_v0 = vadd.f32 %v2419_v21, %v2418_v55 }
 0x18c   : > { %v2041_v38 = vpop.f32.mrf.mxu1 }
 0x18d   : > { %v2146_v5 = vpop.f32.mrf.mxu2 }
 0x18e   : > { %v2213_v13 = vadd.f32 %v2146_v5, %v2034_v33 }
 0x18f   : > { %v1932_v8 = vpop.f32.mrf.mxu0 }
 0x190   : > { %v2245_v16 = vpack.c.bf16 %v2213_v13, %v2213_v13  ;;  %v2318_v56 = vsel %vm2300_vm15, %v2213_v13, 0.0  ;;  %v2381_v28 = vmul.f32 %v2213_v13, %v2213_v13  ;;  %v2042_v52 = vadd.f32 %v2041_v38, %v1932_v8 }
 0x191   : > { %v2319_v63 = vadd.f32 %v2318_v56, %v2317_v32 }
 0x192   : > { %2277 = vst.msk [vmem:[%s4125_s11 + $0x24] sm:$0xf] %vm1103_vm7, %v2245_v16  ;;  %v2421_v36 = vsel %vm2300_vm15, %v2381_v28, 0.0  ;;  %v4221_v17 = vpop.f32.mrf.mxu3 }
 0x193   : > { %v2422_v6 = vadd.f32 %v2421_v36, %v2420_v0 }
 0x194   : > { %v2043_v42 = vpop.f32.mrf.mxu1 }
 0x195   : > { %v2149_v19 = vpop.f32.mrf.mxu2 }
 0x196   : > { %v2214_v45 = vadd.f32 %v2149_v19, %v2037_v60 }
 0x197   : > { %v1934_v48 = vpop.f32.mrf.mxu0 }
 0x198   : > { %v2246_v57 = vpack.c.bf16 %v2214_v45, %v2214_v45  ;;  %v2320_v50 = vsel %vm2300_vm15, %v2214_v45, 0.0  ;;  %v2382_v41 = vmul.f32 %v2214_v45, %v2214_v45  ;;  %v2044_v2 = vadd.f32 %v2043_v42, %v1934_v48 }
 0x199   : > { %v2321_v25 = vadd.f32 %v2320_v50, %v2319_v63 }
 0x19a   : > { %2278 = vst.msk [vmem:[%s4125_s11 + $0x28] sm:$0xf] %vm1103_vm7, %v2246_v57  ;;  %v2423_v30 = vsel %vm2300_vm15, %v2382_v41, 0.0 }
 0x19b   : > { %v2424_v27 = vadd.f32 %v2423_v30, %v2422_v6  ;;  %v4227_v1 = vpop.f32.mrf.mxu3 }
 0x19c   : > { %v2046_v14 = vpop.f32.mrf.mxu1  ;;  %v2072_v42 = vadd.f32 %v4227_v1, %v4154_v62 }
 0x19d   : > { %v2151_v49 = vpop.f32.mrf.mxu2 }
 0x19e   : > { %v2215_v47 = vadd.f32 %v2151_v49, %v2039_v12 }
 0x1a0   : > { %v2247_v37 = vpack.c.bf16 %v2215_v47, %v2215_v47  ;;  %v2322_v4 = vsel %vm2300_vm15, %v2215_v47, 0.0  ;;  %v2383_v3 = vmul.f32 %v2215_v47, %v2215_v47 }
 0x1a1   : > { %v2323_v46 = vadd.f32 %v2322_v4, %v2321_v25 }
 0x1a2   : > { %2279 = vst.msk [vmem:[%s4125_s11 + $0x2c] sm:$0xf] %vm1103_vm7, %v2247_v37  ;;  %v2425_v18 = vsel %vm2300_vm15, %v2383_v3, 0.0 }
 0x1a3   : > { %v2426_v15 = vadd.f32 %v2425_v18, %v2424_v27  ;;  %v4233_v35 = vpop.f32.mrf.mxu3 }
 0x1a4   : > { %v2048_v58 = vpop.f32.mrf.mxu1  ;;  %v2074_v62 = vadd.f32 %v4233_v35, %v4166_v10 }
 0x1a5   : > { %v1937_v20 = vpop.f32.mrf.mxu0 }
 0x1a6   : > { %v2047_v43 = vadd.f32 %v2046_v14, %v1937_v20 }
 0x1ab   : > { %v4235_v61 = vpop.f32.mrf.mxu3 }
 0x1ac   : > { %v2154_v7 = vpop.f32.mrf.mxu2  ;;  %v2051_v26 = vpop.f32.mrf.mxu1  ;;  %v2077_v10 = vadd.f32 %v4235_v61, %v4183_v22 }
 0x1ad   : > { %v2216_v11 = vadd.f32 %v2154_v7, %v2042_v52  ;;  %v1939_v55 = vpop.f32.mrf.mxu0 }
 0x1ae   : > { %v2049_v16 = vadd.f32 %v2048_v58, %v1939_v55 }
 0x1af   : > { %v2248_v59 = vpack.c.bf16 %v2216_v11, %v2216_v11  ;;  %v2324_v9 = vsel %vm2300_vm15, %v2216_v11, 0.0  ;;  %v2384_v34 = vmul.f32 %v2216_v11, %v2216_v11 }
 0x1b0   : > { %v4238_v31 = vadd.f32 %v2324_v9, %v2323_v46 }
 0x1b1   : > { %2280 = vst.msk [vmem:[%s4125_s11 + $0x30] sm:$0xf] %vm1103_vm7, %v2248_v59  ;;  %v2427_v44 = vsel %vm2300_vm15, %v2384_v34, 0.0 }
 0x1b2   : > { %v4243_v40 = vadd.f32 %v2427_v44, %v2426_v15 }
 0x1b3   : > { %v4245_v29 = vpop.f32.mrf.mxu3 }
 0x1b4   : > { %v2156_v53 = vpop.f32.mrf.mxu2  ;;  %v2053_v6 = vpop.f32.mrf.mxu1 }
 0x1b5   : > { %v4247_v23 = vadd.f32 %v2156_v53, %v2044_v2  ;;  %v1942_v21 = vpop.f32.mrf.mxu0 }
 0x1b6   : > { %v2052_v38 = vadd.f32 %v2051_v26, %v1942_v21 }
 0x1b7   : > { %v2249_v32 = vpack.c.bf16 %v4247_v23, %v4247_v23  ;;  %v2385_v26 = vmul.f32 %v4247_v23, %v4247_v23  ;;  %v2326_v22 = vsel %vm2300_vm15, %v4247_v23, 0.0 }
 0x1b8   : > { %v2327_v23 = vadd.f32 %v2326_v22, %v4238_v31 }
 0x1b9   : > { %2281 = vst.msk [vmem:[%s4125_s11 + $0x34] sm:$0xf] %vm1103_vm7, %v2249_v32 }
 0x1bb   : > { %v4253_v0 = vpop.f32.mrf.mxu3 }
 0x1bc   : > { %v2159_v33 = vpop.f32.mrf.mxu2  ;;  %v2056_v41 = vpop.f32.mrf.mxu1 }
 0x1bd   : > { %v4255_v5 = vadd.f32 %v2159_v33, %v2047_v43  ;;  %v1944_v28 = vpop.f32.mrf.mxu0 }
 0x1be   : > { %v2054_v25 = vadd.f32 %v2053_v6, %v1944_v28 }
 0x1bf   : > { %v2250_v13 = vpack.c.bf16 %v4255_v5, %v4255_v5  ;;  %v2386_v61 = vmul.f32 %v4255_v5, %v4255_v5  ;;  %v2328_v28 = vsel %vm2300_vm15, %v4255_v5, 0.0 }
 0x1c1   : > { %2282 = vst.msk [vmem:[%s4125_s11 + $0x38] sm:$0xf] %vm1103_vm7, %v2250_v13  ;;  %v2079_v13 = vadd.f32 %v4245_v29, %v4192_v24 }
 0x1c3   : > { %v4261_v56 = vpop.f32.mrf.mxu3 }
 0x1c4   : > { %v2161_v63 = vpop.f32.mrf.mxu2  ;;  %v2058_v48 = vpop.f32.mrf.mxu1 }
 0x1c5   : > { %v4263_v36 = vadd.f32 %v2161_v63, %v2049_v16  ;;  %v1947_v57 = vpop.f32.mrf.mxu0  ;;  %v2429_v16 = vsel %vm2300_vm15, %v2385_v26, 0.0 }
 0x1c6   : > { %v2057_v37 = vadd.f32 %v2056_v41, %v1947_v57  ;;  %v2431_v57 = vsel %vm2300_vm15, %v2386_v61, 0.0  ;;  %v2329_v41 = vadd.f32 %v2328_v28, %v2327_v23  ;;  %v2084_v28 = vadd.f32 %v4261_v56, %v4208_v54 }
 0x1c7   : > { %v2251_v60 = vpack.c.bf16 %v4263_v36, %v4263_v36  ;;  %v2387_v63 = vmul.f32 %v4263_v36, %v4263_v36  ;;  %v2330_v24 = vsel %vm2300_vm15, %v4263_v36, 0.0 }
 0x1c9   : > { %2283 = vst.msk [vmem:[%s4125_s11 + $0x3c] sm:$0xf] %vm1103_vm7, %v2251_v60 }
 0x1cb   : > { %v4269_v8 = vpop.f32.mrf.mxu3 }
 0x1cc   : > { %v2164_v19 = vpop.f32.mrf.mxu2  ;;  %v2061_v7 = vpop.f32.mrf.mxu1 }
 0x1cd   : > { %v4271_v45 = vadd.f32 %v2164_v19, %v2052_v38  ;;  %v1949_v47 = vpop.f32.mrf.mxu0 }
 0x1ce   : > { %v2059_v14 = vadd.f32 %v2058_v48, %v1949_v47  ;;  %v2331_v48 = vadd.f32 %v2330_v24, %v2329_v41 }
 0x1cf   : > { %v2252_v50 = vpack.c.bf16 %v4271_v45, %v4271_v45  ;;  %v2388_v29 = vmul.f32 %v4271_v45, %v4271_v45 }
 0x1d1   : > { %2284 = vst.msk [vmem:[%s4125_s11 + $0x40] sm:$0xf] %vm1103_vm7, %v2252_v50  ;;  %v2430_v50 = vadd.f32 %v2429_v16, %v4243_v40  ;;  %v2435_v40 = vsel %vm2300_vm15, %v2388_v29, 0.0 }
 0x1d3   : > { %v4277_v30 = vpop.f32.mrf.mxu3 }
 0x1d4   : > { %v2166_v27 = vpop.f32.mrf.mxu2  ;;  %v2063_v21 = vpop.f32.mrf.mxu1 }
 0x1d5   : > { %v4279_v12 = vadd.f32 %v2166_v27, %v2054_v25  ;;  %v1952_v1 = vpop.f32.mrf.mxu0  ;;  %v2433_v27 = vsel %vm2300_vm15, %v2387_v63, 0.0 }
 0x1d6   : > { %v2062_v35 = vadd.f32 %v2061_v7, %v1952_v1 }
 0x1d7   : > { %v2253_v49 = vpack.c.bf16 %v4279_v12, %v4279_v12  ;;  %v2389_v36 = vmul.f32 %v4279_v12, %v4279_v12 }
 0x1d9   : > { %2285 = vst.msk [vmem:[%s4125_s11 + $0x44] sm:$0xf] %vm1103_vm7, %v2253_v49  ;;  %v2332_v49 = vsel %vm2300_vm15, %v4271_v45, 0.0  ;;  %v2082_v45 = vadd.f32 %v4253_v0, %v4195_v39 }
 0x1db   : > { %v2184_v4 = vpop.f32.mrf.mxu3 }
 0x1dc   : > { %v2169_v3 = vpop.f32.mrf.mxu2  ;;  %v4287_v46 = vadd.f32 %v2184_v4, %v2072_v42  ;;  %v2432_v42 = vadd.f32 %v2431_v57, %v2430_v50  ;;  %v2334_v4 = vsel %vm2300_vm15, %v4279_v12, 0.0 }
 0x1dd   : > { %v4289_v18 = vadd.f32 %v2169_v3, %v2057_v37  ;;  %v1954_v58 = vpop.f32.mrf.mxu0  ;;  %v2066_v37 = vpop.f32.mrf.mxu1 }
 0x1de   : > { %v2260_v15 = vpack.c.bf16 %v4287_v46, %v4287_v46  ;;  %v2064_v6 = vadd.f32 %v2063_v21, %v1954_v58 }
 0x1df   : > { %v2254_v20 = vpack.c.bf16 %v4289_v18, %v4289_v18  ;;  %v2390_v3 = vmul.f32 %v4289_v18, %v4289_v18  ;;  %v2336_v1 = vsel %vm2300_vm15, %v4289_v18, 0.0 }
 0x1e0   : > { %2292 = vst.msk [vmem:[%s4125_s11 + $0x60] sm:$0xf] %vm1103_vm7, %v2260_v15  ;;  %v2434_v15 = vadd.f32 %v2433_v27, %v2432_v42  ;;  %v2396_v27 = vmul.f32 %v4287_v46, %v4287_v46 }
 0x1e1   : > { %2286 = vst.msk [vmem:[%s4125_s11 + $0x48] sm:$0xf] %vm1103_vm7, %v2254_v20  ;;  %v2333_v20 = vadd.f32 %v2332_v49, %v2331_v48 }
 0x1e3   : > { %v2186_v52 = vpop.f32.mrf.mxu3  ;;  %v2335_v12 = vadd.f32 %v2334_v4, %v2333_v20  ;;  %v2451_v20 = vsel %vm2300_vm15, %v2396_v27, 0.0 }
 0x1e4   : > { %v2171_v11 = vpop.f32.mrf.mxu2  ;;  %v4301_v59 = vadd.f32 %v2186_v52, %v2074_v62  ;;  %v2437_v62 = vsel %vm2300_vm15, %v2389_v36, 0.0 }
 0x1e5   : > { %v2223_v9 = vadd.f32 %v2171_v11, %v2059_v14  ;;  %v1957_v25 = vpop.f32.mrf.mxu0  ;;  %v2436_v11 = vadd.f32 %v2435_v40, %v2434_v15  ;;  %v2337_v58 = vadd.f32 %v2336_v1, %v2335_v12 }
 0x1e6   : > { %v2261_v34 = vpack.c.bf16 %v4301_v59, %v4301_v59  ;;  %v2067_v52 = vadd.f32 %v2066_v37, %v1957_v25  ;;  %v2348_v37 = vsel %vm2300_vm15, %v4287_v46, 0.0  ;;  %v2397_v40 = vmul.f32 %v4301_v59, %v4301_v59 }
 0x1e7   : > { %v2255_v55 = vpack.c.bf16 %v2223_v9, %v2223_v9  ;;  %v2391_v14 = vmul.f32 %v2223_v9, %v2223_v9  ;;  %v2338_v39 = vsel %vm2300_vm15, %v2223_v9, 0.0 }
 0x1e8   : > { %2293 = vst.msk [vmem:[%s4125_s11 + $0x64] sm:$0xf] %vm1103_vm7, %v2261_v34  ;;  %v2339_v22 = vadd.f32 %v2338_v39, %v2337_v58 }
 0x1e9   : > { %2287 = vst.msk [vmem:[%s4125_s11 + $0x4c] sm:$0xf] %vm1103_vm7, %v2255_v55 }
 0x1eb   : > { %v2189_v44 = vpop.f32.mrf.mxu3 }
 0x1ec   : > { %v2174_v2 = vpop.f32.mrf.mxu2  ;;  %v4311_v53 = vadd.f32 %v2189_v44, %v2077_v10  ;;  %v2439_v10 = vsel %vm2300_vm15, %v2390_v3, 0.0  ;;  %v2438_v44 = vadd.f32 %v2437_v62, %v2436_v11  ;;  %v2087_v3 = vadd.f32 %v4269_v8, %v4215_v51 }
 0x1ed   : > { %v2224_v32 = vadd.f32 %v2174_v2, %v2062_v35  ;;  %v2441_v2 = vsel %vm2300_vm15, %v2391_v14, 0.0  ;;  %v1959_v61 = vpop.f32.mrf.mxu0  ;;  %v2350_v62 = vsel %vm2300_vm15, %v4301_v59, 0.0  ;;  %v2453_v11 = vsel %vm2300_vm15, %v2397_v40, 0.0 }
 0x1ee   : > { %v2262_v43 = vpack.c.bf16 %v4311_v53, %v4311_v53  ;;  %v2398_v46 = vmul.f32 %v4311_v53, %v4311_v53  ;;  %v2352_v51 = vsel %vm2300_vm15, %v4311_v53, 0.0 }
 0x1ef   : > { %v2256_v33 = vpack.c.bf16 %v2224_v32, %v2224_v32  ;;  %v2392_v0 = vmul.f32 %v2224_v32, %v2224_v32  ;;  %v2340_v21 = vsel %vm2300_vm15, %v2224_v32, 0.0 }
 0x1f0   : > { %2294 = vst.msk [vmem:[%s4125_s11 + $0x68] sm:$0xf] %vm1103_vm7, %v2262_v43  ;;  %v2341_v32 = vadd.f32 %v2340_v21, %v2339_v22  ;;  %v2455_v59 = vsel %vm2300_vm15, %v2398_v46, 0.0 }
 0x1f1   : > { %2288 = vst.msk [vmem:[%s4125_s11 + $0x50] sm:$0xf] %vm1103_vm7, %v2256_v33  ;;  %v2440_v33 = vadd.f32 %v2439_v10, %v2438_v44  ;;  %v2443_v9 = vsel %vm2300_vm15, %v2392_v0, 0.0 }
 0x1f3   : > { %v2191_v60 = vpop.f32.mrf.mxu3  ;;  %v2442_v63 = vadd.f32 %v2441_v2, %v2440_v33  ;;  %v2089_v2 = vadd.f32 %v4277_v30, %v4221_v17 }
 0x1f4   : > { %v2176_v38 = vpop.f32.mrf.mxu2  ;;  %v4333_v19 = vadd.f32 %v2191_v60, %v2079_v13 }
 0x1f5   : > { %v2225_v5 = vadd.f32 %v2176_v38, %v2064_v6  ;;  %v2068_v6 = vpop.f32.mrf.mxu1  ;;  %v2444_v24 = vadd.f32 %v2443_v9, %v2442_v63 }
 0x1f6   : > { %v2263_v31 = vpack.c.bf16 %v4333_v19, %v4333_v19  ;;  %v2069_v60 = vadd.f32 %v2068_v6, %v1959_v61  ;;  %v2399_v8 = vmul.f32 %v4333_v19, %v4333_v19  ;;  %v2354_v39 = vsel %vm2300_vm15, %v4333_v19, 0.0 }
 0x1f7   : > { %v2257_v47 = vpack.c.bf16 %v2225_v5, %v2225_v5  ;;  %v2393_v43 = vmul.f32 %v2225_v5, %v2225_v5  ;;  %v2342_v13 = vsel %vm2300_vm15, %v2225_v5, 0.0 }
 0x1f8   : > { %2295 = vst.msk [vmem:[%s4125_s11 + $0x6c] sm:$0xf] %vm1103_vm7, %v2263_v31  ;;  %v2343_v29 = vadd.f32 %v2342_v13, %v2341_v32  ;;  %v2457_v53 = vsel %vm2300_vm15, %v2399_v8, 0.0 }
 0x1f9   : > { %2289 = vst.msk [vmem:[%s4125_s11 + $0x54] sm:$0xf] %vm1103_vm7, %v2257_v47  ;;  %v2445_v23 = vsel %vm2300_vm15, %v2393_v43, 0.0 }
 0x1fa   : > { %v2446_v31 = vadd.f32 %v2445_v23, %v2444_v24 }
 0x1fb   : > { %v2194_v7 = vpop.f32.mrf.mxu3 }
 0x1fc   : > { %v2179_v34 = vpop.f32.mrf.mxu2  ;;  %v4362_v55 = vadd.f32 %v2194_v7, %v2082_v45 }
 0x1fd   : > { %v2226_v35 = vadd.f32 %v2179_v34, %v2067_v52 }
 0x1fe   : > { %v2264_v18 = vpack.c.bf16 %v4362_v55, %v4362_v55  ;;  %v2400_v0 = vmul.f32 %v4362_v55, %v4362_v55  ;;  %v2356_v58 = vsel %vm2300_vm15, %v4362_v55, 0.0 }
 0x1ff   : > { %v2258_v26 = vpack.c.bf16 %v2226_v35, %v2226_v35  ;;  %v2394_v16 = vmul.f32 %v2226_v35, %v2226_v35  ;;  %v2344_v38 = vsel %vm2300_vm15, %v2226_v35, 0.0 }
 0x200   : > { %2296 = vst.msk [vmem:[%s4125_s11 + $0x70] sm:$0xf] %vm1103_vm7, %v2264_v18  ;;  %v2345_v54 = vadd.f32 %v2344_v38, %v2343_v29  ;;  %v2459_v19 = vsel %vm2300_vm15, %v2400_v0, 0.0 }
 0x201   : > { %2290 = vst.msk [vmem:[%s4125_s11 + $0x58] sm:$0xf] %vm1103_vm7, %v2258_v26  ;;  %v2447_v41 = vsel %vm2300_vm15, %v2394_v16, 0.0 }
 0x202   : > { %v2448_v42 = vadd.f32 %v2447_v41, %v2446_v31 }
 0x203   : > { %v2196_v57 = vpop.f32.mrf.mxu3 }
 0x204   : > { %v2181_v50 = vpop.f32.mrf.mxu2  ;;  %v2233_v5 = vadd.f32 %v2196_v57, %v2084_v28 }
 0x205   : > { %v2227_v25 = vadd.f32 %v2181_v50, %v2069_v60 }
 0x206   : > { %v2265_v56 = vpack.c.bf16 %v2233_v5, %v2233_v5  ;;  %v2401_v18 = vmul.f32 %v2233_v5, %v2233_v5  ;;  %v2358_v26 = vsel %vm2300_vm15, %v2233_v5, 0.0 }
 0x207   : > { %v2259_v49 = vpack.c.bf16 %v2227_v25, %v2227_v25  ;;  %v2346_v36 = vsel %vm2300_vm15, %v2227_v25, 0.0  ;;  %v2395_v47 = vmul.f32 %v2227_v25, %v2227_v25 }
 0x208   : > { %v2347_v48 = vadd.f32 %v2346_v36, %v2345_v54  ;;  %2297 = vst.msk [vmem:[%s4125_s11 + $0x74] sm:$0xf] %vm1103_vm7, %v2265_v56  ;;  %v2461_v16 = vsel %vm2300_vm15, %v2401_v18, 0.0 }
 0x209   : > { %2291 = vst.msk [vmem:[%s4125_s11 + $0x5c] sm:$0xf] %vm1103_vm7, %v2259_v49  ;;  %v2449_v4 = vsel %vm2300_vm15, %v2395_v47, 0.0 }
 0x20a   : > { %v2349_v45 = vadd.f32 %v2348_v37, %v2347_v48  ;;  %v2450_v15 = vadd.f32 %v2449_v4, %v2448_v42 }
 0x20b   : > { %v2199_v1 = vpop.f32.mrf.mxu3 }
 0x20c   : > { %v2351_v14 = vadd.f32 %v2350_v62, %v2349_v45  ;;  %v2452_v52 = vadd.f32 %v2451_v20, %v2450_v15  ;;  %v2234_v7 = vadd.f32 %v2199_v1, %v2087_v3 }
 0x20e   : > { %v2454_v12 = vadd.f32 %v2453_v11, %v2452_v52  ;;  %v2353_v34 = vadd.f32 %v2352_v51, %v2351_v14  ;;  %v2266_v10 = vpack.c.bf16 %v2234_v7, %v2234_v7  ;;  %v2402_v33 = vmul.f32 %v2234_v7, %v2234_v7 }
 0x20f   : > { %v2360_v55 = vsel %vm2300_vm15, %v2234_v7, 0.0 }
 0x210   : > { %v2355_v35 = vadd.f32 %v2354_v39, %v2353_v34  ;;  %v2456_v44 = vadd.f32 %v2455_v59, %v2454_v12  ;;  %2298 = vst.msk [vmem:[%s4125_s11 + $0x78] sm:$0xf] %vm1103_vm7, %v2266_v10  ;;  %v2463_v6 = vsel %vm2300_vm15, %v2402_v33, 0.0 }
 0x212   : > { %v2357_v21 = vadd.f32 %v2356_v58, %v2355_v35  ;;  %v2458_v43 = vadd.f32 %v2457_v53, %v2456_v44 }
 0x213   : > { %v2201_v22 = vpop.f32.mrf.mxu3 }
 0x214   : > { %v2359_v61 = vadd.f32 %v2358_v26, %v2357_v21  ;;  %v2460_v9 = vadd.f32 %v2459_v19, %v2458_v43  ;;  %v2235_v13 = vadd.f32 %v2201_v22, %v2089_v2 }
 0x216   : > { %v2462_v28 = vadd.f32 %v2461_v16, %v2460_v9  ;;  %v2361_v63 = vadd.f32 %v2360_v55, %v2359_v61  ;;  %v2267_v17 = vpack.c.bf16 %v2235_v13, %v2235_v13  ;;  %v2362_v30 = vsel %vm2300_vm15, %v2235_v13, 0.0 }
 0x217   : > { %v2403_v32 = vmul.f32 %v2235_v13, %v2235_v13 }
 0x218   : > { %v2464_v60 = vadd.f32 %v2463_v6, %v2462_v28  ;;  %2299 = vst.msk [vmem:[%s4125_s11 + $0x7c] sm:$0xf] %vm1103_vm7, %v2267_v17  ;;  %v2363_v23 = vadd.f32 %v2362_v30, %v2361_v63 }
 0x219   : > { %v2465_v38 = vsel %vm2300_vm15, %v2403_v32, 0.0 }
 0x21a   : > { %v2364_v57 = vrot.slane %v2363_v23, 4  ;;  %v2466_v24 = vadd.f32 %v2465_v38, %v2464_v60 }
 0x21c   : > { %v2365_v29 = vadd.f32 %v2364_v57, %v2363_v23  ;;  %v2467_v50 = vrot.slane %v2466_v24, 4 }
 0x21e   : > { %v2366_v5 = vrot.slane %v2365_v29, 2  ;;  %v2468_v41 = vadd.f32 %v2467_v50, %v2466_v24 }
 0x220   : > { %v2367_v25 = vadd.f32 %v2366_v5, %v2365_v29  ;;  %v2469_v31 = vrot.slane %v2468_v41, 2 }
 0x222   : > { %v2368_v54 = vrot.slane %v2367_v25, 1  ;;  %v2470_v56 = vadd.f32 %v2469_v31, %v2468_v41 }
 0x224   : > { %v2369_v27 = vadd.f32 %v2368_v54, %v2367_v25  ;;  %v2471_v49 = vrot.slane %v2470_v56, 1 }
 0x226   : > { %2371 = vst.msk [vmem:[%s465_s14] sm:$0x1] %vm2370_vm0, %v2369_v27  ;;  %v2472_v36 = vadd.f32 %v2471_v49, %v2470_v56 }
 0x228   : > { %2473 = vst.msk [vmem:[%s465_s14 + $0x1] sm:$0x1] %vm2370_vm0, %v2472_v36 }
 0x229 PF: > { %s18_s2 = sadd.s32 1, %s2972_s2   ;;  %s4519_s23 = smov %s2968_s24 }
 0x22a   : > { %p15_p5 = scmp.ge.s32.totalorder %s18_s2, 4   ;;  %s4520_s24 = smov %s4522_s25 }
 0x22c   :  { %17 = sbr.rel (!%p15_p5) target bundleno = 2 (0x2), region = 94 }

// kernel: _lambda_.3
= control target key start
LH: loop header
LB: loop body
LE: loop exit
PB: predicated region body
PF: predicated region fallthrough
CT: control target
= control target key end

     0   :  { %s2700_s18 = smov 0   ;;  %s2702_s19 = smov 0   ;;  %s4017_s0 = inlined_call_operand.vmem [shape: f32[2,16,16,4], index: 0, kind: input, shape index: {}, may-alias: {0,1,2}]   ;;  %s4018_s1 = inlined_call_operand.vmem [shape: f32[2,16,16,4], index: 1, kind: input, shape index: {}, may-alias: {0,1,2}]   ;;  %s4019_s2 = inlined_call_operand.vmem [shape: f32[2,16,16,4], index: 2, kind: input, shape index: {}, may-alias: {0,1,2}]   ;;  %s4020_s3 = inlined_call_operand.vmem [shape: bf16[3,12,8], index: 3, kind: input, shape index: {}]   ;;  %s4021_s4 = inlined_call_operand.vmem [shape: bf16[2,16,16,8], index: 4, kind: output, shape index: {0}]   ;;  %s4022_s5 = inlined_call_operand.vmem [shape: f32[2,1,2,8], index: 5, kind: output, shape index: {1}]  }
   0x1   :  { %s2704_s0 = smov 0  }
   0x2 LB: > { %s28_s2 = sadd.s32 1, %s2660_s19  ;;  %p2437_p0 = scmp.ge.s32.totalorder %s2664_s0, 1  ;;  %s2664_s0 = sphi %s2704_s0, %s16_s0   ;;  %s2660_s19 = sphi %s2702_s19, %s4098_s19   ;;  %s2656_s18 = sphi %s2700_s18, %s4097_s18  }
   0x3   : > { %p30_p1 = scmp.ge.s32.totalorder %s28_s2, 2  ;;  %p278_p2 = scmp.lt.s32.totalorder %s2664_s0, 3 }
   0x5   : > { %s4100_s2 = smov (%p30_p1, %s28_s2), 0  ;;  %p279_p3 = pnand %p2437_p0, %p278_p2 }
   0x7   : > { %282 = sbr.rel (%p279_p3) target bundleno = 545 (0x221), region = 36 }
   0xc   : > { %p367_p4 = scmp.lt.s32.totalorder %s2656_s18, 1  ;;  %v4023_v0 = vmov 0.0|0.0   ;;  %s2667_s20 = smov 4   ;;  %v2668_v1 = vmov 0   ;;  %vm1154_vm0 = vsmask.f32 3328 }
   0xd   : > { %1011 = vrot.lane.b32.xlu0 %v4023_v0, %s2667_s20  ;;  %v1157_v2 = vrot.slane %v2668_v1, 4  ;;  %v2722_v3 = vrot.slane %v2668_v1, 5  ;;  %s2669_s25 = smov 8   ;;  %vm1155_vm1 = vsmask.f32 7440  ;;  %vm533_vm4 = vcmask 93184  }
   0xe   : > { %s4102_s18 = smov (!%p367_p4, %s2656_s18), 1  ;;  %vm2786_vm2 = vmor %vm1154_vm0, %vm1155_vm1  ;;  %vm570_vm3 = vsmask.f32 256  ;;  %vm571_vm5 = vsmask.f32 4368  ;;  %vm897_vm7 = vcmask 27648  }
   0xf   : > { %v1159_v4 = vor.u32 %v2722_v3, %v1157_v2  ;;  %s2586_s21 = sshll.u32 %s4102_s18, 8  ;;  %535 = vst.msk [vmem:[#allocation2 + $0x4] sm:$0xf] %vm533_vm4, %v2668_v1  ;;  %vm2987_vm6 = vmor %vm570_vm3, %vm571_vm5  ;;  %vm1677_vm8 = vcmask 1045504   ;;  %vm1117_vm9 = vcmask 60448   ;;  %vm1427_vm10 = vcmask 93248  }
  0x10   : > { %s2731_s24 = scalar_lea.vmem %s4018_s1, %s2586_s21  ;;  %534 = vst.msk [vmem:[#allocation2] sm:$0xf] %vm533_vm4, %v2668_v1  ;;  %vm898_vm11 = vsmask.f32 7938  ;;  %vm3239_vm12 = vmand %vm1427_vm10, %vm1154_vm0  ;;  %vm1628_vm14 = vcmask 97280   ;;  %v4086_v55 = vmov 0.0|0.0  }
  0x11   : > { %v2733_v5 = vrot.slane %v1159_v4, 4  ;;  %v418_v6 = vld [vmem:[%s2731_s24 + $0x18] sm:$0xff]  ;;  %v416_v7 = vld [vmem:[%s2731_s24 + $0x8] sm:$0xff]  ;;  %v417_v8 = vld [vmem:[%s2731_s24 + $0x10] sm:$0xff]  ;;  %536 = vst.msk [vmem:[#allocation2 + $0x8] sm:$0xf] %vm533_vm4, %v2668_v1 }
  0x12   : > { %v502_v9 = vpack.c.bf16 %v418_v6, %v418_v6  ;;  %v500_v10 = vpack.c.bf16 %v416_v7, %v416_v7  ;;  %v501_v11 = vpack.c.bf16 %v417_v8, %v417_v8  ;;  %v415_v12 = vld [vmem:[%s2731_s24] sm:$0xff]  ;;  %v422_v57 = vld [vmem:[%s2731_s24 + $0x38] sm:$0xff]  ;;  %v420_v62 = vld [vmem:[%s2731_s24 + $0x28] sm:$0xff]  ;;  %537 = vst.msk [vmem:[#allocation2 + $0xc] sm:$0xf] %vm533_vm4, %v2668_v1  ;;  %s2589_s13 = sshll.u32 %s4102_s18, 7 }
  0x13   : > { %1321 = vrot.lane.b32.xlu2 %v2733_v5, %s2669_s25  ;;  %v439_v13 = vld [vmem:[%s2731_s24 + $0xc0] sm:$0xff]  ;;  %v499_v14 = vpack.c.bf16 %v415_v12, %v415_v12  ;;  %v2796_v60 = vpack.c.bf16 %v422_v57, %v422_v57  ;;  %v2806_v6 = vpack.c.bf16 %v420_v62, %v420_v62  ;;  %v440_v7 = vld [vmem:[%s2731_s24 + $0xc8] sm:$0xff]  ;;  %538 = vst.msk [vmem:[#allocation2 + $0x10] sm:$0xf] %vm533_vm4, %v2668_v1  ;;  %vm3259_vm13 = vmand %vm897_vm7, %vm898_vm11  ;;  %s3704_s16 = scalar_lea.vmem %s4021_s4, %s2589_s13  ;;  %vm2047_vm15 = vcmask 60416   ;;  %s2446_s17 = sshll.u32 %s4102_s18, 1 }
  0x14   : > { %1015 = vrot.lane.b32.xlu1 %v500_v10, %s2667_s20  ;;  %v606_v15 = vshrl.u32 %v501_v11, 16  ;;  %v598_v16 = vshrl.u32 %v500_v10, 16  ;;  %v601_v17 = vshll.u32 %v500_v10, 16  ;;  %v2744_v18 = vpack.c.bf16 %v439_v13, %v439_v13  ;;  %v419_v35 = vld [vmem:[%s2731_s24 + $0x20] sm:$0xff]  ;;  %v444_v62 = vld [vmem:[%s2731_s24 + $0xe8] sm:$0xff]  ;;  %s411_s22 = scalar_lea.vmem %s4022_s5, %s2446_s17 }
  0x15   : > { %1019 = vrot.lane.b32.xlu0 %v502_v9, %s2667_s20  ;;  %v609_v19 = vshll.u32 %v501_v11, 16  ;;  %v590_v20 = vshrl.u32 %v499_v14, 16  ;;  %v614_v21 = vshrl.u32 %v502_v9, 16  ;;  %v617_v22 = vshll.u32 %v502_v9, 16  ;;  %v441_v9 = vld [vmem:[%s2731_s24 + $0xd0] sm:$0xff] }
  0x16   : > { %v2746_v23 = vrot.slane %v606_v15, 7  ;;  %v2748_v24 = vrot.slane %v601_v17, 5  ;;  %v600_v25 = vrot.slane %v598_v16, 7  ;;  %v593_v26 = vshll.u32 %v499_v14, 16  ;;  %539 = vst.msk [vmem:[#allocation2 + $0x14] sm:$0xf] %vm533_vm4, %v2668_v1 }
  0x17   : > { %v2750_v27 = vrot.slane %v590_v20, 7  ;;  %v1179_v28 = vrot.slane %v617_v22, 5  ;;  %v1181_v29 = vrot.slane %v614_v21, 4  ;;  %v616_v30 = vrot.slane %v614_v21, 7  ;;  %540 = vst.msk [vmem:[#allocation2 + $0x18] sm:$0xf] %vm533_vm4, %v2668_v1 }
  0x18   : > { %v2753_v31 = vor.u32 %v609_v19, %v2746_v23  ;;  %v1172_v32 = vrot.slane %v598_v16, 4  ;;  %v2755_v33 = vor.u32 %v601_v17, %v600_v25  ;;  %v782_v34 = vshrl.u32 %v2744_v18, 16  ;;  %541 = vst.msk [vmem:[#allocation2 + $0x1c] sm:$0xf] %vm533_vm4, %v2668_v1 }
  0x19   : > { %v2760_v36 = vor.u32 %v593_v26, %v2750_v27  ;;  %v1182_v37 = vor.u32 %v1181_v29, %v1179_v28  ;;  %v2762_v38 = vor.u32 %v617_v22, %v616_v30  ;;  %v785_v40 = vshll.u32 %v2744_v18, 16  ;;  %542 = vst.msk [vmem:[#allocation2 + $0x20] sm:$0xf] %vm533_vm4, %v2668_v1 }
  0x1a   : > { %v2766_v39 = vrot.slane %v782_v34, 7  ;;  %v1175_v41 = vrot.slane %v606_v15, 4  ;;  %v1176_v43 = vrot.slane %v609_v19, 5  ;;  %v2769_v44 = vpack.c.bf16 %v419_v35, %v419_v35  ;;  %543 = vst.msk [vmem:[#allocation2 + $0x24] sm:$0xf] %vm533_vm4, %v2668_v1 }
  0x1b   : > { %v1183_v42 = vrot.slane %v1182_v37, 4  ;;  %v1173_v45 = vor.u32 %v1172_v32, %v2748_v24  ;;  %v1166_v49 = vrot.slane %v590_v20, 4  ;;  %v1167_v50 = vrot.slane %v593_v26, 5  ;;  %544 = vst.msk [vmem:[#allocation2 + $0x28] sm:$0xf] %vm533_vm4, %v2668_v1 }
  0x1c   : > { %1017 = vrot.lane.b32.xlu1 %v501_v11, %s2667_s20  ;;  %v2778_v46 = vor.u32 %v785_v40, %v2766_v39  ;;  %v1177_v47 = vor.u32 %v1176_v43, %v1175_v41  ;;  %v622_v48 = vshrl.u32 %v2769_v44, 16  ;;  %v625_v53 = vshll.u32 %v2769_v44, 16  ;;  %v421_v11 = vld [vmem:[%s2731_s24 + $0x30] sm:$0xff]  ;;  %545 = vst.msk [vmem:[#allocation2 + $0x2c] sm:$0xf] %vm533_vm4, %v2668_v1 }
  0x1d   : > { %1009 = vrot.lane.b32.xlu0 %v4023_v0, %s2667_s20  ;;  %1329 = vrot.lane.b32.xlu2 %v1183_v42, %s2669_s25  ;;  %v1174_v54 = vrot.slane %v1173_v45, 4  ;;  %v1168_v59 = vor.u32 %v1167_v50, %v1166_v49  ;;  %v646_v61 = vshrl.u32 %v2796_v60, 16  ;;  %v649_v4 = vshll.u32 %v2796_v60, 16  ;;  %v423_v49 = vld [vmem:[%s2731_s24 + $0x40] sm:$0xff]  ;;  %546 = vst.msk [vmem:[#allocation2 + $0x30] sm:$0xf] %vm533_vm4, %v2668_v1 }
  0x1e   : > { %v1178_v51 = vrot.slane %v1177_v47, 4  ;;  %v2782_v52 = vrot.slane %v622_v48, 7  ;;  %v2816_v10 = vsel %vm2786_vm2, %v2733_v5, %v2722_v3  ;;  %v2819_v12 = vpack.c.bf16 %v441_v9, %v441_v9  ;;  %547 = vst.msk [vmem:[#allocation2 + $0x34] sm:$0xf] %vm533_vm4, %v2668_v1 }
  0x1f   : > { %v1169_v63 = vrot.slane %v1168_v59, 4  ;;  %v648_v2 = vrot.slane %v646_v61, 7  ;;  %4049 = vst [vmem:[#allocation3_spill] sm:$0xff] %v2816_v10  ;;  %v2826_v15 = vpack.c.bf16 %v440_v7, %v440_v7  ;;  %v633_v3 = vshll.u32 %v2806_v6, 16  ;;  %v442_v7 = vld [vmem:[%s2731_s24 + $0xd8] sm:$0xff] }
  0x20   : > { %v2791_v56 = vor.u32 %v625_v53, %v2782_v52  ;;  %v1180_v58 = vsel %vm2786_vm2, %v1178_v51, %v1179_v28  ;;  %v798_v16 = vshrl.u32 %v2819_v12, 16  ;;  %v1184_v17 = vrot.slane %v622_v48, 4  ;;  %548 = vst.msk [vmem:[#allocation2 + $0x38] sm:$0xf] %vm533_vm4, %v2668_v1 }
  0x21   : > { %v2809_v8 = vor.u32 %v649_v4, %v648_v2  ;;  %v1171_v13 = vsel %vm2786_vm2, %v1169_v63, %v2748_v24  ;;  %v630_v19 = vshrl.u32 %v2806_v6, 16  ;;  %v1185_v21 = vrot.slane %v625_v53, 5  ;;  %549 = vst.msk [vmem:[#allocation2 + $0x3c] sm:$0xf] %vm533_vm4, %v2668_v1 }
  0x22   : > { %v4033_v22 = vshrl.u32 %v2826_v15, 16  ;;  %v2838_v24 = vrot.slane %v798_v16, 7  ;;  %v801_v25 = vshll.u32 %v2819_v12, 16  ;;  %v4032_v29 = vshll.u32 %v2826_v15, 16  ;;  %550 = vst.msk [vmem:[#allocation2 + $0x40] sm:$0xf] %vm533_vm4, %v2668_v1 }
  0x23   : > { %v1188_v32 = vrot.slane %v633_v3, 5  ;;  %v1190_v35 = vrot.slane %v630_v19, 4  ;;  %v1186_v41 = vor.u32 %v1185_v21, %v1184_v17  ;;  %v1274_v47 = vrot.slane %v782_v34, 4  ;;  %551 = vst.msk [vmem:[#allocation2 + $0x44] sm:$0xf] %vm533_vm4, %v2668_v1 }
  0x24   : > { %1013 = vrot.lane.b32.xlu1 %v499_v14, %s2667_s20  ;;  %v2824_v14 = vpack.c.bf16 %v421_v11, %v421_v11  ;;  %v2846_v30 = vor.u32 %v801_v25, %v2838_v24  ;;  %v1280_v42 = vrot.slane %v4033_v22, 4  ;;  %v1278_v43 = vrot.slane %v4032_v29, 5  ;;  %552 = vst.msk [vmem:[#allocation2 + $0x48] sm:$0xf] %vm533_vm4, %v2668_v1 }
  0x25   : > { %1325 = vrot.lane.b32.xlu0 %v1174_v54, %s2669_s25  ;;  %1327 = vrot.lane.b32.xlu2 %v1180_v58, %s2669_s25  ;;  %v1191_v45 = vor.u32 %v1190_v35, %v1188_v32  ;;  %v1275_v48 = vrot.slane %v785_v40, 5  ;;  %v1187_v50 = vrot.slane %v1186_v41, 4  ;;  %v2870_v53 = vpack.c.bf16 %v423_v49, %v423_v49  ;;  %553 = vst.msk [vmem:[#allocation2 + $0x4c] sm:$0xf] %vm533_vm4, %v2668_v1 }
  0x26   : > { %v638_v20 = vshrl.u32 %v2824_v14, 16  ;;  %v641_v28 = vshll.u32 %v2824_v14, 16  ;;  %v1281_v51 = vor.u32 %v1280_v42, %v1278_v43  ;;  %v2894_v17 = vpack.c.bf16 %v442_v7, %v442_v7  ;;  %v443_v42 = vld [vmem:[%s2731_s24 + $0xe0] sm:$0xff]  ;;  %554 = vst.msk [vmem:[#allocation2 + $0x50] sm:$0xf] %vm533_vm4, %v2668_v1 }
  0x27   : > { %v654_v54 = vshrl.u32 %v2870_v53, 16  ;;  %v1192_v57 = vrot.slane %v1191_v45, 4  ;;  %v1276_v58 = vor.u32 %v1275_v48, %v1274_v47  ;;  %v1189_v59 = vsel %vm2786_vm2, %v1187_v50, %v1188_v32  ;;  %555 = vst.msk [vmem:[#allocation2 + $0x54] sm:$0xf] %vm533_vm4, %v2668_v1 }
  0x28   : > { %v2841_v26 = vrot.slane %v638_v20, 7  ;;  %v1282_v34 = vrot.slane %v1281_v51, 4  ;;  %v657_v40 = vshll.u32 %v2870_v53, 16  ;;  %v1197_v21 = vrot.slane %v649_v4, 5  ;;  %556 = vst.msk [vmem:[#allocation2 + $0x58] sm:$0xf] %vm533_vm4, %v2668_v1 }
  0x29   : > { %v1277_v9 = vrot.slane %v1276_v58, 4  ;;  %v1199_v32 = vrot.slane %v646_v61, 4  ;;  %v2903_v45 = vpack.c.bf16 %v443_v42, %v443_v42  ;;  %v4029_v48 = vshll.u32 %v2894_v17, 16  ;;  %v424_v42 = vld [vmem:[%s2731_s24 + $0x48] sm:$0xff]  ;;  %557 = vst.msk [vmem:[#allocation2 + $0x5c] sm:$0xf] %vm533_vm4, %v2668_v1 }
  0x2a   : > { %v2853_v37 = vor.u32 %v641_v28, %v2841_v26  ;;  %v4030_v4 = vshrl.u32 %v2894_v17, 16  ;;  %v1283_v49 = vrot.slane %v798_v16, 4  ;;  %v1284_v50 = vrot.slane %v801_v25, 5  ;;  %558 = vst.msk [vmem:[#allocation2 + $0x60] sm:$0xf] %vm533_vm4, %v2668_v1 }
  0x2b   : > { %v1279_v41 = vsel %vm2786_vm2, %v1277_v9, %v1278_v43  ;;  %v1200_v47 = vor.u32 %v1199_v32, %v1197_v21  ;;  %v814_v61 = vshrl.u32 %v2903_v45, 16  ;;  %v817_v51 = vshll.u32 %v2903_v45, 16  ;;  %559 = vst.msk [vmem:[#allocation2 + $0x64] sm:$0xf] %vm533_vm4, %v2668_v1 }
  0x2c   : > { %1319 = vrot.lane.b32.xlu1 %v2816_v10, %s2669_s25  ;;  %v1194_v58 = vrot.slane %v641_v28, 5  ;;  %v1289_v16 = vrot.slane %v4030_v4, 4  ;;  %v445_v28 = vld [vmem:[%s2731_s24 + $0xf0] sm:$0xff]  ;;  %560 = vst.msk [vmem:[#allocation2 + $0x68] sm:$0xf] %vm533_vm4, %v2668_v1  ;;  %vm2080_vm0 = vcmask 64512  }
  0x2d   : > { %1023 = vrot.lane.b32.xlu0 %v2806_v6, %s2667_s20  ;;  %1323 = vrot.lane.b32.xlu2 %v1171_v13, %s2669_s25  ;;  %v2913_v43 = vrot.slane %v814_v61, 7  ;;  %v2929_v9 = vpack.c.bf16 %v445_v28, %v445_v28  ;;  %v1292_v0 = vrot.slane %v814_v61, 4  ;;  %561 = vst.msk [vmem:[#allocation2 + $0x6c] sm:$0xf] %vm533_vm4, %v2668_v1  ;;  %vm2150_vm1 = vcmask 57344  }
  0x2e   : > { %562 = vst.msk [vmem:[#allocation2 + $0x70] sm:$0xf] %vm533_vm4, %v2668_v1 }
  0x2f   : > { %v2921_v25 = vor.u32 %v817_v51, %v2913_v43  ;;  %v830_v32 = vshrl.u32 %v2929_v9, 16  ;;  %563 = vst.msk [vmem:[#allocation2 + $0x74] sm:$0xf] %vm533_vm4, %v2668_v1 }
  0x30   : > { %564 = vst.msk [vmem:[#allocation2 + $0x78] sm:$0xf] %vm533_vm4, %v2668_v1 }
  0x31   : > { %565 = vst.msk [vmem:[#allocation2 + $0x7c] sm:$0xf] %vm533_vm4, %v2668_v1 }
  0x32   : > { %566 = vst.msk [vmem:[#allocation2 + $0x80] sm:$0xf] %vm533_vm4, %v2668_v1 }
  0x33   : > { %567 = vst.msk [vmem:[#allocation2 + $0x84] sm:$0xf] %vm533_vm4, %v2668_v1 }
  0x34   : > { %1063 = vrot.lane.b32.xlu1 %v2826_v15, %s2667_s20  ;;  %568 = vst.msk [vmem:[#allocation2 + $0x88] sm:$0xf] %vm533_vm4, %v2668_v1 }
  0x35   : > { %1061 = vrot.lane.b32.xlu0 %v2744_v18, %s2667_s20  ;;  %1021 = vrot.lane.b32.xlu2 %v2769_v44, %s2667_s20  ;;  %v2877_v18 = vrot.slane %v654_v54, 7  ;;  %v2881_v44 = vpack.c.bf16 %v444_v62, %v444_v62  ;;  %v1285_v62 = vor.u32 %v1284_v50, %v1283_v49  ;;  %v833_v50 = vshll.u32 %v2929_v9, 16  ;;  %569 = vst.msk [vmem:[#allocation2 + $0x8c] sm:$0xf] %vm533_vm4, %v2668_v1 }
  0x37   : > { %v2886_v63 = vor.u32 %v657_v40, %v2877_v18  ;;  %v822_v2 = vshrl.u32 %v2881_v44, 16  ;;  %v825_v13 = vshll.u32 %v2881_v44, 16  ;;  %v1286_v7 = vrot.slane %v1285_v62, 4 }
  0x39   : > { %v824_v11 = vrot.slane %v822_v2, 7  ;;  %v2964_v28 = vrot.slane %v825_v13, 5 }
  0x3b   : > { %v2898_v35 = vor.u32 %v825_v13, %v824_v11  ;;  %v1203_v13 = vrot.slane %v657_v40, 5 }
  0x3c   : > { %1333 = vrot.lane.b32.xlu1 %v1192_v57, %s2669_s25  ;;  %v1193_v57 = vrot.slane %v638_v20, 4 }
  0x3d   : > { %1331 = vrot.lane.b32.xlu0 %v1189_v59, %s2669_s25  ;;  %1373 = vrot.lane.b32.xlu2 %v1282_v34, %s2669_s25  ;;  %v1201_v59 = vrot.slane %v1200_v47, 4  ;;  %v1287_v34 = vrot.slane %v4029_v48, 5  ;;  %v425_v47 = vld [vmem:[%s2731_s24 + $0x50] sm:$0xff] }
  0x3f   : > { %v1290_v20 = vor.u32 %v1289_v16, %v1287_v34  ;;  %v1288_v49 = vsel %vm2786_vm2, %v1286_v7, %v1287_v34  ;;  %v1298_v7 = vrot.slane %v822_v2, 4  ;;  %v1202_v2 = vrot.slane %v654_v54, 4 }
  0x41   : > { %v1204_v40 = vor.u32 %v1203_v13, %v1202_v2  ;;  %v428_v2 = vld [vmem:[%s2731_s24 + $0x68] sm:$0xff] }
  0x44   : > { %1371 = vrot.lane.b32.xlu1 %v1279_v41, %s2669_s25  ;;  %v1291_v41 = vrot.slane %v1290_v20, 4 }
  0x45   : > { %1067 = vrot.lane.b32.xlu0 %v2894_v17, %s2667_s20  ;;  %1027 = vrot.lane.b32.xlu2 %v2796_v60, %s2667_s20  ;;  %v1195_v60 = vor.u32 %v1194_v58, %v1193_v57  ;;  %v2941_v57 = vpack.c.bf16 %v425_v47, %v425_v47  ;;  %v2945_v58 = vpack.c.bf16 %v424_v42, %v424_v42 }
  0x46   : > { %v1299_v47 = vor.u32 %v1298_v7, %v2964_v28 }
  0x47   : > { %v1196_v11 = vrot.slane %v1195_v60, 4  ;;  %v670_v34 = vshrl.u32 %v2941_v57, 16  ;;  %v4028_v16 = vshrl.u32 %v2945_v58, 16  ;;  %v4025_v60 = vshll.u32 %v2945_v58, 16 }
  0x48   : > { %v1300_v54 = vrot.slane %v1299_v47, 4  ;;  %v426_v47 = vld [vmem:[%s2731_s24 + $0x58] sm:$0xff] }
  0x49   : > { %v2957_v62 = vrot.slane %v670_v34, 7  ;;  %v1206_v42 = vrot.slane %v4025_v60, 5  ;;  %v1293_v60 = vrot.slane %v817_v51, 5  ;;  %v612_v51 = vrot.slane %v2746_v23, 4 }
  0x4b   : > { %v1294_v61 = vor.u32 %v1293_v60, %v1292_v0  ;;  %v1205_v0 = vrot.slane %v1204_v40, 4  ;;  %v3020_v23 = vsel %vm2987_vm6, %v612_v51, %v2762_v38  ;;  %v3029_v60 = vpack.c.bf16 %v426_v47, %v426_v47  ;;  %v446_v38 = vld [vmem:[%s2731_s24 + $0xf8] sm:$0xff]  ;;  %v427_v51 = vld [vmem:[%s2731_s24 + $0x60] sm:$0xff] }
  0x4c   : > { %1025 = vrot.lane.b32.xlu1 %v2824_v14, %s2667_s20  ;;  %v2938_v14 = vrot.slane %v830_v32, 7  ;;  %v3048_v40 = vpack.c.bf16 %v428_v2, %v428_v2  ;;  %912 = vst.msk [vmem:[#allocation2 + $0x14] sm:$0xf] %vm897_vm7, %v3020_v23  ;;  %v4072_v23 = vshll.u32 %v2826_v15, 16 }
  0x4d   : > { %1337 = vrot.lane.b32.xlu0 %v1201_v59, %s2669_s25  ;;  %1065 = vrot.lane.b32.xlu2 %v2819_v12, %s2667_s20  ;;  %v1198_v12 = vsel %vm2786_vm2, %v1196_v11, %v1197_v21  ;;  %v673_v21 = vshll.u32 %v2941_v57, 16  ;;  %v1208_v11 = vrot.slane %v4028_v16, 4  ;;  %v4026_v13 = vshll.u32 %v3029_v60, 16 }
  0x4e   : > { %v2950_v59 = vor.u32 %v833_v50, %v2938_v14 }
  0x4f   : > { %v2962_v20 = vor.u32 %v673_v21, %v2957_v62 }
  0x54   : > { %1377 = vrot.lane.b32.xlu1 %v1291_v41, %s2669_s25  ;;  %v2969_v41 = vrot.slane %v2668_v1, 7 }
  0x55   : > { %1375 = vrot.lane.b32.xlu0 %v1288_v49, %s2669_s25  ;;  %1335 = vrot.lane.b32.xlu2 %v1198_v12, %s2669_s25  ;;  %v1209_v49 = vor.u32 %v1208_v11, %v1206_v42  ;;  %v596_v11 = vrot.slane %v2750_v27, 4 }
  0x56   : > { %v580_v12 = vrot.slane %v2969_v41, 4 }
  0x57   : > { %v3025_v27 = vsel %vm2987_vm6, %v596_v11, %v2755_v33  ;;  %v1207_v33 = vsel %vm2786_vm2, %v1205_v0, %v1206_v42  ;;  %v1212_v42 = vrot.slane %v673_v21, 5  ;;  %v4034_v0 = vshrl.u32 %v3048_v40, 16 }
  0x58   : > { %908 = vst.msk [vmem:[#allocation2 + $0xc] sm:$0xf] %vm897_vm7, %v3025_v27 }
  0x5c   : > { %1031 = vrot.lane.b32.xlu1 %v2945_v58, %s2667_s20 }
  0x5d   : > { %1029 = vrot.lane.b32.xlu0 %v2870_v53, %s2667_s20  ;;  %1071 = vrot.lane.b32.xlu2 %v2881_v44, %s2667_s20  ;;  %v2994_v53 = vsel %vm2987_vm6, %v580_v12, %v2969_v41  ;;  %v1210_v44 = vrot.slane %v1209_v49, 4  ;;  %v1211_v49 = vrot.slane %v670_v34, 4  ;;  %v4027_v12 = vshrl.u32 %v3029_v60, 16  ;;  %v437_v34 = vld [vmem:[%s2731_s24 + $0xb0] sm:$0xff] }
  0x5e   : > { %904 = vst.msk [vmem:[#allocation2 + $0x4] sm:$0xf] %vm897_vm7, %v2994_v53  ;;  %v3068_v11 = vpack.c.bf16 %v437_v34, %v437_v34 }
  0x5f   : > { %v1213_v2 = vor.u32 %v1212_v42, %v1211_v49  ;;  %972 = vst.msk [vmem:[#allocation2 + $0x8c] sm:$0xf] %vm897_vm7, %v2994_v53 }
  0x61   : > { %v1214_v29 = vrot.slane %v1213_v2, 4 }
  0x64   : > { %1069 = vrot.lane.b32.xlu1 %v2903_v45, %s2667_s20  ;;  %v1295_v45 = vrot.slane %v1294_v61, 4  ;;  %v438_v61 = vld [vmem:[%s2731_s24 + $0xb8] sm:$0xff] }
  0x65   : > { %1381 = vrot.lane.b32.xlu0 %v1300_v54, %s2669_s25  ;;  %1341 = vrot.lane.b32.xlu2 %v1210_v44, %s2669_s25  ;;  %v3050_v44 = vpack.c.bf16 %v446_v38, %v446_v38  ;;  %v3072_v47 = vpack.c.bf16 %v438_v61, %v438_v61  ;;  %v1215_v38 = vrot.slane %v4026_v13, 5  ;;  %v696_v61 = vrot.slane %v4034_v0, 7 }
  0x66   : > { %v1297_v54 = vsel %vm2786_vm2, %v1295_v45, %v2964_v28  ;;  %v3075_v45 = vpack.c.bf16 %v427_v51, %v427_v51  ;;  %v697_v51 = vshll.u32 %v3048_v40, 16 }
  0x67   : > { %v4031_v28 = vshrl.u32 %v3050_v44, 16  ;;  %v4036_v42 = vshrl.u32 %v3072_v47, 16  ;;  %v4038_v13 = vshll.u32 %v3072_v47, 16 }
  0x68   : > { %v4039_v49 = vshrl.u32 %v3075_v45, 16  ;;  %v3101_v16 = vor.u32 %v697_v51, %v696_v61  ;;  %v4037_v4 = vshll.u32 %v3075_v45, 16 }
  0x69   : > { %v1307_v34 = vrot.slane %v4031_v28, 4  ;;  %v776_v28 = vrot.slane %v4036_v42, 7  ;;  %v2565_v42 = vld [vmem:[%s4020_s3 + $0x10] sm:$0xf] }
  0x6a   : > { %4052 = vst [vmem:[#allocation4_spill] sm:$0xff] %v3101_v16  ;;  %v3105_v48 = vrot.slane %v4039_v49, 7  ;;  %v2610_v49 = vld [vmem:[%s4020_s3 + $0x10] sm:$0x30] }
  0x6c   : > { %1339 = vrot.lane.b32.xlu1 %v1207_v33, %s2669_s25  ;;  %v1217_v33 = vrot.slane %v4027_v12, 4  ;;  %v4040_v12 = vshrl.u32 %v3068_v11, 16  ;;  %4053 = vst [vmem:[#allocation5_spill] sm:$0xff] %v3105_v48  ;;  %v3125_v2 = vor.u32 %v4037_v4, %v3105_v48  ;;  %v1301_v4 = vrot.slane %v830_v32, 4 }
  0x6d   : > { %1035 = vrot.lane.b32.xlu0 %v3029_v60, %s2667_s20  ;;  %1379 = vrot.lane.b32.xlu2 %v1297_v54, %s2669_s25  ;;  %v3065_v21 = vpop.permute.xlu2 %1321  ;;  %v4035_v54 = vshll.u32 %v3050_v44, 16 }
  0x6e   : > { %v1218_v22 = vor.u32 %v1217_v33, %v1215_v38  ;;  %4054 = vst [vmem:[#allocation6_spill] sm:$0xff] %v3125_v2  ;;  %v3129_v33 = vor.u32 %v4038_v13, %v776_v28  ;;  %v3133_v61 = vrot.slane %v4040_v12, 7  ;;  %v1302_v28 = vrot.slane %v833_v50, 5 }
  0x6f   : > { %v3114_v0 = vrot.slane %v4035_v54, 5  ;;  %v4041_v54 = vshll.u32 %v3068_v11, 16  ;;  %v632_v50 = vrot.slane %v630_v19, 7  ;;  %v430_v19 = vld [vmem:[%s2731_s24 + $0x78] sm:$0xff] }
  0x70   : > { %4055 = vst [vmem:[#allocation7_spill] sm:$0xff] %v3129_v33  ;;  %v905_v33 = vld [vmem:[#allocation2 + $0x8] sm:$0xf] }
  0x71   : > { %4056 = vst [vmem:[#allocation8_spill] sm:$0xff] %v3133_v61  ;;  %v1308_v13 = vor.u32 %v1307_v34, %v3114_v0  ;;  %v3156_v12 = vor.u32 %v4041_v54, %v3133_v61  ;;  %v1216_v54 = vsel %vm2786_vm2, %v1214_v29, %v1215_v38  ;;  %v3184_v29 = vpack.c.bf16 %v430_v19, %v430_v19  ;;  %v2515_v38 = vld [vmem:[%s4020_s3 + $0x8] sm:$0xf] }
  0x73   : > { %4057 = vst [vmem:[#allocation9_spill] sm:$0xff] %v3156_v12  ;;  %v4066_v53 = vshll.u32 %v3184_v29, 16 }
  0x74   : > { %1075 = vrot.lane.b32.xlu1 %v3050_v44, %s2667_s20 }
  0x75   : > { %1073 = vrot.lane.b32.xlu0 %v2929_v9, %s2667_s20  ;;  %1033 = vrot.lane.b32.xlu2 %v2941_v57, %s2667_s20  ;;  %v2566_v9 = vor.u32 %v2610_v49, %v2565_v42  ;;  %v1219_v57 = vrot.slane %v1218_v22, 4  ;;  %v1303_v49 = vor.u32 %v1302_v28, %v1301_v4  ;;  %v1309_v42 = vrot.slane %v1308_v13, 4  ;;  %v429_v22 = vld [vmem:[%s2731_s24 + $0x70] sm:$0xff]  ;;  %v2609_v28 = vld [vmem:[%s4020_s3 + $0x8] sm:$0x30] }
  0x76   : > { %v628_v4 = vrot.slane %v2782_v52, 4  ;;  %v635_v13 = vor.u32 %v633_v3, %v632_v50  ;;  %v2516_v3 = vor.u32 %v2609_v28, %v2515_v38  ;;  %v3209_v50 = vrot.slane %v697_v51, 5 }
  0x77   : > { %v3160_v32 = vpop.permute.xlu2 %1329  ;;  %v3167_v34 = vsel %vm1677_vm8, %v2566_v9, 0  ;;  %v3198_v9 = vpack.c.bf16 %v429_v22, %v429_v22  ;;  %v4043_v22 = vshrl.u32 %v3184_v29, 16 }
  0x78   : > { %1901 = vmatpush.bf16.msra.mxu2 %v3167_v34  ;;  %v3204_v6 = vsel %vm2987_vm6, %v628_v4, %v635_v13  ;;  %v1679_v19 = vsel %vm1677_vm8, %v2516_v3, 0  ;;  %v4059_v13 = vshrl.u32 %v2826_v15, 16  ;;  %v4073_v15 = vshll.u32 %v3072_v47, 16 }
  0x79   : > { %v4042_v4 = vshrl.u32 %v3198_v9, 16  ;;  %1688 = vmatpush.bf16.msra.mxu0 %v1679_v19  ;;  %2611 = vmatpush.bf16.msra.mxu3 %v1679_v19  ;;  %v712_v28 = vrot.slane %v4043_v22, 7  ;;  %v909_v19 = vld [vmem:[#allocation2 + $0x10] sm:$0xf]  ;;  %v4064_v22 = vshrl.u32 %v3068_v11, 16 }
  0x7a   : > { %v792_v38 = vrot.slane %v4059_v13, 7  ;;  %v2539_v13 = vld [vmem:[%s4020_s3] sm:$0xf]  ;;  %916 = vst.msk [vmem:[#allocation2 + $0x1c] sm:$0xf] %vm897_vm7, %v3204_v6  ;;  %v4077_v6 = vshrl.u32 %v3184_v29, 16 }
  0x7b   : > { %v3234_v3 = vrot.slane %v4042_v4, 7  ;;  %v2608_v4 = vld [vmem:[%s4020_s3] sm:$0x30]  ;;  %v3269_v12 = vor.u32 %v4066_v53, %v712_v28 }
  0x7c   : > { %1345 = vrot.lane.b32.xlu1 %v1219_v57, %s2669_s25  ;;  %v4058_v57 = vshrl.u32 %v3048_v40, 16  ;;  %v2540_v28 = vor.u32 %v2608_v4, %v2539_v13 }
  0x7d   : > { %1343 = vrot.lane.b32.xlu0 %v1216_v54, %s2669_s25  ;;  %v1304_v54 = vrot.slane %v1303_v49, 4  ;;  %1385 = vrot.lane.b32.xlu2 %v1309_v42, %s2669_s25  ;;  %4067 = vst [vmem:[#allocation10_spill] sm:$0xff] %v3269_v12 }
  0x7e   : > { %v1226_v49 = vrot.slane %v4058_v57, 4  ;;  %v1265_v57 = vrot.slane %v4064_v22, 4  ;;  %v4070_v22 = vshrl.u32 %v3075_v45, 16  ;;  %v1784_v27 = vsel %vm1677_vm8, %v2540_v28, 0 }
  0x7f   : > { %v1012_v52 = vpop.permute.xlu0 %1011  ;;  %v3213_v42 = vpop.permute.xlu2 %1327  ;;  %v1306_v51 = vsel %vm2786_vm2, %v1304_v54, %v3114_v0  ;;  %1793 = vmatpush.bf16.msra.mxu1 %v1784_v27  ;;  %2612 = vmatpush.bf16.msrb.mxu3 %v1784_v27  ;;  %v906_v28 = vsel %vm3259_vm13, %v2760_v36, %v905_v33 }
  0x80   : > { %1119 = vst.msk [vmem:[#allocation2 + $0x4] sm:$0xf] %vm1117_vm9, %v1012_v52  ;;  %v1227_v54 = vor.u32 %v1226_v49, %v3209_v50  ;;  %v900_v49 = vld [vmem:[#allocation2] sm:$0xf]  ;;  %v4065_v52 = vshll.u32 %v3068_v11, 16  ;;  %v1220_v16 = vrot.slane %v4070_v22, 4 }
  0x81   : > { %v901_v4 = vsel %vm3259_vm13, %v2969_v41, %v900_v49  ;;  %907 = vst [vmem:[#allocation2 + $0x8] sm:$0xf] %v906_v28 }
  0x82   : > { %v1266_v2 = vrot.slane %v4065_v52, 5  ;;  %v4071_v52 = vshll.u32 %v3075_v45, 16  ;;  %v1228_v22 = vrot.slane %v1227_v54, 4  ;;  %v913_v54 = vld [vmem:[#allocation2 + $0x18] sm:$0xf] }
  0x83   : > { %902 = vst [vmem:[#allocation2] sm:$0xf] %v901_v4 }
  0x84   : > { %1383 = vrot.lane.b32.xlu1 %v1306_v51, %s2669_s25  ;;  %v4068_v51 = vshll.u32 %v3198_v9, 16  ;;  %v1221_v61 = vrot.slane %v4071_v52, 5  ;;  %v1267_v52 = vor.u32 %v1266_v2, %v1265_v57  ;;  %v4075_v2 = vshrl.u32 %v2894_v17, 16 }
  0x85   : > { %1059 = vrot.lane.b32.xlu0 %v3072_v47, %s2667_s20  ;;  %1039 = vrot.lane.b32.xlu2 %v3048_v40, %s2667_s20 }
  0x86   : > { %v3274_v10 = vor.u32 %v4068_v51, %v3234_v3  ;;  %v1016_v48 = vpop.permute.xlu1 %1015  ;;  %v788_v51 = vrot.slane %v2766_v39, 4  ;;  %v910_v39 = vsel %vm3259_vm13, %v2753_v31, %v909_v19  ;;  %v1222_v31 = vor.u32 %v1221_v61, %v1220_v16  ;;  %v432_v19 = vld [vmem:[%s2731_s24 + $0x88] sm:$0xff] }
  0x87   : > { %v1431_v53 = vld [vmem:[#allocation2 + $0x4] sm:$0xf]  ;;  %v1020_v12 = vpop.permute.xlu0 %1019  ;;  %v3296_v13 = vpop.permute.xlu2 %1323  ;;  %1121 = vst.msk [vmem:[#allocation2 + $0xc] sm:$0xf] %vm1117_vm9, %v1016_v48  ;;  %v3319_v48 = vpack.c.bf16 %v432_v19, %v432_v19  ;;  %v808_v36 = vrot.slane %v4075_v2, 7  ;;  %v1268_v16 = vrot.slane %v1267_v52, 4 }
  0x88   : > { %4069 = vst [vmem:[#allocation11_spill] sm:$0xff] %v3274_v10  ;;  %v795_v10 = vor.u32 %v4072_v23, %v792_v38  ;;  %v1432_v40 = vsel %vm3239_vm12, %v3065_v21, %v1431_v53  ;;  %v1269_v21 = vrot.slane %v4073_v15, 5  ;;  %v644_v15 = vrot.slane %v2841_v26, 4 }
  0x89   : > { %1123 = vst.msk [vmem:[#allocation2 + $0x14] sm:$0xf] %vm1117_vm9, %v1020_v12  ;;  %v4074_v12 = vshrl.u32 %v3072_v47, 16  ;;  %v914_v47 = vsel %vm3259_vm13, %v2791_v56, %v913_v54  ;;  %v1223_v56 = vrot.slane %v1222_v31, 4  ;;  %v726_v4 = vshrl.u32 %v3319_v48, 16 }
  0x8a   : > { %1433 = vst [vmem:[#allocation2 + $0x4] sm:$0xf] %v1432_v40  ;;  %v796_v49 = vsel %vm2987_vm6, %v788_v51, %v795_v10  ;;  %v1270_v27 = vsel %vm2786_vm2, %v1268_v16, %v1269_v21  ;;  %v729_v54 = vshll.u32 %v3319_v48, 16  ;;  %v804_v52 = vrot.slane %v2838_v24, 4 }
  0x8b   : > { %v1271_v38 = vrot.slane %v4074_v12, 4  ;;  %911 = vst [vmem:[#allocation2 + $0x10] sm:$0xf] %v910_v39  ;;  %v431_v12 = vld [vmem:[%s2731_s24 + $0x80] sm:$0xff] }
  0x8c   : > { %1037 = vrot.lane.b32.xlu1 %v3075_v45, %s2667_s20  ;;  %915 = vst [vmem:[#allocation2 + $0x18] sm:$0xf] %v914_v47  ;;  %v953_v45 = vld [vmem:[#allocation2 + $0x68] sm:$0xf]  ;;  %v4080_v47 = vshll.u32 %v3198_v9, 16 }
  0x8d   : > { %1349 = vrot.lane.b32.xlu0 %v1228_v22, %s2669_s25  ;;  %v1272_v10 = vor.u32 %v1271_v38, %v1269_v21  ;;  %1057 = vrot.lane.b32.xlu2 %v3068_v11, %s2667_s20  ;;  %v4076_v11 = vshll.u32 %v3184_v29, 16  ;;  %v1235_v22 = vrot.slane %v4077_v6, 4  ;;  %v954_v39 = vsel %vm3259_vm13, %v2778_v46, %v953_v45  ;;  %956 = vst.msk [vmem:[#allocation2 + $0x6c] sm:$0xf] %vm897_vm7, %v796_v49 }
  0x8e   : > { %v1018_v57 = vpop.permute.xlu1 %1017  ;;  %v728_v38 = vrot.slane %v726_v4, 7  ;;  %v4078_v21 = vshll.u32 %v2894_v17, 16  ;;  %v652_v46 = vsel %vm2987_vm6, %v644_v15, %v2809_v8  ;;  %955 = vst [vmem:[#allocation2 + $0x68] sm:$0xf] %v954_v39  ;;  %v4079_v17 = vshrl.u32 %v3198_v9, 16 }
  0x8f   : > { %v1010_v61 = vpop.permute.xlu0 %1009  ;;  %v1022_v51 = vpop.permute.xlu2 %1021  ;;  %v1273_v23 = vrot.slane %v1272_v10, 4  ;;  %v3333_v40 = vrot.slane %v4076_v11, 5  ;;  %1122 = vst.msk [vmem:[#allocation2 + $0x10] sm:$0xf] %vm1117_vm9, %v1018_v57  ;;  %v1230_v8 = vrot.slane %v4080_v47, 5  ;;  %v433_v11 = vld [vmem:[%s2731_s24 + $0x90] sm:$0xff] }
  0x90   : > { %v1439_v33 = vld [vmem:[#allocation2 + $0x14] sm:$0xf]  ;;  %1118 = vst.msk [vmem:[#allocation2] sm:$0xf] %vm1117_vm9, %v1010_v61  ;;  %v811_v28 = vor.u32 %v4078_v21, %v808_v36  ;;  %v1229_v31 = vrot.slane %v4079_v17, 4  ;;  %v3408_v39 = vrot.slane %v729_v54, 5 }
  0x91   : > { %v1440_v53 = vsel %vm3239_vm12, %v3160_v32, %v1439_v33  ;;  %v1225_v32 = vsel %vm2786_vm2, %v1223_v56, %v3209_v50  ;;  %1438 = vst.msk [vmem:[#allocation2 + $0x10] sm:$0xf] %vm1427_vm10, %v3213_v42  ;;  %v3359_v50 = vpack.c.bf16 %v431_v12, %v431_v12  ;;  %v1236_v26 = vor.u32 %v1235_v22, %v3333_v40  ;;  %v1435_v2 = vld [vmem:[#allocation2 + $0xc] sm:$0xf]  ;;  %v957_v57 = vld [vmem:[#allocation2 + $0x70] sm:$0xf] }
  0x92   : > { %1441 = vst [vmem:[#allocation2 + $0x14] sm:$0xf] %v1440_v53  ;;  %v3364_v42 = vor.u32 %v729_v54, %v728_v38  ;;  %v812_v24 = vsel %vm2987_vm6, %v804_v52, %v811_v28  ;;  %v1231_v53 = vor.u32 %v1230_v8, %v1229_v31  ;;  %v1244_v15 = vrot.slane %v726_v4, 4  ;;  %v434_v54 = vld [vmem:[%s2731_s24 + $0x98] sm:$0xff] }
  0x93   : > { %1124 = vst.msk [vmem:[#allocation2 + $0x18] sm:$0xf] %vm1117_vm9, %v1022_v51  ;;  %v718_v19 = vshrl.u32 %v3359_v50, 16  ;;  %v721_v49 = vshll.u32 %v3359_v50, 16  ;;  %v1237_v61 = vrot.slane %v1236_v26, 4 }
  0x94   : > { %1369 = vrot.lane.b32.xlu1 %v1273_v23, %s2669_s25  ;;  %920 = vst.msk [vmem:[#allocation2 + $0x24] sm:$0xf] %vm897_vm7, %v652_v46  ;;  %v958_v23 = vsel %vm3259_vm13, %v2846_v30, %v957_v57  ;;  %v1232_v6 = vrot.slane %v1231_v53, 4  ;;  %v436_v53 = vld [vmem:[%s2731_s24 + $0xa8] sm:$0xff] }
  0x95   : > { %1367 = vrot.lane.b32.xlu0 %v1270_v27, %s2669_s25  ;;  %1347 = vrot.lane.b32.xlu2 %v1225_v32, %s2669_s25  ;;  %v3383_v33 = vrot.slane %v718_v19, 7  ;;  %960 = vst.msk [vmem:[#allocation2 + $0x74] sm:$0xf] %vm897_vm7, %v812_v24  ;;  %v917_v27 = vld [vmem:[#allocation2 + $0x20] sm:$0xf]  ;;  %v3436_v24 = vpack.c.bf16 %v434_v54, %v434_v54 }
  0x96   : > { %v1014_v36 = vpop.permute.xlu1 %1013  ;;  %959 = vst [vmem:[#allocation2 + $0x70] sm:$0xf] %v958_v23  ;;  %v1234_v52 = vsel %vm2786_vm2, %v1232_v6, %v3333_v40  ;;  %v921_v23 = vld [vmem:[#allocation2 + $0x28] sm:$0xf] }
  0x97   : > { %v1326_v10 = vpop.permute.xlu0 %1325  ;;  %1120 = vst.msk [vmem:[#allocation2 + $0x8] sm:$0xf] %vm1117_vm9, %v1014_v36  ;;  %v3379_v56 = vpop.permute.xlu2 %1373  ;;  %v3391_v51 = vor.u32 %v721_v49, %v3383_v33  ;;  %v745_v8 = vshll.u32 %v3436_v24, 16  ;;  %v4081_v36 = vshrl.u32 %v2945_v58, 16 }
  0x98   : > { %v1436_v16 = vsel %vm3239_vm12, %v1326_v10, %v1435_v2  ;;  %1434 = vst.msk [vmem:[#allocation2 + $0x8] sm:$0xf] %vm1427_vm10, %v3296_v13  ;;  %v3403_v13 = vpack.c.bf16 %v433_v11, %v433_v11  ;;  %v820_v2 = vrot.slane %v2913_v43, 4  ;;  %v3453_v43 = vpack.c.bf16 %v436_v53, %v436_v53  ;;  %v435_v11 = vld [vmem:[%s2731_s24 + $0xa0] sm:$0xff] }
  0x99   : > { %1437 = vst [vmem:[#allocation2 + $0xc] sm:$0xf] %v1436_v16  ;;  %v3388_v45 = vld [vmem:[#allocation2 + $0x10] sm:$0xff]  ;;  %v664_v16 = vrot.slane %v4081_v36, 7 }
  0x9a   : > { %2567 = vmatmul.msk.bf16.vlgmr.msra.gmra.mxu2 %vm1628_vm14, %v3388_v45  ;;  %v737_v38 = vshll.u32 %v3403_v13, 16  ;;  %v828_v57 = vsel %vm2987_vm6, %v820_v2, %v2898_v35  ;;  %v1251_v35 = vrot.slane %v745_v8, 5 }
  0x9b   : > { %964 = vst.msk [vmem:[#allocation2 + $0x7c] sm:$0xf] %vm897_vm7, %v828_v57 }
  0x9c   : > { %1043 = vrot.lane.b32.xlu1 %v3184_v29, %s2667_s20  ;;  %v918_v29 = vsel %vm3259_vm13, %v2853_v37, %v917_v27  ;;  %v1245_v37 = vor.u32 %v1244_v15, %v3408_v39  ;;  %v1248_v28 = vrot.slane %v737_v38, 5 }
  0x9d   : > { %1353 = vrot.lane.b32.xlu0 %v1237_v61, %s2669_s25  ;;  %1041 = vrot.lane.b32.xlu2 %v3198_v9, %s2667_s20  ;;  %v734_v9 = vshrl.u32 %v3403_v13, 16  ;;  %919 = vst [vmem:[#allocation2 + $0x20] sm:$0xf] %v918_v29  ;;  %v1239_v61 = vrot.slane %v721_v49, 5 }
  0x9e   : > { %v1320_v30 = vpop.permute.xlu1 %1319  ;;  %v1246_v31 = vrot.slane %v1245_v37, 4 }
  0x9f   : > { %v1024_v22 = vpop.permute.xlu0 %1023  ;;  %v1028_v32 = vpop.permute.xlu2 %1027  ;;  %1428 = vst.msk [vmem:[#allocation2] sm:$0xf] %vm1427_vm10, %v1320_v30  ;;  %v3424_v4 = vrot.slane %v734_v9, 7  ;;  %v1247_v40 = vrot.slane %v734_v9, 4  ;;  %v4082_v30 = vshll.u32 %v2945_v58, 16  ;;  %v758_v9 = vshrl.u32 %v3453_v43, 16 }
  0xa0   : > { %1125 = vst.msk [vmem:[#allocation2 + $0x1c] sm:$0xf] %vm1117_vm9, %v1024_v22  ;;  %v3414_v12 = vld [vmem:[#allocation2 + $0x8] sm:$0xff]  ;;  %v660_v22 = vrot.slane %v2877_v18, 4 }
  0xa1   : > { %1127 = vst.msk [vmem:[#allocation2 + $0x24] sm:$0xf] %vm1117_vm9, %v1028_v32  ;;  %2517 = vmatmul.msk.bf16.vlgmr.msra.gmra.mxu0 %vm1628_vm14, %v3414_v12  ;;  %v3432_v21 = vor.u32 %v737_v38, %v3424_v4  ;;  %v1249_v10 = vor.u32 %v1248_v28, %v1247_v40  ;;  %v667_v27 = vor.u32 %v4082_v30, %v664_v16  ;;  %v761_v38 = vshll.u32 %v3453_v43, 16  ;;  %v961_v16 = vld [vmem:[#allocation2 + $0x78] sm:$0xf] }
  0xa2   : > { %v3467_v32 = vpack.c.bf16 %v435_v11, %v435_v11 }
  0xa3   : > { %v1250_v49 = vrot.slane %v1249_v10, 4  ;;  %v668_v58 = vsel %vm2987_vm6, %v660_v22, %v667_v27  ;;  %v1260_v28 = vrot.slane %v761_v38, 5  ;;  %v4083_v10 = vshrl.u32 %v3029_v60, 16 }
  0xa4   : > { %1351 = vrot.lane.b32.xlu1 %v1234_v52, %s2669_s25  ;;  %924 = vst.msk [vmem:[#allocation2 + $0x2c] sm:$0xf] %vm897_vm7, %v668_v58  ;;  %v4084_v22 = vshll.u32 %v3029_v60, 16 }
  0xa5   : > { %1045 = vrot.lane.b32.xlu0 %v3359_v50, %s2667_s20  ;;  %1047 = vrot.lane.b32.xlu2 %v3319_v48, %s2667_s20  ;;  %v1238_v48 = vrot.slane %v718_v19, 4  ;;  %v922_v19 = vsel %vm3259_vm13, %v2886_v63, %v921_v23  ;;  %v680_v2 = vrot.slane %v4083_v10, 7 }
  0xa6   : > { %v1064_v26 = vpop.permute.xlu1 %1063  ;;  %v2590_v17 = vld [vmem:[#allocation2] sm:$0xff]  ;;  %923 = vst [vmem:[#allocation2 + $0x28] sm:$0xf] %v922_v19  ;;  %v760_v19 = vrot.slane %v758_v9, 7 }
  0xa7   : > { %v1062_v46 = vpop.permute.xlu0 %1061  ;;  %v1066_v47 = vpop.permute.xlu2 %1065  ;;  %1145 = vst.msk [vmem:[#allocation2 + $0x6c] sm:$0xf] %vm1117_vm9, %v1064_v26  ;;  %2541 = vmatmul.msk.bf16.vlgmr.msra.gmra.mxu1 %vm1628_vm14, %v2590_v17  ;;  %v1240_v50 = vor.u32 %v1239_v61, %v1238_v48  ;;  %v1443_v15 = vld [vmem:[#allocation2 + $0x1c] sm:$0xf]  ;;  %v1252_v26 = vsel %vm2786_vm2, %v1250_v49, %v1251_v35  ;;  %v750_v17 = vshrl.u32 %v3467_v32, 16  ;;  %v742_v61 = vshrl.u32 %v3436_v24, 16 }
  0xa8   : > { %1144 = vst.msk [vmem:[#allocation2 + $0x68] sm:$0xf] %vm1117_vm9, %v1062_v46  ;;  %v1262_v46 = vrot.slane %v758_v9, 4  ;;  %v683_v30 = vor.u32 %v4084_v22, %v680_v2  ;;  %v3515_v27 = vor.u32 %v761_v38, %v760_v19 }
  0xa9   : > { %1146 = vst.msk [vmem:[#allocation2 + $0x70] sm:$0xf] %vm1117_vm9, %v1066_v47  ;;  %v1241_v6 = vrot.slane %v1240_v50, 4  ;;  %v1253_v50 = vrot.slane %v742_v61, 4  ;;  %v3510_v11 = vrot.slane %v750_v17, 7 }
  0xab   : > { %v1243_v18 = vsel %vm2786_vm2, %v1241_v6, %v3408_v39  ;;  %v753_v39 = vshll.u32 %v3467_v32, 16  ;;  %v676_v6 = vrot.slane %v2957_v62, 4 }
  0xac   : > { %1357 = vrot.lane.b32.xlu1 %v1246_v31, %s2669_s25  ;;  %v1256_v31 = vrot.slane %v750_v17, 4 }
  0xad   : > { %1051 = vrot.lane.b32.xlu0 %v3436_v24, %s2667_s20  ;;  %1355 = vrot.lane.b32.xlu2 %v1243_v18, %s2669_s25  ;;  %v1257_v47 = vrot.slane %v753_v39, 5 }
  0xae   : > { %v1334_v29 = vpop.permute.xlu1 %1333  ;;  %v1483_v52 = vld [vmem:[#allocation2 + $0x6c] sm:$0xf] }
  0xaf   : > { %v1332_v63 = vpop.permute.xlu0 %1331  ;;  %v1444_v37 = vsel %vm3239_vm12, %v1334_v29, %v1443_v15  ;;  %v1336_v54 = vpop.permute.xlu2 %1335  ;;  %v1484_v40 = vsel %vm3239_vm12, %v3379_v56, %v1483_v52  ;;  %v1263_v56 = vor.u32 %v1262_v46, %v1260_v28  ;;  %v1258_v49 = vor.u32 %v1257_v47, %v1256_v31  ;;  %v925_v52 = vld [vmem:[#allocation2 + $0x30] sm:$0xf]  ;;  %v965_v46 = vld [vmem:[#allocation2 + $0x80] sm:$0xf] }
  0xb0   : > { %1442 = vst.msk [vmem:[#allocation2 + $0x18] sm:$0xf] %vm1427_vm10, %v1332_v63  ;;  %v1447_v63 = vld [vmem:[#allocation2 + $0x24] sm:$0xf] }
  0xb1   : > { %1445 = vst [vmem:[#allocation2 + $0x1c] sm:$0xf] %v1444_v37  ;;  %2518 = vmatmul.msk.bf16.gmra.mxu0 %vm1628_vm14, %v3388_v45  ;;  %v1264_v23 = vrot.slane %v1263_v56, 4  ;;  %v1259_v29 = vrot.slane %v1258_v49, 4  ;;  %v4085_v37 = vshrl.u32 %v3050_v44, 16  ;;  %v4092_v49 = vld [vmem:[#allocation3_spill] sm:$0xff] }
  0xb2   : > { %1485 = vst [vmem:[#allocation2 + $0x6c] sm:$0xf] %v1484_v40  ;;  %v926_v40 = vsel %vm3259_vm13, %v2962_v20, %v925_v52  ;;  %v4087_v20 = vshll.u32 %v3050_v44, 16 }
  0xb3   : > { %v840_v18 = vrot.slane %v4085_v37, 7  ;;  %v1261_v58 = vsel %vm2786_vm2, %v1259_v29, %v1260_v28  ;;  %927 = vst [vmem:[#allocation2 + $0x30] sm:$0xf] %v926_v40  ;;  %v836_v28 = vrot.slane %v2938_v14, 4 }
  0xb4   : > { %1049 = vrot.lane.b32.xlu1 %v3403_v13, %s2667_s20  ;;  %v962_v13 = vsel %vm3259_vm13, %v2921_v25, %v961_v16  ;;  %v1254_v25 = vor.u32 %v1253_v50, %v1251_v35  ;;  %v684_v35 = vsel %vm2987_vm6, %v676_v6, %v683_v30 }
  0xb5   : > { %1359 = vrot.lane.b32.xlu0 %v1252_v26, %s2669_s25  ;;  %963 = vst [vmem:[#allocation2 + $0x78] sm:$0xf] %v962_v13  ;;  %v843_v26 = vor.u32 %v4087_v20, %v840_v18 }
  0xb6   : > { %v1372_v36 = vpop.permute.xlu1 %1371  ;;  %v1255_v15 = vrot.slane %v1254_v25, 4  ;;  %928 = vst.msk [vmem:[#allocation2 + $0x34] sm:$0xf] %vm897_vm7, %v684_v35 }
  0xb7   : > { %v1068_v48 = vpop.permute.xlu0 %1067  ;;  %v1072_v53 = vpop.permute.xlu2 %1071  ;;  %1482 = vst.msk [vmem:[#allocation2 + $0x68] sm:$0xf] %vm1427_vm10, %v1372_v36  ;;  %2542 = vmatmul.msk.bf16.gmra.mxu1 %vm1628_vm14, %v3414_v12  ;;  %v3518_v12 = vor.u32 %v753_v39, %v3510_v11  ;;  %v844_v31 = vsel %vm2987_vm6, %v836_v28, %v843_v26  ;;  %v4090_v36 = vld [vmem:[#allocation4_spill] sm:$0xff] }
  0xb8   : > { %1147 = vst.msk [vmem:[#allocation2 + $0x74] sm:$0xf] %vm1117_vm9, %v1068_v48  ;;  %v3497_v57 = vld [vmem:[#allocation2 + $0x18] sm:$0xff]  ;;  %1361 = vrot.lane.b32.xlu2 %v1255_v15, %s2669_s25  ;;  %v4093_v15 = vld [vmem:[#allocation9_spill] sm:$0xff] }
  0xb9   : > { %2568 = vmatmul.msk.bf16.gmra.mxu2 %vm1628_vm14, %v3497_v57  ;;  %1149 = vst.msk [vmem:[#allocation2 + $0x7c] sm:$0xf] %vm1117_vm9, %v1072_v53  ;;  %v4091_v53 = vld [vmem:[#allocation7_spill] sm:$0xff] }
  0xba   : > { %968 = vst.msk [vmem:[#allocation2 + $0x84] sm:$0xf] %vm897_vm7, %v844_v31  ;;  %v933_v31 = vld [vmem:[#allocation2 + $0x40] sm:$0xf] }
  0xbc   : > { %1055 = vrot.lane.b32.xlu1 %v3453_v43, %s2667_s20 }
  0xbd   : > { %1365 = vrot.lane.b32.xlu0 %v1264_v23, %s2669_s25 }
  0xbe   : > { %v1026_v60 = vpop.permute.xlu1 %1025  ;;  %v3530_v38 = vld [vmem:[#allocation2 + $0x68] sm:$0xff] }
  0xbf   : > { %v1338_v62 = vpop.permute.xlu0 %1337  ;;  %1126 = vst.msk [vmem:[#allocation2 + $0x20] sm:$0xf] %vm1117_vm9, %v1026_v60  ;;  %v1342_v43 = vpop.permute.xlu2 %1341  ;;  %2529 = vmatmul.msk.bf16.vlgmr.msra.gmra.mxu3 %vm1628_vm14, %v3530_v38  ;;  %v1487_v39 = vld [vmem:[#allocation2 + $0x74] sm:$0xf]  ;;  %v929_v60 = vld [vmem:[#allocation2 + $0x38] sm:$0xf] }
  0xc0   : > { %v1448_v9 = vsel %vm3239_vm12, %v1338_v62, %v1447_v63  ;;  %1446 = vst.msk [vmem:[#allocation2 + $0x20] sm:$0xf] %vm1427_vm10, %v1336_v54  ;;  %2613 = vmatpush.bf16.msra.mxu3 %v3167_v34  ;;  %v966_v54 = vsel %vm3259_vm13, %v2950_v59, %v965_v46  ;;  %1053 = vrot.lane.b32.xlu2 %v3467_v32, %s2667_s20  ;;  %v1491_v23 = vld [vmem:[#allocation2 + $0x7c] sm:$0xf]  ;;  %v949_v63 = vld [vmem:[#allocation2 + $0x60] sm:$0xf] }
  0xc1   : > { %1449 = vst [vmem:[#allocation2 + $0x24] sm:$0xf] %v1448_v9  ;;  %2519 = vmatmul.msk.bf16.gmra.mxu0 %vm1628_vm14, %v3497_v57  ;;  %v950_v35 = vsel %vm3259_vm13, %v4093_v15, %v949_v63  ;;  %v708_v46 = vrot.slane %v3234_v3, 4 }
  0xc2   : > { %967 = vst [vmem:[#allocation2 + $0x80] sm:$0xf] %v966_v54  ;;  %v4095_v54 = vld [vmem:[#allocation10_spill] sm:$0xff] }
  0xc3   : > { %951 = vst [vmem:[#allocation2 + $0x60] sm:$0xf] %v950_v35  ;;  %v941_v35 = vld [vmem:[#allocation2 + $0x50] sm:$0xf] }
  0xc4   : > { %1363 = vrot.lane.b32.xlu1 %v1261_v58, %s2669_s25 }
  0xc5   : > { %1077 = vrot.lane.b32.xlu0 %v4086_v55, %s2667_s20 }
  0xc6   : > { %v1378_v56 = vpop.permute.xlu1 %1377 }
  0xc7   : > { %v1376_v17 = vpop.permute.xlu0 %1375  ;;  %v1488_v59 = vsel %vm3239_vm12, %v1378_v56, %v1487_v39  ;;  %v1380_v34 = vpop.permute.xlu2 %1379  ;;  %2543 = vmatmul.msk.bf16.gmra.mxu1 %vm1628_vm14, %v3388_v45  ;;  %v4088_v45 = vld [vmem:[#allocation5_spill] sm:$0xff] }
  0xc8   : > { %1486 = vst.msk [vmem:[#allocation2 + $0x70] sm:$0xf] %vm1427_vm10, %v1376_v17  ;;  %v2594_v14 = vld [vmem:[#allocation2 + $0x20] sm:$0xff]  ;;  %1079 = vrot.lane.b32.xlu2 %v4086_v55, %s2667_s20  ;;  %v692_v2 = vrot.slane %v4088_v45, 4  ;;  %v716_v55 = vsel %vm2987_vm6, %v708_v46, %v4095_v54 }
  0xc9   : > { %1489 = vst [vmem:[#allocation2 + $0x74] sm:$0xf] %v1488_v59  ;;  %2569 = vmatmul.msk.bf16.gmra.mxu2 %vm1628_vm14, %v2594_v14 }
  0xca   : > { %v700_v16 = vsel %vm2987_vm6, %v692_v2, %v4090_v36  ;;  %936 = vst.msk [vmem:[#allocation2 + $0x44] sm:$0xf] %vm897_vm7, %v716_v55  ;;  %v724_v2 = vrot.slane %v3383_v33, 4  ;;  %v945_v55 = vld [vmem:[#allocation2 + $0x58] sm:$0xf] }
  0xcb   : > { %932 = vst.msk [vmem:[#allocation2 + $0x3c] sm:$0xf] %vm897_vm7, %v700_v16 }
  0xcc   : > { %1389 = vrot.lane.b32.xlu1 %v2733_v5, %s2669_s25  ;;  %v4089_v5 = vld [vmem:[#allocation8_spill] sm:$0xff] }
  0xcd   : > { %v772_v48 = vrot.slane %v4089_v5, 4 }
  0xce   : > { %v1032_v32 = vpop.permute.xlu1 %1031 }
  0xcf   : > { %v1030_v44 = vpop.permute.xlu0 %1029  ;;  %v1034_v10 = vpop.permute.xlu2 %1033  ;;  %1129 = vst.msk [vmem:[#allocation2 + $0x2c] sm:$0xf] %vm1117_vm9, %v1032_v32  ;;  %v780_v13 = vsel %vm2987_vm6, %v772_v48, %v4091_v53  ;;  %v732_v53 = vsel %vm2987_vm6, %v724_v2, %v3364_v42 }
  0xd0   : > { %1128 = vst.msk [vmem:[#allocation2 + $0x28] sm:$0xf] %vm1117_vm9, %v1030_v44  ;;  %v3570_v47 = vld [vmem:[#allocation2 + $0x70] sm:$0xff]  ;;  %1387 = vrot.lane.b32.xlu2 %v4092_v49, %s2669_s25 }
  0xd1   : > { %2530 = vmatmul.msk.bf16.gmra.mxu3 %vm1628_vm14, %v3570_v47  ;;  %1130 = vst.msk [vmem:[#allocation2 + $0x30] sm:$0xf] %vm1117_vm9, %v1034_v10  ;;  %2520 = vmatmul.msk.bf16.gmra.mxu0 %vm1628_vm14, %v2594_v14  ;;  %v4096_v44 = vld [vmem:[#allocation11_spill] sm:$0xff] }
  0xd2   : > { %952 = vst.msk [vmem:[#allocation2 + $0x64] sm:$0xf] %vm897_vm7, %v780_v13  ;;  %v934_v32 = vsel %vm3259_vm13, %v4096_v44, %v933_v31 }
  0xd3   : > { %935 = vst [vmem:[#allocation2 + $0x40] sm:$0xf] %v934_v32 }
  0xd4   : > { %940 = vst.msk [vmem:[#allocation2 + $0x4c] sm:$0xf] %vm897_vm7, %v732_v53 }
  0xd6   : > { %v1070_v19 = vpop.permute.xlu1 %1069  ;;  %v1451_v25 = vld [vmem:[#allocation2 + $0x2c] sm:$0xf] }
  0xd7   : > { %v1382_v50 = vpop.permute.xlu0 %1381  ;;  %1148 = vst.msk [vmem:[#allocation2 + $0x78] sm:$0xf] %vm1117_vm9, %v1070_v19  ;;  %v1386_v22 = vpop.permute.xlu2 %1385  ;;  %v1452_v30 = vsel %vm3239_vm12, %v1342_v43, %v1451_v25  ;;  %2544 = vmatmul.msk.bf16.gmra.mxu1 %vm1628_vm14, %v3497_v57  ;;  %v4094_v43 = vld [vmem:[#allocation6_spill] sm:$0xff] }
  0xd8   : > { %v1492_v6 = vsel %vm3239_vm12, %v1382_v50, %v1491_v23  ;;  %1453 = vst [vmem:[#allocation2 + $0x2c] sm:$0xf] %v1452_v30  ;;  %v930_v52 = vsel %vm3259_vm13, %v4094_v43, %v929_v60  ;;  %v937_v19 = vld [vmem:[#allocation2 + $0x48] sm:$0xf]  ;;  %v942_v60 = vsel %vm3259_vm13, %v3432_v21, %v941_v35  ;;  %v756_v43 = vrot.slane %v3510_v11, 4 }
  0xd9   : > { %1493 = vst [vmem:[#allocation2 + $0x7c] sm:$0xf] %v1492_v6  ;;  %v938_v42 = vsel %vm3259_vm13, %v3391_v51, %v937_v19  ;;  %v744_v6 = vrot.slane %v742_v61, 7 }
  0xda   : > { %1490 = vst.msk [vmem:[#allocation2 + $0x78] sm:$0xf] %vm1427_vm10, %v1380_v34  ;;  %v764_v21 = vsel %vm2987_vm6, %v756_v43, %v3515_v27 }
  0xdb   : > { %931 = vst [vmem:[#allocation2 + $0x38] sm:$0xf] %v930_v52  ;;  %v747_v30 = vor.u32 %v745_v8, %v744_v6 }
  0xdc   : > { %939 = vst [vmem:[#allocation2 + $0x48] sm:$0xf] %v938_v42 }
  0xdd   : > { %943 = vst [vmem:[#allocation2 + $0x50] sm:$0xf] %v942_v60 }
  0xde   : > { %v1340_v62 = vpop.permute.xlu1 %1339  ;;  %948 = vst.msk [vmem:[#allocation2 + $0x5c] sm:$0xf] %vm897_vm7, %v764_v21 }
  0xdf   : > { %v1036_v29 = vpop.permute.xlu0 %1035  ;;  %v1040_v9 = vpop.permute.xlu2 %1039  ;;  %1450 = vst.msk [vmem:[#allocation2 + $0x28] sm:$0xf] %vm1427_vm10, %v1340_v62 }
  0xe0   : > { %1131 = vst.msk [vmem:[#allocation2 + $0x34] sm:$0xf] %vm1117_vm9, %v1036_v29 }
  0xe1   : > { %v3605_v57 = vld [vmem:[#allocation2 + $0x78] sm:$0xff]  ;;  %1133 = vst.msk [vmem:[#allocation2 + $0x3c] sm:$0xf] %vm1117_vm9, %v1040_v9 }
  0xe2   : > { %2531 = vmatmul.msk.bf16.gmra.mxu3 %vm1628_vm14, %v3605_v57 }
  0xe6   : > { %v1076_v18 = vpop.permute.xlu1 %1075  ;;  %v2595_v58 = vld [vmem:[#allocation2 + $0x28] sm:$0xff] }
  0xe7   : > { %v1074_v37 = vpop.permute.xlu0 %1073  ;;  %v1058_v40 = vpop.permute.xlu2 %1057  ;;  %1151 = vst.msk [vmem:[#allocation2 + $0x84] sm:$0xf] %vm1117_vm9, %v1076_v18  ;;  %2521 = vmatmul.msk.bf16.gmra.mxu0 %vm1628_vm14, %v2595_v58  ;;  %2545 = vmatmul.msk.bf16.gmra.mxu1 %vm1628_vm14, %v2594_v14  ;;  %v1455_v20 = vld [vmem:[#allocation2 + $0x34] sm:$0xf] }
  0xe8   : > { %1150 = vst.msk [vmem:[#allocation2 + $0x80] sm:$0xf] %vm1117_vm9, %v1074_v37  ;;  %2570 = vmatmul.msk.bf16.gmra.mxu2 %vm1628_vm14, %v2595_v58  ;;  %v1459_v45 = vld [vmem:[#allocation2 + $0x3c] sm:$0xf] }
  0xe9   : > { %1142 = vst.msk [vmem:[#allocation2 + $0x60] sm:$0xf] %vm1117_vm9, %v1058_v40 }
  0xee   : > { %v1346_v26 = vpop.permute.xlu1 %1345  ;;  %v1495_v17 = vld [vmem:[#allocation2 + $0x84] sm:$0xf] }
  0xef   : > { %v1344_v28 = vpop.permute.xlu0 %1343  ;;  %v1456_v39 = vsel %vm3239_vm12, %v1346_v26, %v1455_v20  ;;  %v1496_v56 = vsel %vm3239_vm12, %v1386_v22, %v1495_v17  ;;  %v1348_v3 = vpop.permute.xlu2 %1347  ;;  %v740_v22 = vrot.slane %v3424_v4, 4  ;;  %v946_v17 = vsel %vm3259_vm13, %v3518_v12, %v945_v55 }
  0xf0   : > { %1454 = vst.msk [vmem:[#allocation2 + $0x30] sm:$0xf] %vm1427_vm10, %v1344_v28 }
  0xf1   : > { %1457 = vst [vmem:[#allocation2 + $0x34] sm:$0xf] %v1456_v39  ;;  %v748_v61 = vsel %vm2987_vm6, %v740_v22, %v747_v30 }
  0xf2   : > { %1497 = vst [vmem:[#allocation2 + $0x84] sm:$0xf] %v1496_v56 }
  0xf3   : > { %944 = vst.msk [vmem:[#allocation2 + $0x54] sm:$0xf] %vm897_vm7, %v748_v61 }
  0xf4   : > { %947 = vst [vmem:[#allocation2 + $0x58] sm:$0xf] %v946_v17 }
  0xf6   : > { %v1384_v34 = vpop.permute.xlu1 %1383 }
  0xf7   : > { %v1060_v59 = vpop.permute.xlu0 %1059  ;;  %1494 = vst.msk [vmem:[#allocation2 + $0x80] sm:$0xf] %vm1427_vm10, %v1384_v34  ;;  %v1042_v10 = vpop.permute.xlu2 %1041  ;;  %2546 = vmatmul.msk.bf16.gmra.mxu1 %vm1628_vm14, %v2595_v58 }
  0xf8   : > { %1143 = vst.msk [vmem:[#allocation2 + $0x64] sm:$0xf] %vm1117_vm9, %v1060_v59  ;;  %v2596_v14 = vld [vmem:[#allocation2 + $0x30] sm:$0xff] }
  0xf9   : > { %2522 = vmatmul.msk.bf16.gmra.mxu0 %vm1628_vm14, %v2596_v14  ;;  %2571 = vmatmul.msk.bf16.gmra.mxu2 %vm1628_vm14, %v2596_v14  ;;  %1134 = vst.msk [vmem:[#allocation2 + $0x40] sm:$0xf] %vm1117_vm9, %v1042_v10 }
  0xfe   : > { %v1038_v48 = vpop.permute.xlu1 %1037  ;;  %v3639_v16 = vld [vmem:[#allocation2 + $0x80] sm:$0xff] }
  0xff   : > { %v1350_v5 = vpop.permute.xlu0 %1349  ;;  %1132 = vst.msk [vmem:[#allocation2 + $0x38] sm:$0xf] %vm1117_vm9, %v1038_v48  ;;  %v1048_v13 = vpop.permute.xlu2 %1047  ;;  %2532 = vmatmul.msk.bf16.gmra.mxu3 %vm1628_vm14, %v3639_v16  ;;  %v1479_v33 = vld [vmem:[#allocation2 + $0x64] sm:$0xf] }
 0x100   : > { %v1460_v36 = vsel %vm3239_vm12, %v1350_v5, %v1459_v45  ;;  %1458 = vst.msk [vmem:[#allocation2 + $0x38] sm:$0xf] %vm1427_vm10, %v1348_v3 }
 0x101   : > { %1461 = vst [vmem:[#allocation2 + $0x3c] sm:$0xf] %v1460_v36 }
 0x102   : > { %1137 = vst.msk [vmem:[#allocation2 + $0x4c] sm:$0xf] %vm1117_vm9, %v1048_v13 }
 0x106   : > { %v1370_v23 = vpop.permute.xlu1 %1369 }
 0x107   : > { %v1368_v50 = vpop.permute.xlu0 %1367  ;;  %v1480_v49 = vsel %vm3239_vm12, %v1370_v23, %v1479_v33  ;;  %2547 = vmatmul.msk.bf16.gmra.mxu1 %vm1628_vm14, %v2596_v14  ;;  %v1356_v8 = vpop.permute.xlu2 %1355 }
 0x108   : > { %1478 = vst.msk [vmem:[#allocation2 + $0x60] sm:$0xf] %vm1427_vm10, %v1368_v50  ;;  %v2597_v25 = vld [vmem:[#allocation2 + $0x38] sm:$0xff] }
 0x109   : > { %1481 = vst [vmem:[#allocation2 + $0x64] sm:$0xf] %v1480_v49  ;;  %2523 = vmatmul.msk.bf16.gmra.mxu0 %vm1628_vm14, %v2597_v25  ;;  %2572 = vmatmul.msk.bf16.gmra.mxu2 %vm1628_vm14, %v2597_v25  ;;  %v1467_v9 = vld [vmem:[#allocation2 + $0x4c] sm:$0xf] }
 0x10e   : > { %v1044_v63 = vpop.permute.xlu1 %1043 }
 0x10f   : > { %v1354_v15 = vpop.permute.xlu0 %1353  ;;  %1135 = vst.msk [vmem:[#allocation2 + $0x44] sm:$0xf] %vm1117_vm9, %v1044_v63 }
 0x110   : > { %v3664_v51 = vld [vmem:[#allocation2 + $0x60] sm:$0xff] }
 0x111   : > { %2553 = vmatmul.msk.bf16.vlgmr.msrb.gmra.mxu3 %vm1628_vm14, %v3664_v51 }
 0x112   : > { %v1362_v11 = vpop.permute.xlu2 %1361 }
 0x116   : > { %v1463_v29 = vld [vmem:[#allocation2 + $0x44] sm:$0xf]  ;;  %v1352_v4 = vpop.permute.xlu1 %1351 }
 0x117   : > { %v1046_v62 = vpop.permute.xlu0 %1045  ;;  %v1464_v24 = vsel %vm3239_vm12, %v1354_v15, %v1463_v29  ;;  %1462 = vst.msk [vmem:[#allocation2 + $0x40] sm:$0xf] %vm1427_vm10, %v1352_v4  ;;  %2548 = vmatmul.msk.bf16.gmra.mxu1 %vm1628_vm14, %v2597_v25 }
 0x118   : > { %1465 = vst [vmem:[#allocation2 + $0x44] sm:$0xf] %v1464_v24 }
 0x119   : > { %1136 = vst.msk [vmem:[#allocation2 + $0x48] sm:$0xf] %vm1117_vm9, %v1046_v62 }
 0x11a   : > { %1466 = vst.msk [vmem:[#allocation2 + $0x48] sm:$0xf] %vm1427_vm10, %v1356_v8  ;;  %v1054_v3 = vpop.permute.xlu2 %1053 }
 0x11b   : > { %1140 = vst.msk [vmem:[#allocation2 + $0x58] sm:$0xf] %vm1117_vm9, %v1054_v3 }
 0x11d   : > { %v1903_v46 = vpop.f32.mrf.mxu2 }
 0x11e   : > { %v1358_v52 = vpop.permute.xlu1 %1357  ;;  %v1690_v37 = vpop.f32.mrf.mxu0 }
 0x11f   : > { %v2598_v18 = vld [vmem:[#allocation2 + $0x40] sm:$0xff]  ;;  %v1468_v58 = vsel %vm3239_vm12, %v1358_v52, %v1467_v9  ;;  %v1052_v40 = vpop.permute.xlu0 %1051 }
 0x120   : > { %1469 = vst [vmem:[#allocation2 + $0x4c] sm:$0xf] %v1468_v58  ;;  %2524 = vmatmul.msk.bf16.gmra.mxu0 %vm1628_vm14, %v2598_v18  ;;  %2573 = vmatmul.msk.bf16.gmra.mxu2 %vm1628_vm14, %v2598_v18 }
 0x121   : > { %2554 = vmatmul.msk.bf16.gmra.mxu3 %vm1628_vm14, %v3530_v38  ;;  %1139 = vst.msk [vmem:[#allocation2 + $0x54] sm:$0xf] %vm1117_vm9, %v1052_v40 }
 0x122   : > { %v1080_v3 = vpop.permute.xlu2 %1079 }
 0x123   : > { %1153 = vst.msk [vmem:[#allocation2 + $0x8c] sm:$0xf] %vm1117_vm9, %v1080_v3 }
 0x124   : > { %v1795_v54 = vpop.f32.mrf.mxu1 }
 0x125   : > { %v1796_v28 = vadd.f32 %v1795_v54, %v1690_v37  ;;  %v1905_v32 = vpop.f32.mrf.mxu2 }
 0x126   : > { %v1692_v7 = vpop.f32.mrf.mxu0  ;;  %v1050_v27 = vpop.permute.xlu1 %1049 }
 0x127   : > { %1138 = vst.msk [vmem:[#allocation2 + $0x50] sm:$0xf] %vm1117_vm9, %v1050_v27  ;;  %v1360_v26 = vpop.permute.xlu0 %1359  ;;  %v1983_v39 = vadd.f32 %v1903_v46, %v1796_v28  ;;  %2549 = vmatmul.msk.bf16.gmra.mxu1 %vm1628_vm14, %v2598_v18  ;;  %v2599_v12 = vld [vmem:[#allocation2 + $0x48] sm:$0xff] }
 0x128   : > { %v1471_v20 = vld [vmem:[#allocation2 + $0x54] sm:$0xf]  ;;  %1470 = vst.msk [vmem:[#allocation2 + $0x50] sm:$0xf] %vm1427_vm10, %v1360_v26 }
 0x129   : > { %v1472_v56 = vsel %vm3239_vm12, %v1362_v11, %v1471_v20  ;;  %v2015_v59 = vpack.c.bf16 %v1983_v39, %v1983_v39  ;;  %v2152_v10 = vmul.f32 %v1983_v39, %v1983_v39  ;;  %v2081_v2 = vsel %vm2080_vm0, %v1983_v39, 0.0 }
 0x12a   : > { %1473 = vst [vmem:[#allocation2 + $0x54] sm:$0xf] %v1472_v56 }
 0x12b   : > { %2048 = vst.msk [vmem:[%s3704_s16] sm:$0xf] %vm2047_vm15, %v2015_v59  ;;  %v2184_v13 = vsel %vm2080_vm0, %v2152_v10, 0.0 }
 0x12c   : > { %v1797_v34 = vpop.f32.mrf.mxu1 }
 0x12d   : > { %v1798_v31 = vadd.f32 %v1797_v34, %v1692_v7 }
 0x12e   : > { %v1695_v14 = vpop.f32.mrf.mxu0  ;;  %v1056_v44 = vpop.permute.xlu1 %1055 }
 0x12f   : > { %1141 = vst.msk [vmem:[#allocation2 + $0x5c] sm:$0xf] %vm1117_vm9, %v1056_v44  ;;  %v1984_v45 = vadd.f32 %v1905_v32, %v1798_v31  ;;  %v1366_v23 = vpop.permute.xlu0 %1365 }
 0x130   : > { %2525 = vmatmul.msk.bf16.gmra.mxu0 %vm1628_vm14, %v2599_v12  ;;  %2574 = vmatmul.msk.bf16.gmra.mxu2 %vm1628_vm14, %v2599_v12 }
 0x131   : > { %2555 = vmatmul.msk.bf16.gmra.mxu3 %vm1628_vm14, %v3570_v47  ;;  %v2016_v5 = vpack.c.bf16 %v1984_v45, %v1984_v45  ;;  %v2082_v48 = vsel %vm2080_vm0, %v1984_v45, 0.0  ;;  %v2153_v36 = vmul.f32 %v1984_v45, %v1984_v45  ;;  %v2600_v15 = vld [vmem:[#allocation2 + $0x50] sm:$0xff] }
 0x132   : > { %v2083_v53 = vadd.f32 %v2082_v48, %v2081_v2  ;;  %v969_v2 = vld [vmem:[#allocation2 + $0x88] sm:$0xf] }
 0x133   : > { %2049 = vst.msk [vmem:[%s3704_s16 + $0x4] sm:$0xf] %vm2047_vm15, %v2016_v5  ;;  %v2185_v33 = vsel %vm2080_vm0, %v2153_v36, 0.0 }
 0x134   : > { %v1800_v50 = vpop.f32.mrf.mxu1  ;;  %v2186_v19 = vadd.f32 %v2185_v33, %v2184_v13  ;;  %v1499_v33 = vld [vmem:[#allocation2 + $0x8c] sm:$0xf] }
 0x135   : > { %v1801_v22 = vadd.f32 %v1800_v50, %v1695_v14 }
 0x136   : > { %v1697_v49 = vpop.f32.mrf.mxu0  ;;  %v1475_v42 = vld [vmem:[#allocation2 + $0x5c] sm:$0xf]  ;;  %v1364_v25 = vpop.permute.xlu1 %1363 }
 0x137   : > { %v1476_v6 = vsel %vm3239_vm12, %v1366_v23, %v1475_v42  ;;  %1474 = vst.msk [vmem:[#allocation2 + $0x58] sm:$0xf] %vm1427_vm10, %v1364_v25  ;;  %2550 = vmatmul.msk.bf16.gmra.mxu1 %vm1628_vm14, %v2599_v12 }
 0x138   : > { %1477 = vst [vmem:[#allocation2 + $0x5c] sm:$0xf] %v1476_v6 }
 0x13c   : > { %v1908_v30 = vpop.f32.mrf.mxu2  ;;  %v1802_v61 = vpop.f32.mrf.mxu1 }
 0x13d   : > { %v1985_v63 = vadd.f32 %v1908_v30, %v1801_v22  ;;  %v1803_v9 = vadd.f32 %v1802_v61, %v1697_v49 }
 0x13e   : > { %v1700_v24 = vpop.f32.mrf.mxu0  ;;  %v1390_v13 = vpop.permute.xlu1 %1389 }
 0x13f   : > { %v2017_v35 = vpack.c.bf16 %v1985_v63, %v1985_v63  ;;  %v2084_v29 = vsel %vm2080_vm0, %v1985_v63, 0.0  ;;  %v2154_v4 = vmul.f32 %v1985_v63, %v1985_v63  ;;  %v2601_v27 = vld [vmem:[#allocation2 + $0x58] sm:$0xff]  ;;  %v1500_v50 = vsel %vm3239_vm12, %v1390_v13, %v1499_v33 }
 0x140   : > { %v2085_v62 = vadd.f32 %v2084_v29, %v2083_v53  ;;  %2526 = vmatmul.msk.bf16.gmra.mxu0 %vm1628_vm14, %v2600_v15  ;;  %2575 = vmatmul.msk.bf16.gmra.mxu2 %vm1628_vm14, %v2600_v15  ;;  %v1078_v53 = vpop.permute.xlu0 %1077  ;;  %1501 = vst [vmem:[#allocation2 + $0x8c] sm:$0xf] %v1500_v50 }
 0x141   : > { %2050 = vst.msk [vmem:[%s3704_s16 + $0x8] sm:$0xf] %vm2047_vm15, %v2017_v35  ;;  %v2187_v8 = vsel %vm2080_vm0, %v2154_v4, 0.0  ;;  %2556 = vmatmul.msk.bf16.gmra.mxu3 %vm1628_vm14, %v3605_v57 }
 0x142   : > { %v2188_v60 = vadd.f32 %v2187_v8, %v2186_v19  ;;  %v3733_v11 = vpop.f32.mrf.mxu3  ;;  %v1388_v19 = vpop.permute.xlu2 %1387 }
 0x144   : > { %v1910_v43 = vpop.f32.mrf.mxu2  ;;  %v1805_v37 = vpop.f32.mrf.mxu1 }
 0x145   : > { %v1986_v52 = vadd.f32 %v1910_v43, %v1803_v9  ;;  %v1806_v28 = vadd.f32 %v1805_v37, %v1700_v24 }
 0x146   : > { %v1702_v55 = vpop.f32.mrf.mxu0 }
 0x147   : > { %v2018_v18 = vpack.c.bf16 %v1986_v52, %v1986_v52  ;;  %v2086_v58 = vsel %vm2080_vm0, %v1986_v52, 0.0  ;;  %v2155_v40 = vmul.f32 %v1986_v52, %v1986_v52  ;;  %2551 = vmatmul.msk.bf16.gmra.mxu1 %vm1628_vm14, %v2600_v15 }
 0x148   : > { %v2087_v21 = vadd.f32 %v2086_v58, %v2085_v62 }
 0x149   : > { %2051 = vst.msk [vmem:[%s3704_s16 + $0xc] sm:$0xf] %vm2047_vm15, %v2018_v18  ;;  %v2189_v46 = vsel %vm2080_vm0, %v2155_v40, 0.0 }
 0x14a   : > { %v2190_v54 = vadd.f32 %v2189_v46, %v2188_v60  ;;  %v3748_v34 = vpop.f32.mrf.mxu3 }
 0x14c   : > { %v1913_v7 = vpop.f32.mrf.mxu2  ;;  %v1807_v26 = vpop.f32.mrf.mxu1 }
 0x14d   : > { %v1987_v20 = vadd.f32 %v1913_v7, %v1806_v28  ;;  %v1808_v14 = vadd.f32 %v1807_v26, %v1702_v55 }
 0x14e   : > { %v1705_v44 = vpop.f32.mrf.mxu0 }
 0x14f   : > { %v2019_v17 = vpack.c.bf16 %v1987_v20, %v1987_v20  ;;  %v2088_v39 = vsel %vm2080_vm0, %v1987_v20, 0.0  ;;  %v2156_v56 = vmul.f32 %v1987_v20, %v1987_v20 }
 0x150   : > { %v2089_v59 = vadd.f32 %v2088_v39, %v2087_v21  ;;  %2527 = vmatmul.msk.bf16.gmra.mxu0 %vm1628_vm14, %v2601_v27  ;;  %2576 = vmatmul.msk.bf16.gmra.mxu2 %vm1628_vm14, %v2601_v27 }
 0x151   : > { %2579 = vmatmul.msk.bf16.vlgmr.msra.gmra.mxu3 %vm1628_vm14, %v3570_v47  ;;  %2052 = vst.msk [vmem:[%s3704_s16 + $0x10] sm:$0xf] %vm2047_vm15, %v2019_v17  ;;  %v2191_v12 = vsel %vm2080_vm0, %v2156_v56, 0.0  ;;  %v970_v47 = vsel %vm3259_vm13, %v2969_v41, %v969_v2 }
 0x152   : > { %v2192_v31 = vadd.f32 %v2191_v12, %v2190_v54  ;;  %971 = vst [vmem:[#allocation2 + $0x88] sm:$0xf] %v970_v47 }
 0x153   : > { %1152 = vst.msk [vmem:[#allocation2 + $0x88] sm:$0xf] %vm1117_vm9, %v1078_v53 }
 0x154   : > { %v1915_v32 = vpop.f32.mrf.mxu2  ;;  %v1810_v45 = vpop.f32.mrf.mxu1  ;;  %1498 = vst.msk [vmem:[#allocation2 + $0x88] sm:$0xf] %vm1427_vm10, %v1388_v19 }
 0x155   : > { %v1988_v10 = vadd.f32 %v1915_v32, %v1808_v14  ;;  %v3762_v49 = vpop.f32.mrf.mxu3  ;;  %v1811_v30 = vadd.f32 %v1810_v45, %v1705_v44 }
 0x156   : > { %v1707_v42 = vpop.f32.mrf.mxu0 }
 0x157   : > { %v2020_v5 = vpack.c.bf16 %v1988_v10, %v1988_v10  ;;  %v2090_v48 = vsel %vm2080_vm0, %v1988_v10, 0.0  ;;  %v2157_v36 = vmul.f32 %v1988_v10, %v1988_v10  ;;  %2552 = vmatmul.msk.bf16.gmra.mxu1 %vm1628_vm14, %v2601_v27 }
 0x158   : > { %v2091_v23 = vadd.f32 %v2090_v48, %v2089_v59 }
 0x159   : > { %2053 = vst.msk [vmem:[%s3704_s16 + $0x14] sm:$0xf] %vm2047_vm15, %v2020_v5  ;;  %v2193_v41 = vsel %vm2080_vm0, %v2157_v36, 0.0 }
 0x15a   : > { %v2194_v1 = vadd.f32 %v2193_v41, %v2192_v31 }
 0x15b   : > { %v2607_v28 = vld [vmem:[#allocation2 + $0x88] sm:$0xff] }
 0x15c   : > { %v1812_v25 = vpop.f32.mrf.mxu1 }
 0x15d   : > { %v3770_v22 = vpop.f32.mrf.mxu3  ;;  %v1813_v60 = vadd.f32 %v1812_v25, %v1707_v42 }
 0x160   : > { %2528 = vmatmul.msk.bf16.gmra.mxu0 %vm1628_vm14, %v3664_v51  ;;  %2577 = vmatmul.msk.bf16.gmra.mxu2 %vm1628_vm14, %v3664_v51 }
 0x161   : > { %2580 = vmatmul.msk.bf16.gmra.mxu3 %vm1628_vm14, %v3605_v57 }
 0x164   : > { %v1710_v0 = vpop.f32.mrf.mxu0  ;;  %v1815_v6 = vpop.f32.mrf.mxu1 }
 0x165   : > { %v3775_v57 = vpop.f32.mrf.mxu3  ;;  %v1816_v54 = vadd.f32 %v1815_v6, %v1710_v0 }
 0x16b   : > { %v1918_v63 = vpop.f32.mrf.mxu2 }
 0x16c   : > { %v1989_v15 = vadd.f32 %v1918_v63, %v1811_v30  ;;  %v1712_v61 = vpop.f32.mrf.mxu0  ;;  %v1817_v35 = vpop.f32.mrf.mxu1 }
 0x16d   : > { %v3786_v55 = vpop.f32.mrf.mxu3  ;;  %v1818_v12 = vadd.f32 %v1817_v35, %v1712_v61 }
 0x16e   : > { %v2021_v29 = vpack.c.bf16 %v1989_v15, %v1989_v15  ;;  %v2092_v4 = vsel %vm2080_vm0, %v1989_v15, 0.0  ;;  %v2158_v62 = vmul.f32 %v1989_v15, %v1989_v15 }
 0x16f   : > { %v2093_v24 = vadd.f32 %v2092_v4, %v2091_v23 }
 0x170   : > { %2054 = vst.msk [vmem:[%s3704_s16 + $0x18] sm:$0xf] %vm2047_vm15, %v2021_v29  ;;  %v2195_v51 = vsel %vm2080_vm0, %v2158_v62, 0.0  ;;  %2578 = vmatmul.msk.bf16.gmra.mxu2 %vm1628_vm14, %v3530_v38 }
 0x171   : > { %2581 = vmatmul.msk.bf16.gmra.mxu3 %vm1628_vm14, %v3639_v16  ;;  %v2196_v8 = vadd.f32 %v2195_v51, %v2194_v1 }
 0x173   : > { %v1920_v9 = vpop.f32.mrf.mxu2 }
 0x174   : > { %v1990_v43 = vadd.f32 %v1920_v9, %v1813_v60  ;;  %v1820_v58 = vpop.f32.mrf.mxu1 }
 0x176   : > { %v2022_v52 = vpack.c.bf16 %v1990_v43, %v1990_v43  ;;  %v2094_v37 = vsel %vm2080_vm0, %v1990_v43, 0.0  ;;  %v2159_v18 = vmul.f32 %v1990_v43, %v1990_v43  ;;  %v1715_v40 = vpop.f32.mrf.mxu0 }
 0x177   : > { %v2095_v16 = vadd.f32 %v2094_v37, %v2093_v24  ;;  %v1821_v48 = vadd.f32 %v1820_v58, %v1715_v40 }
 0x178   : > { %2055 = vst.msk [vmem:[%s3704_s16 + $0x1c] sm:$0xf] %vm2047_vm15, %v2022_v52  ;;  %v2197_v21 = vsel %vm2080_vm0, %v2159_v18, 0.0 }
 0x179   : > { %v2198_v46 = vadd.f32 %v2197_v21, %v2196_v8 }
 0x17c   : > { %v1923_v38 = vpop.f32.mrf.mxu2  ;;  %v1822_v56 = vpop.f32.mrf.mxu1 }
 0x17d   : > { %v1991_v7 = vadd.f32 %v1923_v38, %v1816_v54 }
 0x17e   : > { %v1717_v59 = vpop.f32.mrf.mxu0 }
 0x17f   : > { %v2023_v27 = vpack.c.bf16 %v1991_v7, %v1991_v7  ;;  %v2096_v20 = vsel %vm2080_vm0, %v1991_v7, 0.0  ;;  %v2160_v26 = vmul.f32 %v1991_v7, %v1991_v7  ;;  %v1823_v0 = vadd.f32 %v1822_v56, %v1717_v59 }
 0x180   : > { %v2097_v17 = vadd.f32 %v2096_v20, %v2095_v16 }
 0x181   : > { %2582 = vmatmul.msk.bf16.gmra.mxu3 %vm1628_vm14, %v2607_v28  ;;  %2056 = vst.msk [vmem:[%s3704_s16 + $0x20] sm:$0xf] %vm2047_vm15, %v2023_v27  ;;  %v2199_v39 = vsel %vm2080_vm0, %v2160_v26, 0.0 }
 0x182   : > { %v2200_v3 = vadd.f32 %v2199_v39, %v2198_v46  ;;  %v3793_v31 = vpop.f32.mrf.mxu3 }
 0x184   : > { %v1925_v14 = vpop.f32.mrf.mxu2  ;;  %v1825_v36 = vpop.f32.mrf.mxu1 }
 0x185   : > { %v1992_v44 = vadd.f32 %v1925_v14, %v1818_v12 }
 0x186   : > { %v1720_v13 = vpop.f32.mrf.mxu0 }
 0x187   : > { %v2024_v32 = vpack.c.bf16 %v1992_v44, %v1992_v44  ;;  %v2098_v10 = vsel %vm2080_vm0, %v1992_v44, 0.0  ;;  %v2161_v45 = vmul.f32 %v1992_v44, %v1992_v44  ;;  %v1826_v43 = vadd.f32 %v1825_v36, %v1720_v13 }
 0x188   : > { %v2099_v2 = vadd.f32 %v2098_v10, %v2097_v17 }
 0x189   : > { %2057 = vst.msk [vmem:[%s3704_s16 + $0x24] sm:$0xf] %vm2047_vm15, %v2024_v32  ;;  %v2201_v47 = vsel %vm2080_vm0, %v2161_v45, 0.0 }
 0x18a   : > { %v2202_v5 = vadd.f32 %v2201_v47, %v2200_v3  ;;  %v3799_v53 = vpop.f32.mrf.mxu3 }
 0x18c   : > { %v1928_v33 = vpop.f32.mrf.mxu2  ;;  %v1827_v15 = vpop.f32.mrf.mxu1 }
 0x18d   : > { %v1993_v23 = vadd.f32 %v1928_v33, %v1821_v48 }
 0x18e   : > { %v1722_v61 = vpop.f32.mrf.mxu0 }
 0x18f   : > { %v2025_v50 = vpack.c.bf16 %v1993_v23, %v1993_v23  ;;  %v2100_v19 = vsel %vm2080_vm0, %v1993_v23, 0.0  ;;  %v2162_v41 = vmul.f32 %v1993_v23, %v1993_v23  ;;  %v1828_v7 = vadd.f32 %v1827_v15, %v1722_v61 }
 0x190   : > { %v2101_v1 = vadd.f32 %v2100_v19, %v2099_v2 }
 0x191   : > { %2058 = vst.msk [vmem:[%s3704_s16 + $0x28] sm:$0xf] %vm2047_vm15, %v2025_v50  ;;  %v2203_v42 = vsel %vm2080_vm0, %v2162_v41, 0.0 }
 0x192   : > { %v2204_v25 = vadd.f32 %v2203_v42, %v2202_v5 }
 0x194   : > { %v3805_v6 = vpop.f32.mrf.mxu3  ;;  %v1930_v30 = vpop.f32.mrf.mxu2 }
 0x195   : > { %v1994_v63 = vadd.f32 %v1930_v30, %v1823_v0  ;;  %v1830_v9 = vpop.f32.mrf.mxu1  ;;  %v1856_v15 = vadd.f32 %v3805_v6, %v3733_v11 }
 0x197   : > { %v2026_v35 = vpack.c.bf16 %v1994_v63, %v1994_v63  ;;  %v2102_v29 = vsel %vm2080_vm0, %v1994_v63, 0.0  ;;  %v2163_v4 = vmul.f32 %v1994_v63, %v1994_v63 }
 0x198   : > { %v2103_v62 = vadd.f32 %v2102_v29, %v2101_v1 }
 0x199   : > { %2059 = vst.msk [vmem:[%s3704_s16 + $0x2c] sm:$0xf] %vm2047_vm15, %v2026_v35  ;;  %v2205_v24 = vsel %vm2080_vm0, %v2163_v4, 0.0 }
 0x19a   : > { %v2206_v51 = vadd.f32 %v2205_v24, %v2204_v25 }
 0x19c   : > { %v3811_v8 = vpop.f32.mrf.mxu3 }
 0x19d   : > { %v1725_v60 = vpop.f32.mrf.mxu0  ;;  %v1832_v38 = vpop.f32.mrf.mxu1  ;;  %v1858_v11 = vadd.f32 %v3811_v8, %v3748_v34 }
 0x19e   : > { %v1831_v56 = vadd.f32 %v1830_v9, %v1725_v60 }
 0x1a3   : > { %v1933_v37 = vpop.f32.mrf.mxu2 }
 0x1a4   : > { %v3813_v52 = vpop.f32.mrf.mxu3  ;;  %v1995_v18 = vadd.f32 %v1933_v37, %v1826_v43 }
 0x1a5   : > { %v1727_v46 = vpop.f32.mrf.mxu0  ;;  %v1835_v59 = vpop.f32.mrf.mxu1  ;;  %v1861_v34 = vadd.f32 %v3813_v52, %v3762_v49 }
 0x1a6   : > { %v2027_v58 = vpack.c.bf16 %v1995_v18, %v1995_v18  ;;  %v2104_v16 = vsel %vm2080_vm0, %v1995_v18, 0.0  ;;  %v2164_v40 = vmul.f32 %v1995_v18, %v1995_v18  ;;  %v1833_v32 = vadd.f32 %v1832_v38, %v1727_v46 }
 0x1a7   : > { %v3816_v21 = vadd.f32 %v2104_v16, %v2103_v62 }
 0x1a8   : > { %2060 = vst.msk [vmem:[%s3704_s16 + $0x30] sm:$0xf] %vm2047_vm15, %v2027_v58  ;;  %v2207_v54 = vsel %vm2080_vm0, %v2164_v40, 0.0 }
 0x1a9   : > { %v3821_v28 = vadd.f32 %v2207_v54, %v2206_v51 }
 0x1ab   : > { %v1935_v20 = vpop.f32.mrf.mxu2 }
 0x1ac   : > { %v3823_v27 = vpop.f32.mrf.mxu3  ;;  %v3825_v26 = vadd.f32 %v1935_v20, %v1828_v7 }
 0x1ad   : > { %v1730_v39 = vpop.f32.mrf.mxu0  ;;  %v1837_v5 = vpop.f32.mrf.mxu1 }
 0x1ae   : > { %v2028_v17 = vpack.c.bf16 %v3825_v26, %v3825_v26  ;;  %v1836_v36 = vadd.f32 %v1835_v59, %v1730_v39  ;;  %v2165_v59 = vmul.f32 %v3825_v26, %v3825_v26  ;;  %v2106_v49 = vsel %vm2080_vm0, %v3825_v26, 0.0 }
 0x1af   : > { %v2107_v26 = vadd.f32 %v2106_v49, %v3816_v21 }
 0x1b0   : > { %2061 = vst.msk [vmem:[%s3704_s16 + $0x34] sm:$0xf] %vm2047_vm15, %v2028_v17 }
 0x1b3   : > { %v1938_v12 = vpop.f32.mrf.mxu2 }
 0x1b4   : > { %v3831_v3 = vpop.f32.mrf.mxu3  ;;  %v3833_v14 = vadd.f32 %v1938_v12, %v1831_v56 }
 0x1b5   : > { %v1732_v45 = vpop.f32.mrf.mxu0  ;;  %v1840_v41 = vpop.f32.mrf.mxu1 }
 0x1b6   : > { %v2029_v44 = vpack.c.bf16 %v3833_v14, %v3833_v14  ;;  %v1838_v1 = vadd.f32 %v1837_v5, %v1732_v45  ;;  %v2166_v52 = vmul.f32 %v3833_v14, %v3833_v14  ;;  %v2108_v45 = vsel %vm2080_vm0, %v3833_v14, 0.0 }
 0x1b8   : > { %2062 = vst.msk [vmem:[%s3704_s16 + $0x38] sm:$0xf] %vm2047_vm15, %v2029_v44  ;;  %v1863_v44 = vadd.f32 %v3823_v27, %v3770_v22 }
 0x1bb   : > { %v1940_v2 = vpop.f32.mrf.mxu2 }
 0x1bc   : > { %v3839_v10 = vpop.f32.mrf.mxu3  ;;  %v3841_v47 = vadd.f32 %v1940_v2, %v1833_v32  ;;  %v2209_v32 = vsel %vm2080_vm0, %v2165_v59, 0.0 }
 0x1bd   : > { %v1735_v50 = vpop.f32.mrf.mxu0  ;;  %v1842_v61 = vpop.f32.mrf.mxu1 }
 0x1be   : > { %v2030_v48 = vpack.c.bf16 %v3841_v47, %v3841_v47  ;;  %v1841_v35 = vadd.f32 %v1840_v41, %v1735_v50  ;;  %v2167_v2 = vmul.f32 %v3841_v47, %v3841_v47  ;;  %v2211_v50 = vsel %vm2080_vm0, %v2166_v52, 0.0 }
 0x1bf   : > { %v2110_v22 = vsel %vm2080_vm0, %v3841_v47, 0.0  ;;  %v2109_v41 = vadd.f32 %v2108_v45, %v2107_v26  ;;  %v1868_v45 = vadd.f32 %v3839_v10, %v3786_v55 }
 0x1c0   : > { %2063 = vst.msk [vmem:[%s3704_s16 + $0x3c] sm:$0xf] %vm2047_vm15, %v2030_v48 }
 0x1c3   : > { %v1943_v33 = vpop.f32.mrf.mxu2 }
 0x1c4   : > { %v3847_v13 = vpop.f32.mrf.mxu3  ;;  %v3849_v23 = vadd.f32 %v1943_v33, %v1836_v36 }
 0x1c5   : > { %v1737_v63 = vpop.f32.mrf.mxu0  ;;  %v1845_v37 = vpop.f32.mrf.mxu1 }
 0x1c6   : > { %v2031_v19 = vpack.c.bf16 %v3849_v23, %v3849_v23  ;;  %v1843_v9 = vadd.f32 %v1842_v61, %v1737_v63  ;;  %v2168_v27 = vmul.f32 %v3849_v23, %v3849_v23  ;;  %v2111_v61 = vadd.f32 %v2110_v22, %v2109_v41 }
 0x1c8   : > { %2064 = vst.msk [vmem:[%s3704_s16 + $0x40] sm:$0xf] %vm2047_vm15, %v2031_v19  ;;  %v2210_v19 = vadd.f32 %v2209_v32, %v3821_v28  ;;  %v2215_v28 = vsel %vm2080_vm0, %v2168_v27, 0.0 }
 0x1cb   : > { %v1945_v25 = vpop.f32.mrf.mxu2 }
 0x1cc   : > { %v3855_v42 = vpop.f32.mrf.mxu3  ;;  %v3857_v0 = vadd.f32 %v1945_v25, %v1838_v1  ;;  %v2213_v25 = vsel %vm2080_vm0, %v2167_v2, 0.0 }
 0x1cd   : > { %v1740_v6 = vpop.f32.mrf.mxu0  ;;  %v1847_v39 = vpop.f32.mrf.mxu1 }
 0x1ce   : > { %v2032_v30 = vpack.c.bf16 %v3857_v0, %v3857_v0  ;;  %v1846_v8 = vadd.f32 %v1845_v37, %v1740_v6  ;;  %v2169_v47 = vmul.f32 %v3857_v0, %v3857_v0 }
 0x1d0   : > { %2065 = vst.msk [vmem:[%s3704_s16 + $0x44] sm:$0xf] %vm2047_vm15, %v2032_v30  ;;  %v2112_v30 = vsel %vm2080_vm0, %v3849_v23, 0.0  ;;  %v1866_v23 = vadd.f32 %v3831_v3, %v3775_v57 }
 0x1d3   : > { %v1948_v4 = vpop.f32.mrf.mxu2 }
 0x1d4   : > { %v1963_v29 = vpop.f32.mrf.mxu3  ;;  %v3867_v24 = vadd.f32 %v1948_v4, %v1841_v35 }
 0x1d5   : > { %v3865_v62 = vadd.f32 %v1963_v29, %v1856_v15  ;;  %v1742_v38 = vpop.f32.mrf.mxu0  ;;  %v2212_v15 = vadd.f32 %v2211_v50, %v2210_v19  ;;  %v1850_v35 = vpop.f32.mrf.mxu1  ;;  %v2114_v29 = vsel %vm2080_vm0, %v3857_v0, 0.0 }
 0x1d6   : > { %v2033_v60 = vpack.c.bf16 %v3867_v24, %v3867_v24  ;;  %v1848_v5 = vadd.f32 %v1847_v39, %v1742_v38  ;;  %v2170_v4 = vmul.f32 %v3867_v24, %v3867_v24  ;;  %v2116_v6 = vsel %vm2080_vm0, %v3867_v24, 0.0 }
 0x1d7   : > { %v2039_v51 = vpack.c.bf16 %v3865_v62, %v3865_v62 }
 0x1d8   : > { %2066 = vst.msk [vmem:[%s3704_s16 + $0x48] sm:$0xf] %vm2047_vm15, %v2033_v60  ;;  %v2113_v60 = vadd.f32 %v2112_v30, %v2111_v61 }
 0x1d9   : > { %2072 = vst.msk [vmem:[%s3704_s16 + $0x60] sm:$0xf] %vm2047_vm15, %v2039_v51  ;;  %v2214_v51 = vadd.f32 %v2213_v25, %v2212_v15  ;;  %v2176_v25 = vmul.f32 %v3865_v62, %v3865_v62 }
 0x1da   : > { %v2115_v0 = vadd.f32 %v2114_v29, %v2113_v60 }
 0x1db   : > { %v1950_v18 = vpop.f32.mrf.mxu2  ;;  %v2231_v60 = vsel %vm2080_vm0, %v2176_v25, 0.0 }
 0x1dc   : > { %v1965_v43 = vpop.f32.mrf.mxu3  ;;  %v2002_v16 = vadd.f32 %v1950_v18, %v1843_v9  ;;  %v2216_v18 = vadd.f32 %v2215_v28, %v2214_v51  ;;  %v2117_v38 = vadd.f32 %v2116_v6, %v2115_v0 }
 0x1dd   : > { %v3879_v58 = vadd.f32 %v1965_v43, %v1858_v11  ;;  %v1745_v1 = vpop.f32.mrf.mxu0  ;;  %v2217_v11 = vsel %vm2080_vm0, %v2169_v47, 0.0 }
 0x1de   : > { %v2034_v46 = vpack.c.bf16 %v2002_v16, %v2002_v16  ;;  %v2171_v9 = vmul.f32 %v2002_v16, %v2002_v16  ;;  %v1851_v43 = vadd.f32 %v1850_v35, %v1745_v1  ;;  %v2118_v57 = vsel %vm2080_vm0, %v2002_v16, 0.0 }
 0x1df   : > { %v2040_v40 = vpack.c.bf16 %v3879_v58, %v3879_v58  ;;  %v2119_v49 = vadd.f32 %v2118_v57, %v2117_v38  ;;  %v2128_v35 = vsel %vm2080_vm0, %v3865_v62, 0.0  ;;  %v2177_v28 = vmul.f32 %v3879_v58, %v3879_v58 }
 0x1e0   : > { %2067 = vst.msk [vmem:[%s3704_s16 + $0x4c] sm:$0xf] %vm2047_vm15, %v2034_v46 }
 0x1e1   : > { %2073 = vst.msk [vmem:[%s3704_s16 + $0x64] sm:$0xf] %vm2047_vm15, %v2040_v40 }
 0x1e3   : > { %v1953_v7 = vpop.f32.mrf.mxu2 }
 0x1e4   : > { %v1968_v54 = vpop.f32.mrf.mxu3  ;;  %v2003_v17 = vadd.f32 %v1953_v7, %v1846_v8  ;;  %v2221_v7 = vsel %vm2080_vm0, %v2171_v9, 0.0 }
 0x1e5   : > { %v3889_v20 = vadd.f32 %v1968_v54, %v1861_v34  ;;  %v2219_v34 = vsel %vm2080_vm0, %v2170_v4, 0.0  ;;  %v2218_v54 = vadd.f32 %v2217_v11, %v2216_v18  ;;  %v1747_v52 = vpop.f32.mrf.mxu0  ;;  %v1871_v4 = vadd.f32 %v3847_v13, %v3793_v31 }
 0x1e6   : > { %v2035_v12 = vpack.c.bf16 %v2003_v17, %v2003_v17  ;;  %v2172_v3 = vmul.f32 %v2003_v17, %v2003_v17  ;;  %v2120_v39 = vsel %vm2080_vm0, %v2003_v17, 0.0  ;;  %v2130_v11 = vsel %vm2080_vm0, %v3879_v58, 0.0 }
 0x1e7   : > { %v2041_v56 = vpack.c.bf16 %v3889_v20, %v3889_v20  ;;  %v2121_v17 = vadd.f32 %v2120_v39, %v2119_v49  ;;  %v2178_v62 = vmul.f32 %v3889_v20, %v3889_v20  ;;  %v2233_v18 = vsel %vm2080_vm0, %v2177_v28, 0.0 }
 0x1e8   : > { %2068 = vst.msk [vmem:[%s3704_s16 + $0x50] sm:$0xf] %vm2047_vm15, %v2035_v12  ;;  %v2220_v12 = vadd.f32 %v2219_v34, %v2218_v54  ;;  %v2223_v16 = vsel %vm2080_vm0, %v2172_v3, 0.0  ;;  %v2132_v31 = vsel %vm2080_vm0, %v3889_v20, 0.0 }
 0x1e9   : > { %2074 = vst.msk [vmem:[%s3704_s16 + $0x68] sm:$0xf] %vm2047_vm15, %v2041_v56  ;;  %v2235_v58 = vsel %vm2080_vm0, %v2178_v62, 0.0 }
 0x1ea   : > { %v2222_v2 = vadd.f32 %v2221_v7, %v2220_v12  ;;  %v1873_v7 = vadd.f32 %v3855_v42, %v3799_v53 }
 0x1eb   : > { %v1955_v36 = vpop.f32.mrf.mxu2 }
 0x1ec   : > { %v1970_v48 = vpop.f32.mrf.mxu3  ;;  %v2004_v14 = vadd.f32 %v1955_v36, %v1848_v5  ;;  %v1852_v5 = vpop.f32.mrf.mxu1  ;;  %v2224_v22 = vadd.f32 %v2223_v16, %v2222_v2 }
 0x1ed   : > { %v3911_v33 = vadd.f32 %v1970_v48, %v1863_v44  ;;  %v1853_v48 = vadd.f32 %v1852_v5, %v1747_v52 }
 0x1ee   : > { %v2036_v63 = vpack.c.bf16 %v2004_v14, %v2004_v14  ;;  %v2173_v56 = vmul.f32 %v2004_v14, %v2004_v14  ;;  %v2122_v44 = vsel %vm2080_vm0, %v2004_v14, 0.0 }
 0x1ef   : > { %v2042_v21 = vpack.c.bf16 %v3911_v33, %v3911_v33  ;;  %v2123_v27 = vadd.f32 %v2122_v44, %v2121_v17  ;;  %v2179_v13 = vmul.f32 %v3911_v33, %v3911_v33  ;;  %v2134_v57 = vsel %vm2080_vm0, %v3911_v33, 0.0 }
 0x1f0   : > { %2069 = vst.msk [vmem:[%s3704_s16 + $0x54] sm:$0xf] %vm2047_vm15, %v2036_v63  ;;  %v2225_v26 = vsel %vm2080_vm0, %v2173_v56, 0.0 }
 0x1f1   : > { %2075 = vst.msk [vmem:[%s3704_s16 + $0x6c] sm:$0xf] %vm2047_vm15, %v2042_v21  ;;  %v2226_v21 = vadd.f32 %v2225_v26, %v2224_v22  ;;  %v2237_v20 = vsel %vm2080_vm0, %v2179_v13, 0.0 }
 0x1f3   : > { %v1958_v40 = vpop.f32.mrf.mxu2 }
 0x1f4   : > { %v1973_v37 = vpop.f32.mrf.mxu3  ;;  %v2005_v8 = vadd.f32 %v1958_v40, %v1851_v43 }
 0x1f5   : > { %v3940_v46 = vadd.f32 %v1973_v37, %v1866_v23 }
 0x1f6   : > { %v2037_v59 = vpack.c.bf16 %v2005_v8, %v2005_v8  ;;  %v2174_v32 = vmul.f32 %v2005_v8, %v2005_v8  ;;  %v2124_v36 = vsel %vm2080_vm0, %v2005_v8, 0.0 }
 0x1f7   : > { %v2043_v24 = vpack.c.bf16 %v3940_v46, %v3940_v46  ;;  %v2125_v55 = vadd.f32 %v2124_v36, %v2123_v27  ;;  %v2180_v3 = vmul.f32 %v3940_v46, %v3940_v46  ;;  %v2136_v38 = vsel %vm2080_vm0, %v3940_v46, 0.0 }
 0x1f8   : > { %2070 = vst.msk [vmem:[%s3704_s16 + $0x58] sm:$0xf] %vm2047_vm15, %v2037_v59  ;;  %v2227_v41 = vsel %vm2080_vm0, %v2174_v32, 0.0 }
 0x1f9   : > { %2076 = vst.msk [vmem:[%s3704_s16 + $0x70] sm:$0xf] %vm2047_vm15, %v2043_v24  ;;  %v2228_v15 = vadd.f32 %v2227_v41, %v2226_v21  ;;  %v2239_v33 = vsel %vm2080_vm0, %v2180_v3, 0.0 }
 0x1fb   : > { %v1960_v19 = vpop.f32.mrf.mxu2 }
 0x1fc   : > { %v1975_v50 = vpop.f32.mrf.mxu3  ;;  %v2006_v1 = vadd.f32 %v1960_v19, %v1853_v48 }
 0x1fd   : > { %v2012_v14 = vadd.f32 %v1975_v50, %v1868_v45 }
 0x1fe   : > { %v2038_v30 = vpack.c.bf16 %v2006_v1, %v2006_v1  ;;  %v2126_v47 = vsel %vm2080_vm0, %v2006_v1, 0.0  ;;  %v2175_v63 = vmul.f32 %v2006_v1, %v2006_v1 }
 0x1ff   : > { %v2044_v10 = vpack.c.bf16 %v2012_v14, %v2012_v14  ;;  %v2127_v61 = vadd.f32 %v2126_v47, %v2125_v55  ;;  %v2181_v24 = vmul.f32 %v2012_v14, %v2012_v14  ;;  %v2138_v59 = vsel %vm2080_vm0, %v2012_v14, 0.0 }
 0x200   : > { %2071 = vst.msk [vmem:[%s3704_s16 + $0x5c] sm:$0xf] %vm2047_vm15, %v2038_v30  ;;  %v2229_v29 = vsel %vm2080_vm0, %v2175_v63, 0.0 }
 0x201   : > { %2077 = vst.msk [vmem:[%s3704_s16 + $0x74] sm:$0xf] %vm2047_vm15, %v2044_v10  ;;  %v2129_v23 = vadd.f32 %v2128_v35, %v2127_v61  ;;  %v2230_v51 = vadd.f32 %v2229_v29, %v2228_v15  ;;  %v2241_v32 = vsel %vm2080_vm0, %v2181_v24, 0.0 }
 0x203   : > { %v2131_v9 = vadd.f32 %v2130_v11, %v2129_v23  ;;  %v2232_v43 = vadd.f32 %v2231_v60, %v2230_v51 }
 0x204   : > { %v1978_v6 = vpop.f32.mrf.mxu3 }
 0x205   : > { %v2013_v37 = vadd.f32 %v1978_v6, %v1871_v4  ;;  %v2234_v0 = vadd.f32 %v2233_v18, %v2232_v43  ;;  %v2133_v40 = vadd.f32 %v2132_v31, %v2131_v9 }
 0x207   : > { %v2045_v34 = vpack.c.bf16 %v2013_v37, %v2013_v37  ;;  %v2135_v8 = vadd.f32 %v2134_v57, %v2133_v40  ;;  %v2236_v54 = vadd.f32 %v2235_v58, %v2234_v0  ;;  %v2182_v12 = vmul.f32 %v2013_v37, %v2013_v37 }
 0x208   : > { %v2140_v46 = vsel %vm2080_vm0, %v2013_v37, 0.0 }
 0x209   : > { %2078 = vst.msk [vmem:[%s3704_s16 + $0x78] sm:$0xf] %vm2047_vm15, %v2045_v34  ;;  %v2137_v39 = vadd.f32 %v2136_v38, %v2135_v8  ;;  %v2238_v56 = vadd.f32 %v2237_v20, %v2236_v54  ;;  %v2243_v5 = vsel %vm2080_vm0, %v2182_v12, 0.0 }
 0x20b   : > { %v2139_v52 = vadd.f32 %v2138_v59, %v2137_v39  ;;  %v2240_v16 = vadd.f32 %v2239_v33, %v2238_v56 }
 0x20c   : > { %v1980_v49 = vpop.f32.mrf.mxu3 }
 0x20d   : > { %v2014_v44 = vadd.f32 %v1980_v49, %v1873_v7  ;;  %v2242_v45 = vadd.f32 %v2241_v32, %v2240_v16  ;;  %v2141_v2 = vadd.f32 %v2140_v46, %v2139_v52 }
 0x20f   : > { %v2046_v53 = vpack.c.bf16 %v2014_v44, %v2014_v44  ;;  %v2142_v42 = vsel %vm2080_vm0, %v2014_v44, 0.0  ;;  %v2183_v17 = vmul.f32 %v2014_v44, %v2014_v44  ;;  %v2244_v48 = vadd.f32 %v2243_v5, %v2242_v45 }
 0x210   : > { %v2143_v26 = vadd.f32 %v2142_v42, %v2141_v2 }
 0x211   : > { %2079 = vst.msk [vmem:[%s3704_s16 + $0x7c] sm:$0xf] %vm2047_vm15, %v2046_v53  ;;  %v2245_v36 = vsel %vm2080_vm0, %v2183_v17, 0.0 }
 0x212   : > { %v2144_v50 = vrot.slane %v2143_v26, 4  ;;  %v2246_v22 = vadd.f32 %v2245_v36, %v2244_v48 }
 0x214   : > { %v2145_v27 = vadd.f32 %v2144_v50, %v2143_v26  ;;  %v2247_v19 = vrot.slane %v2246_v22, 4 }
 0x216   : > { %v2146_v14 = vrot.slane %v2145_v27, 2  ;;  %v2248_v41 = vadd.f32 %v2247_v19, %v2246_v22 }
 0x218   : > { %v2147_v1 = vadd.f32 %v2146_v14, %v2145_v27  ;;  %v2249_v21 = vrot.slane %v2248_v41, 2 }
 0x21a   : > { %v2148_v55 = vrot.slane %v2147_v1, 1  ;;  %v2250_v10 = vadd.f32 %v2249_v21, %v2248_v41 }
 0x21c   : > { %v2149_v25 = vadd.f32 %v2148_v55, %v2147_v1  ;;  %v2251_v30 = vrot.slane %v2250_v10, 1 }
 0x21e   : > { %2151 = vst.msk [vmem:[%s411_s22] sm:$0x1] %vm2150_vm1, %v2149_v25  ;;  %v2252_v47 = vadd.f32 %v2251_v30, %v2250_v10 }
 0x220   : > { %2253 = vst.msk [vmem:[%s411_s22 + $0x1] sm:$0x1] %vm2150_vm1, %v2252_v47 }
 0x221 PF: > { %s16_s0 = sadd.s32 1, %s2664_s0   ;;  %s4097_s18 = smov %s2660_s19 }
 0x222   : > { %p13_p5 = scmp.ge.s32.totalorder %s16_s0, 4   ;;  %s4098_s19 = smov %s4100_s2 }
 0x224   :  { %15 = sbr.rel (!%p13_p5) target bundleno = 2 (0x2), region = 86 }

</bundles_post_ra>
